<compile_context>
chip_gen: v7x
topology: tpu7x:2x2x1
jax: 0.10.0
libtpu: 0.0.40
codegen_flags: <defaults>
</compile_context>

<pallas_src>
import jax
import jax.numpy as jnp
from jax.experimental import pallas as pl
from jax.experimental.pallas import tpu as pltpu


# ----------------------------------------------------------------------------
# Kernels
# ----------------------------------------------------------------------------
def _make_fused_kernel(num_branches):
    """Single grid step computing every branch; writes the (N, R, D) slab."""

    def kernel(*refs):
        x_refs = refs[:num_branches]              # each (N, Cin)  f32
        w_ref = refs[num_branches]                # (R, Cin, D)    bf16 (scale-folded)
        bias_ref = refs[num_branches + 1]         # (R, 1, D)      f32
        o_ref = refs[num_branches + 2]            # (N, R, D)      f32
        for r in range(num_branches):             # static unroll, R is tiny
            x = x_refs[r][...].astype(jnp.bfloat16)   # in-kernel cast (free vs DMA)
            y = jnp.dot(x, w_ref[r], preferred_element_type=jnp.float32)  # MXU
            o_ref[:, r, :] = jnp.maximum(y + bias_ref[r], 0.0).astype(o_ref.dtype)

    return kernel


def _make_split_kernel(num_branches):
    """One grid step per TensorCore (v7x): each step handles ALL branches for
    its half of the embedding dim, reading one contiguous weight slab."""

    def kernel(*refs):
        x_refs = refs[:num_branches]              # each (N, Cin)        f32
        w_ref = refs[num_branches]                # (1, R, Cin, Dt)      bf16 (contiguous slab)
        bias_ref = refs[num_branches + 1]         # (1, R, 1, Dt)        f32
        o_ref = refs[num_branches + 2]            # (N, R, Dt)           f32
        for r in range(num_branches):             # static unroll
            x = x_refs[r][...].astype(jnp.bfloat16)
            y = jnp.dot(x, w_ref[0, r, :, :], preferred_element_type=jnp.float32)
            o_ref[:, r, :] = jnp.maximum(y + bias_ref[0, r, :, :], 0.0).astype(o_ref.dtype)

    return kernel


# ----------------------------------------------------------------------------
# pallas_call wrappers
# ----------------------------------------------------------------------------
def _cost_estimate(R, N, Cin, D):
    return pl.CostEstimate(
        flops=2 * R * N * Cin * D,
        bytes_accessed=(R * Cin * D * 2       # bf16 weights (dominant)
                        + R * N * Cin * 4     # f32 activations (tiny)
                        + R * D * 4           # f32 bias
                        + N * R * D * 4),     # f32 output
        transcendentals=0,
    )


_VMEM_LIMIT = 32 * 1024 * 1024   # safe on all gens; guards v5e's 16 MiB default


def _mdrs_reduction_fused(x_list, w_folded, bias):
    """Single-step kernel (optimal on single-TensorCore chips: v5e / v6e)."""
    R, Cin, D = w_folded.shape
    N = x_list[0].shape[0]
    grid_spec = pltpu.PrefetchScalarGridSpec(
        num_scalar_prefetch=0,
        grid=(1,),
        in_specs=(
            [pl.BlockSpec((N, Cin), lambda i: (0, 0)) for _ in range(R)]
            + [pl.BlockSpec((R, Cin, D), lambda i: (0, 0, 0)),
               pl.BlockSpec((R, 1, D), lambda i: (0, 0, 0))]),
        out_specs=pl.BlockSpec((N, R, D), lambda i: (0, 0, 0)),
    )
    return pl.pallas_call(
        _make_fused_kernel(R),
        out_shape=jax.ShapeDtypeStruct((N, R, D), jnp.float32),
        grid_spec=grid_spec,
        compiler_params=pltpu.CompilerParams(
            dimension_semantics=("arbitrary",),
            vmem_limit_bytes=_VMEM_LIMIT),
        cost_estimate=_cost_estimate(R, N, Cin, D),
    )(*x_list, w_folded, bias)


def _mdrs_reduction_split(x_list, w_split, bias_split):
    """grid=(n_cores,) fully-parallel: one step per TensorCore (2-TC v7x).

    w_split is pre-reordered to (n_d, R, Cin, Dt) so each step's weight block
    is ONE contiguous HBM slab (full-rate DMA, no 256-byte strided chunks).
    """
    n_d, R, Cin, Dt = w_split.shape
    D = n_d * Dt
    N = x_list[0].shape[0]
    grid_spec = pltpu.PrefetchScalarGridSpec(
        num_scalar_prefetch=0,
        grid=(n_d,),
        in_specs=(
            [pl.BlockSpec((N, Cin), lambda c: (0, 0)) for _ in range(R)]
            + [pl.BlockSpec((1, R, Cin, Dt), lambda c: (c, 0, 0, 0)),
               pl.BlockSpec((1, R, 1, Dt), lambda c: (c, 0, 0, 0))]),
        out_specs=pl.BlockSpec((N, R, Dt), lambda c: (0, 0, c)),
    )
    return pl.pallas_call(
        _make_split_kernel(R),
        out_shape=jax.ShapeDtypeStruct((N, R, D), jnp.float32),
        grid_spec=grid_spec,
        compiler_params=pltpu.CompilerParams(
            dimension_semantics=("parallel",),
            vmem_limit_bytes=_VMEM_LIMIT),
        cost_estimate=_cost_estimate(R, N, Cin, D),
    )(*x_list, w_split, bias_split)


# ----------------------------------------------------------------------------
# Module-level wrapper (mirrors MDRSReduction.forward, inference mode)
# ----------------------------------------------------------------------------
def _tensorcores_per_chip():
    try:
        kind = jax.devices()[0].device_kind.lower()
    except Exception:
        return 1
    return 2 if "v7" in kind else 1       # v7x has 2 TensorCores per chip


def prepare_reduction_params(params, eps=1e-5, num_d_splits=2):
    """Fold inference BatchNorm into the 1x1-conv weight ONCE; cache the result.

    params: stacked 'weight' (R, Cin, D) (= conv weight transposed),
            'gamma', 'beta', 'running_mean', 'running_var' each (R, D).

    Also pre-reorders the weights/bias for the 2-TensorCore split path so each
    grid step DMAs one contiguous per-core slab (done once, cached).
    """
    scale = params["gamma"] / jnp.sqrt(params["running_var"] + eps)    # (R, D)
    bias = (params["beta"] - params["running_mean"] * scale).astype(jnp.float32)
    w_folded = (params["weight"] * scale[:, None, :]).astype(jnp.bfloat16)
    R, Cin, D = w_folded.shape
    prepared = {
        "w_folded": w_folded,                      # (R, Cin, D) bf16
        "bias": bias[:, None, :],                  # (R, 1, D)   f32
    }
    if num_d_splits and num_d_splits > 1 and D % (num_d_splits * 128) == 0:
        Dt = D // num_d_splits
        # (n_d, R, Cin, Dt): per-core slab is contiguous in HBM.
        prepared["w_split"] = jnp.transpose(
            w_folded.reshape(R, Cin, num_d_splits, Dt), (2, 0, 1, 3))
        prepared["bias_split"] = jnp.transpose(
            bias.reshape(R, num_d_splits, Dt), (1, 0, 2))[:, :, None, :]
    return prepared


def mdrs_reduction_forward(pool_feat_list, prepared, backbone, use_split_grid=None):
    """pool_feat_list: list of R arrays, each (N, Cin, 1, 1) f32 (1x1 spatial).

    Returns dict with 'reduction_pool_feat_list' (R arrays of shape (N, D)) and
    'triplet_reduction_pool_feat' (N, backbone*D).
    """
    R, Cin, D = prepared["w_folded"].shape
    assert len(pool_feat_list) == R
    N = pool_feat_list[0].shape[0]
    # Metadata-only squeeze of the 1x1 spatial dims.  No dtype cast and no
    # stack here: activations stream f32 (tiny) and are cast to bf16 in-kernel.
    xs = [f.reshape(N, Cin) for f in pool_feat_list]

    if use_split_grid is None:
        # Heuristic default; keep as an overridable flag -- validate by
        # measurement on v7x (one TC's fused DMA may already be near HBM peak).
        use_split_grid = _tensorcores_per_chip() >= 2
    if use_split_grid and "w_split" in prepared:
        out3 = _mdrs_reduction_split(xs, prepared["w_split"], prepared["bias_split"])
    else:
        out3 = _mdrs_reduction_fused(xs, prepared["w_folded"], prepared["bias"])

    # out3: (N, R, D).  Per-branch features and the triplet concat are free
    # slices / a contiguous reshape of the already-computed slab.
    reduction_pool_feat_list = [out3[:, i, :] for i in range(R)]
    if backbone != 1:
        triplet_reduction_pool_feat = out3[:, :backbone, :].reshape(N, backbone * D)
    else:
        triplet_reduction_pool_feat = reduction_pool_feat_list[0]
    return {
        "reduction_pool_feat_list": reduction_pool_feat_list,
        "triplet_reduction_pool_feat": triplet_reduction_pool_feat,
    }


# ----------------------------------------------------------------------------
# Synthetic params + references + self-test
# ----------------------------------------------------------------------------
def _init_params(key, num_reduction, cin, em_dim):
    kw, kg, kb, km, kv = jax.random.split(key, 5)
    std = (2.0 / cin) ** 0.5
    weight = std * jax.random.normal(kw, (num_reduction, cin, em_dim), jnp.float32)
    gamma = 1.0 + 0.01 * jax.random.normal(kg, (num_reduction, em_dim), jnp.float32)
    beta = 0.01 * jax.random.normal(kb, (num_reduction, em_dim), jnp.float32)
    running_mean = 0.1 * jax.random.normal(km, (num_reduction, em_dim), jnp.float32)
    running_var = 1.0 + 0.1 * jax.random.uniform(kv, (num_reduction, em_dim), jnp.float32)
    return dict(weight=weight, gamma=gamma, beta=beta,
                running_mean=running_mean, running_var=running_var)


def _reference_f32(pool_feat_list, params, backbone, eps=1e-5):
    feats = []
    for i, f in enumerate(pool_feat_list):
        x = f.reshape(f.shape[0], f.shape[1]).astype(jnp.float32)
        y = jnp.dot(x, params["weight"][i], preferred_element_type=jnp.float32)
        scale = params["gamma"][i] / jnp.sqrt(params["running_var"][i] + eps)
        bias = params["beta"][i] - params["running_mean"][i] * scale
        feats.append(jnp.maximum(y * scale + bias, 0.0))
    trip = jnp.concatenate(feats[:backbone], axis=1) if backbone != 1 else feats[0]
    return feats, trip


def _reference_bf16(pool_feat_list, prepared, backbone):
    """Pure-JAX reference with the SAME numerics as the kernel (bf16 in, f32 acc)."""
    w, bias = prepared["w_folded"], prepared["bias"]
    feats = []
    for i, f in enumerate(pool_feat_list):
        x = f.reshape(f.shape[0], f.shape[1]).astype(jnp.bfloat16)
        y = jnp.dot(x, w[i], preferred_element_type=jnp.float32)
        feats.append(jnp.maximum(y + bias[i], 0.0))
    trip = jnp.concatenate(feats[:backbone], axis=1) if backbone != 1 else feats[0]
    return feats, trip


if __name__ == "__main__":
    # Module-consistent shapes: Cin fixed at 2048 by the module, em_dim = 256,
    # 3 reduction branches, backbone = 2, small batch N = 2.
    N = 2
    CIN = 2048
    EM_DIM = 256
    NUM_REDUCTION = 3
    BACKBONE = 2

    key = jax.random.PRNGKey(0)
    kparams, *kfeats = jax.random.split(key, 1 + NUM_REDUCTION)
    params = _init_params(kparams, NUM_REDUCTION, CIN, EM_DIM)
    prepared = prepare_reduction_params(params)   # BN folded + split layout cached ONCE

    pool_feat_list = [
        jax.random.normal(kfeats[i], (N, CIN, 1, 1), jnp.float32)
        for i in range(NUM_REDUCTION)
    ]

    ref32_list, ref32_trip = _reference_f32(pool_feat_list, params, BACKBONE)
    refbf_list, refbf_trip = _reference_bf16(pool_feat_list, prepared, BACKBONE)

    # Exercise the fused path, the per-TensorCore split path, and the auto path.
    for use_split in (False, True, None):
        out_dict = mdrs_reduction_forward(pool_feat_list, prepared, BACKBONE,
                                          use_split_grid=use_split)
        trip = jax.block_until_ready(out_dict["triplet_reduction_pool_feat"])
        red = [jax.block_until_ready(r)
               for r in out_dict["reduction_pool_feat_list"]]

        assert trip.shape == (N, EM_DIM * BACKBONE), trip.shape
        for got, rbf, r32 in zip(red, refbf_list, ref32_list):
            assert got.shape == (N, EM_DIM)
            # Apples-to-apples check vs the bf16/f32-accum JAX reference.
            assert jnp.allclose(got, rbf, rtol=2e-3, atol=2e-3)
            # Quantization-bound check vs the pure-f32 reference.
            assert jnp.allclose(got, r32, rtol=3e-2, atol=3e-2)
        assert jnp.allclose(trip, refbf_trip, rtol=2e-3, atol=2e-3)
        assert jnp.allclose(trip, ref32_trip, rtol=3e-2, atol=3e-2)

    print("KERNEL_OK")
</pallas_src>

<mosaic_0001>
module attributes {stable_mosaic.version = 11 : i64} {
  func.func @kernel(%arg0: i32, %arg1: memref<2x2048xf32, #tpu.memory_space<vmem>>, %arg2: memref<2x2048xf32, #tpu.memory_space<vmem>>, %arg3: memref<2x2048xf32, #tpu.memory_space<vmem>>, %arg4: memref<3x2048x256xbf16, #tpu.memory_space<vmem>>, %arg5: memref<3x1x256xf32, #tpu.memory_space<vmem>>, %arg6: memref<2x3x256xf32, #tpu.memory_space<vmem>>) attributes {dimension_semantics = [#tpu.dimension_semantics<arbitrary>], iteration_bounds = array<i64: 1>, scalar_prefetch = 0 : i64, scratch_operands = 0 : i64, tpu.core_type = #tpu.core_type<tc>, window_params = [{pipeline_mode = #tpu.pipeline_mode<synchronous>, transform_indices = @transform_0, window_bounds = array<i64: 2, 2048>}, {pipeline_mode = #tpu.pipeline_mode<synchronous>, transform_indices = @transform_1, window_bounds = array<i64: 2, 2048>}, {pipeline_mode = #tpu.pipeline_mode<synchronous>, transform_indices = @transform_2, window_bounds = array<i64: 2, 2048>}, {pipeline_mode = #tpu.pipeline_mode<synchronous>, transform_indices = @transform_3, window_bounds = array<i64: 3, 2048, 256>}, {pipeline_mode = #tpu.pipeline_mode<synchronous>, transform_indices = @transform_4, window_bounds = array<i64: 3, 1, 256>}, {pipeline_mode = #tpu.pipeline_mode<synchronous>, transform_indices = @transform_5, window_bounds = array<i64: 2, 3, 256>}]} {
    %c0 = arith.constant 0 : index
    %c0_0 = arith.constant 0 : index
    %0 = vector.load %arg1[%c0, %c0_0] : memref<2x2048xf32, #tpu.memory_space<vmem>>, vector<2x2048xf32>
    %1 = arith.truncf %0 : vector<2x2048xf32> to vector<2x2048xbf16>
    %c0_1 = arith.constant 0 : index
    %c0_2 = arith.constant 0 : index
    %c0_3 = arith.constant 0 : index
    %2 = vector.load %arg4[%c0_1, %c0_2, %c0_3] : memref<3x2048x256xbf16, #tpu.memory_space<vmem>>, vector<1x2048x256xbf16>
    %3 = vector.shape_cast %2 : vector<1x2048x256xbf16> to vector<2048x256xbf16>
    %cst = arith.constant dense<0.000000e+00> : vector<2x256xf32>
    %4 = tpu.matmul %1, %3, %cst {dimension_numbers = #tpu.dot_dimension_numbers<[1], [0], [0], [1], [0, 0, 1, 1], [], []>} : vector<2x2048xbf16>, vector<2048x256xbf16>, vector<2x256xf32> -> vector<2x256xf32>
    %c0_4 = arith.constant 0 : index
    %c0_5 = arith.constant 0 : index
    %c0_6 = arith.constant 0 : index
    %5 = vector.load %arg5[%c0_4, %c0_5, %c0_6] : memref<3x1x256xf32, #tpu.memory_space<vmem>>, vector<1x1x256xf32>
    %6 = vector.shape_cast %5 : vector<1x1x256xf32> to vector<1x256xf32>
    %7 = vector.broadcast %6 : vector<1x256xf32> to vector<2x256xf32>
    %8 = arith.addf %4, %7 : vector<2x256xf32>
    %cst_7 = arith.constant 0.000000e+00 : f32
    %9 = vector.broadcast %cst_7 : f32 to vector<2x256xf32>
    %10 = arith.maximumf %8, %9 : vector<2x256xf32>
    %c0_8 = arith.constant 0 : index
    %c0_9 = arith.constant 0 : index
    %c0_10 = arith.constant 0 : index
    %11 = vector.load %arg6[%c0_8, %c0_9, %c0_10] : memref<2x3x256xf32, #tpu.memory_space<vmem>>, vector<2x1x256xf32>
    %12 = vector.shape_cast %11 : vector<2x1x256xf32> to vector<2x256xf32>
    %13 = vector.shape_cast %10 : vector<2x256xf32> to vector<2x1x256xf32>
    tpu.vector_store %arg6[%c0_8, %c0_9, %c0_10], %13 {strides = array<i32>} : memref<2x3x256xf32, #tpu.memory_space<vmem>>, vector<2x1x256xf32>,
    %c0_11 = arith.constant 0 : index
    %c0_12 = arith.constant 0 : index
    %14 = vector.load %arg2[%c0_11, %c0_12] : memref<2x2048xf32, #tpu.memory_space<vmem>>, vector<2x2048xf32>
    %15 = arith.truncf %14 : vector<2x2048xf32> to vector<2x2048xbf16>
    %c1 = arith.constant 1 : index
    %c0_13 = arith.constant 0 : index
    %c0_14 = arith.constant 0 : index
    %16 = vector.load %arg4[%c1, %c0_13, %c0_14] : memref<3x2048x256xbf16, #tpu.memory_space<vmem>>, vector<1x2048x256xbf16>
    %17 = vector.shape_cast %16 : vector<1x2048x256xbf16> to vector<2048x256xbf16>
    %cst_15 = arith.constant dense<0.000000e+00> : vector<2x256xf32>
    %18 = tpu.matmul %15, %17, %cst_15 {dimension_numbers = #tpu.dot_dimension_numbers<[1], [0], [0], [1], [0, 0, 1, 1], [], []>} : vector<2x2048xbf16>, vector<2048x256xbf16>, vector<2x256xf32> -> vector<2x256xf32>
    %c1_16 = arith.constant 1 : index
    %c0_17 = arith.constant 0 : index
    %c0_18 = arith.constant 0 : index
    %19 = vector.load %arg5[%c1_16, %c0_17, %c0_18] : memref<3x1x256xf32, #tpu.memory_space<vmem>>, vector<1x1x256xf32>
    %20 = vector.shape_cast %19 : vector<1x1x256xf32> to vector<1x256xf32>
    %21 = vector.broadcast %20 : vector<1x256xf32> to vector<2x256xf32>
    %22 = arith.addf %18, %21 : vector<2x256xf32>
    %cst_19 = arith.constant 0.000000e+00 : f32
    %23 = vector.broadcast %cst_19 : f32 to vector<2x256xf32>
    %24 = arith.maximumf %22, %23 : vector<2x256xf32>
    %c0_20 = arith.constant 0 : index
    %c1_21 = arith.constant 1 : index
    %c0_22 = arith.constant 0 : index
    %25 = vector.load %arg6[%c0_20, %c1_21, %c0_22] : memref<2x3x256xf32, #tpu.memory_space<vmem>>, vector<2x1x256xf32>
    %26 = vector.shape_cast %25 : vector<2x1x256xf32> to vector<2x256xf32>
    %27 = vector.shape_cast %24 : vector<2x256xf32> to vector<2x1x256xf32>
    tpu.vector_store %arg6[%c0_20, %c1_21, %c0_22], %27 {strides = array<i32>} : memref<2x3x256xf32, #tpu.memory_space<vmem>>, vector<2x1x256xf32>,
    %c0_23 = arith.constant 0 : index
    %c0_24 = arith.constant 0 : index
    %28 = vector.load %arg3[%c0_23, %c0_24] : memref<2x2048xf32, #tpu.memory_space<vmem>>, vector<2x2048xf32>
    %29 = arith.truncf %28 : vector<2x2048xf32> to vector<2x2048xbf16>
    %c2 = arith.constant 2 : index
    %c0_25 = arith.constant 0 : index
    %c0_26 = arith.constant 0 : index
    %30 = vector.load %arg4[%c2, %c0_25, %c0_26] : memref<3x2048x256xbf16, #tpu.memory_space<vmem>>, vector<1x2048x256xbf16>
    %31 = vector.shape_cast %30 : vector<1x2048x256xbf16> to vector<2048x256xbf16>
    %cst_27 = arith.constant dense<0.000000e+00> : vector<2x256xf32>
    %32 = tpu.matmul %29, %31, %cst_27 {dimension_numbers = #tpu.dot_dimension_numbers<[1], [0], [0], [1], [0, 0, 1, 1], [], []>} : vector<2x2048xbf16>, vector<2048x256xbf16>, vector<2x256xf32> -> vector<2x256xf32>
    %c2_28 = arith.constant 2 : index
    %c0_29 = arith.constant 0 : index
    %c0_30 = arith.constant 0 : index
    %33 = vector.load %arg5[%c2_28, %c0_29, %c0_30] : memref<3x1x256xf32, #tpu.memory_space<vmem>>, vector<1x1x256xf32>
    %34 = vector.shape_cast %33 : vector<1x1x256xf32> to vector<1x256xf32>
    %35 = vector.broadcast %34 : vector<1x256xf32> to vector<2x256xf32>
    %36 = arith.addf %32, %35 : vector<2x256xf32>
    %cst_31 = arith.constant 0.000000e+00 : f32
    %37 = vector.broadcast %cst_31 : f32 to vector<2x256xf32>
    %38 = arith.maximumf %36, %37 : vector<2x256xf32>
    %c0_32 = arith.constant 0 : index
    %c2_33 = arith.constant 2 : index
    %c0_34 = arith.constant 0 : index
    %39 = vector.load %arg6[%c0_32, %c2_33, %c0_34] : memref<2x3x256xf32, #tpu.memory_space<vmem>>, vector<2x1x256xf32>
    %40 = vector.shape_cast %39 : vector<2x1x256xf32> to vector<2x256xf32>
    %41 = vector.shape_cast %38 : vector<2x256xf32> to vector<2x1x256xf32>
    tpu.vector_store %arg6[%c0_32, %c2_33, %c0_34], %41 {strides = array<i32>} : memref<2x3x256xf32, #tpu.memory_space<vmem>>, vector<2x1x256xf32>,
    return
  }
  func.func @transform_0(%arg0: i32) -> (i32, i32) {
    %c0_i32 = arith.constant 0 : i32
    %c0_i32_0 = arith.constant 0 : i32
    %c0_i32_1 = arith.constant 0 : i32
    return %c0_i32, %c0_i32_0 : i32, i32
  }
  func.func @transform_1(%arg0: i32) -> (i32, i32) {
    %c0_i32 = arith.constant 0 : i32
    %c0_i32_0 = arith.constant 0 : i32
    %c0_i32_1 = arith.constant 0 : i32
    return %c0_i32, %c0_i32_0 : i32, i32
  }
  func.func @transform_2(%arg0: i32) -> (i32, i32) {
    %c0_i32 = arith.constant 0 : i32
    %c0_i32_0 = arith.constant 0 : i32
    %c0_i32_1 = arith.constant 0 : i32
    return %c0_i32, %c0_i32_0 : i32, i32
  }
  func.func @transform_3(%arg0: i32) -> (i32, i32, i32) {
    %c0_i32 = arith.constant 0 : i32
    %c0_i32_0 = arith.constant 0 : i32
    %c0_i32_1 = arith.constant 0 : i32
    %c0_i32_2 = arith.constant 0 : i32
    return %c0_i32, %c0_i32_0, %c0_i32_1 : i32, i32, i32
  }
  func.func @transform_4(%arg0: i32) -> (i32, i32, i32) {
    %c0_i32 = arith.constant 0 : i32
    %c0_i32_0 = arith.constant 0 : i32
    %c0_i32_1 = arith.constant 0 : i32
    %c0_i32_2 = arith.constant 0 : i32
    return %c0_i32, %c0_i32_0, %c0_i32_1 : i32, i32, i32
  }
  func.func @transform_5(%arg0: i32) -> (i32, i32, i32) {
    %c0_i32 = arith.constant 0 : i32
    %c0_i32_0 = arith.constant 0 : i32
    %c0_i32_1 = arith.constant 0 : i32
    %c0_i32_2 = arith.constant 0 : i32
    return %c0_i32, %c0_i32_0, %c0_i32_1 : i32, i32, i32
  }
}

</mosaic_0001>

<bundles_post_ra>
// kernel: tpu_custom_call.1
= control target key start
LH: loop header
LB: loop body
LE: loop exit
PB: predicated region body
PF: predicated region fallthrough
CT: control target
= control target key end

     0   :  { %10 = vsyncpa [#allocation3], 0  ;;  %s8682_s0 = inlined_call_operand.hbm [shape: f32[2,2048], index: 0, kind: input, shape index: {}]   ;;  %s8683_s1 = inlined_call_operand.hbm [shape: f32[2,2048], index: 1, kind: input, shape index: {}]   ;;  %s8684_s2 = inlined_call_operand.hbm [shape: f32[2,2048], index: 2, kind: input, shape index: {}]   ;;  %s8685_s3 = inlined_call_operand.hbm [shape: bf16[3,2048,256], index: 3, kind: input, shape index: {}]   ;;  %s8686_s4 = inlined_call_operand.hbm [shape: f32[3,1,256], index: 4, kind: input, shape index: {}]   ;;  %s8687_s5 = inlined_call_operand.vmem [shape: f32[2,3,256], index: 5, kind: output, shape index: {}]  }
   0x1   :  { %11 = vsyncpa [#allocation5], 0 }
   0x2   :  { %12 = vsyncpa [#allocation8], 0  ;;  %s8297_s18 = smov [#allocation4]   ;;  %s8298_s20 = smov [#allocation7]  }
   0x3   :  { %s29_s19 = sshll.u32 %s8297_s18, 4  ;;  %s48_s21 = sshll.u32 %s8298_s20, 4  ;;  %s30_s19 = int_to_ptr.vmem [resolvable:$true] %s29_s19  ;;  %s8338_s21 = int_to_ptr.vmem [resolvable:$true] %s48_s21 }
   0x4   :  { %s8181_s24 = scalar_lea.hbm %s8683_s1, 512 }
   0x5   :  { %p8182_p0 = scmp.ne.s32.totalorder %s8683_s1, %s8181_s24  ;;  %p8185_p1 = scmp.lt.u32.totalorder %s8181_s24, %s8683_s1 }
   0x7   :  { %p8187_p2 = pnand %p8185_p1, %p8182_p0 }
   0x9   :  { %8190 = shalt.err (!%p8187_p2)
}
   0xa   :  { %s8191_s29 = scalar_lea.vmem %s30_s19, 512  ;;  %p8196_p4 = scmp.lt.s32.totalorder %s30_s19, %s30_s19 }
   0xb   :  { %p8192_p3 = scmp.ne.s32.totalorder %s30_s19, %s8191_s29  ;;  %p8197_p5 = scmp.lt.s32.totalorder %s8191_s29, %s8191_s29 }
   0xd   :  { %p8198_p6 = por %p8197_p5, %p8196_p4 }
   0xf   :  { %p8199_p7 = pnand %p8198_p6, %p8192_p3 }
  0x11   :  { %8202 = shalt.err (!%p8199_p7)
}
  0x12   :  { %32 = dma.hbm_to_vmem [thread:$0]  %s8683_s1, 512, %s30_s19, [#allocation5]  }
  0x13   :  { %s8203_s9 = scalar_lea.hbm %s8685_s3, 98304 }
  0x14   :  { %p8204_p8 = scmp.ne.s32.totalorder %s8685_s3, %s8203_s9  ;;  %p8207_p9 = scmp.lt.u32.totalorder %s8203_s9, %s8685_s3 }
  0x16   :  { %p8209_p10 = pnand %p8207_p9, %p8204_p8 }
  0x18   :  { %8212 = shalt.err (!%p8209_p10)
}
  0x19   :  { %s8213_s14 = scalar_lea.vmem %s8338_s21, 98304  ;;  %p8218_p12 = scmp.lt.s32.totalorder %s8338_s21, %s8338_s21 }
  0x1a   :  { %p8214_p11 = scmp.ne.s32.totalorder %s8338_s21, %s8213_s14  ;;  %p8219_p13 = scmp.lt.s32.totalorder %s8213_s14, %s8213_s14 }
  0x1c   :  { %p8220_p0 = por %p8219_p13, %p8218_p12 }
  0x1e   :  { %p8221_p1 = pnand %p8220_p0, %p8214_p11 }
  0x20   :  { %8224 = shalt.err (!%p8221_p1)
}
  0x21   :  { %s8299_s1 = smov 128   ;;  %s8300_s15 = smov 8  }
  0x22   :  { %54 = dma.hbm_to_vmem [thread:$0]  %s8685_s3, 98304, %s8338_s21, [#allocation8], %s8299_s1, %s8299_s1, %s8300_s15  }
  0x23   :  { %s8301_s18 = smov [#allocation2]   ;;  %s8302_s20 = smov [#allocation6]  }
  0x24   :  { %s19_s19 = sshll.u32 %s8301_s18, 4  ;;  %s39_s22 = sshll.u32 %s8302_s20, 4  ;;  %s20_s19 = int_to_ptr.vmem [resolvable:$true] %s19_s19  ;;  %s40_s22 = int_to_ptr.vmem [resolvable:$true] %s39_s22 }
  0x25   :  { %s8225_s25 = scalar_lea.hbm %s8682_s0, 512 }
  0x26   :  { %p8226_p2 = scmp.ne.s32.totalorder %s8682_s0, %s8225_s25  ;;  %p8229_p3 = scmp.lt.u32.totalorder %s8225_s25, %s8682_s0 }
  0x28   :  { %p8231_p4 = pnand %p8229_p3, %p8226_p2 }
  0x2a   :  { %8234 = shalt.err (!%p8231_p4)
}
  0x2b   :  { %s8235_s3 = scalar_lea.vmem %s20_s19, 512  ;;  %p8240_p6 = scmp.lt.s32.totalorder %s20_s19, %s20_s19 }
  0x2c   :  { %p8236_p5 = scmp.ne.s32.totalorder %s20_s19, %s8235_s3  ;;  %p8241_p7 = scmp.lt.s32.totalorder %s8235_s3, %s8235_s3 }
  0x2e   :  { %p8242_p8 = por %p8241_p7, %p8240_p6 }
  0x30   :  { %p8243_p9 = pnand %p8242_p8, %p8236_p5 }
  0x32   :  { %8246 = shalt.err (!%p8243_p9)
}
  0x33   :  { %22 = dma.hbm_to_vmem [thread:$0]  %s8682_s0, 512, %s20_s19, [#allocation3]  }
  0x34   :  { %s8247_s8 = scalar_lea.hbm %s8684_s2, 512 }
  0x35   :  { %p8248_p10 = scmp.ne.s32.totalorder %s8684_s2, %s8247_s8  ;;  %p8251_p11 = scmp.lt.u32.totalorder %s8247_s8, %s8684_s2 }
  0x37   :  { %p8253_p12 = pnand %p8251_p11, %p8248_p10 }
  0x39   :  { %8256 = shalt.err (!%p8253_p12)
}
  0x3a   :  { %s8257_s13 = scalar_lea.vmem %s40_s22, 512  ;;  %p8262_p0 = scmp.lt.s32.totalorder %s40_s22, %s40_s22 }
  0x3b   :  { %p8258_p13 = scmp.ne.s32.totalorder %s40_s22, %s8257_s13  ;;  %p8263_p1 = scmp.lt.s32.totalorder %s8257_s13, %s8257_s13 }
  0x3d   :  { %p8264_p2 = por %p8263_p1, %p8262_p0 }
  0x3f   :  { %p8265_p3 = pnand %p8264_p2, %p8258_p13 }
  0x41   :  { %8268 = shalt.err (!%p8265_p3)
}
  0x42   :  { %42 = dma.hbm_to_vmem [thread:$0]  %s8684_s2, 512, %s40_s22, [#allocation5]  }
  0x43   :  { %s8303_s1 = smov [#allocation9]   ;;  %s8269_s18 = scalar_lea.hbm %s8686_s4, 96 }
  0x44   :  { %s60_s15 = sshll.u32 %s8303_s1, 4  ;;  %p8270_p4 = scmp.ne.s32.totalorder %s8686_s4, %s8269_s18  ;;  %s61_s15 = int_to_ptr.vmem [resolvable:$true] %s60_s15 }
  0x45   :  { %p8273_p5 = scmp.lt.u32.totalorder %s8269_s18, %s8686_s4 }
  0x47   :  { %p8275_p6 = pnand %p8273_p5, %p8270_p4 }
  0x49   :  { %8278 = shalt.err (!%p8275_p6)
}
  0x4a   :  { %s8279_s25 = scalar_lea.vmem %s61_s15, 96  ;;  %p8284_p8 = scmp.lt.s32.totalorder %s61_s15, %s61_s15 }
  0x4b   :  { %p8280_p7 = scmp.ne.s32.totalorder %s61_s15, %s8279_s25  ;;  %p8285_p9 = scmp.lt.s32.totalorder %s8279_s25, %s8279_s25 }
  0x4d   :  { %p8286_p10 = por %p8285_p9, %p8284_p8 }
  0x4f   :  { %p8287_p11 = pnand %p8286_p10, %p8280_p7 }
  0x51   :  { %8290 = shalt.err (!%p8287_p11)
}
  0x52   :  { %s8304_s2 = smov 32   ;;  %s8305_s22 = smov 2  }
  0x53   :  { %66 = dma.hbm_to_vmem [thread:$0]  %s8686_s4, 96, %s61_s15, [#allocation8], %s8304_s2, %s8304_s2, %s8305_s22  }
  0x54   :  { %8291 = dma.done.wait [#allocation3], 512  }
  0x55   :  { %8292 = vsyncadd [#allocation3], 4294966784 }
  0x56   :  { %8293 = dma.done.wait [#allocation5], 1024  }
  0x57   :  { %8294 = vsyncadd [#allocation5], 4294966272 }
  0x58   :  { %8295 = dma.done.wait [#allocation8], 98400  }
  0x59   :  { %8296 = vsyncadd [#allocation8], 4294868896  ;;  %v7019_v0 = vld [vmem:[#allocation7 + $0x4] ss:$8 sps:$4 sm:$0xff]   ;;  %v7023_v2 = vld [vmem:[#allocation7] ss:$8 sps:$4 sm:$0xff]   ;;  %v94_v38 = vlaneseq }
  0x5a   :  { %v7021_v1 = vld [vmem:[#allocation7 + $0x404] ss:$8 sps:$4 sm:$0xff]   ;;  %1738 = vmatprep.subr.bf16.mxu1 %v7019_v0  ;;  %v7024_v3 = vld [vmem:[#allocation7 + $0x400] ss:$8 sps:$4 sm:$0xff]   ;;  %v7025_v4 = vld [vmem:[#allocation7 + $0x14] ss:$8 sps:$4 sm:$0xff]  }
  0x5b   :  { %1902 = vmatprep.subr.bf16.mxu0 %v7021_v1  ;;  %1739 = vmatpush1.bf16.msra.mxu1 %v7023_v2  ;;  %v7027_v5 = vld [vmem:[#allocation7 + $0x414] ss:$8 sps:$4 sm:$0xff]   ;;  %v7029_v6 = vld [vmem:[#allocation7 + $0x10] ss:$8 sps:$4 sm:$0xff]   ;;  %v7031_v8 = vld [vmem:[#allocation7 + $0x24] ss:$8 sps:$4 sm:$0xff]  }
  0x5c   :  { %1903 = vmatpush1.bf16.msra.mxu0 %v7024_v3  ;;  %1740 = vmatprep.subr.bf16.mxu1 %v7025_v4  ;;  %v7030_v7 = vld [vmem:[#allocation7 + $0x410] ss:$8 sps:$4 sm:$0xff]   ;;  %v7033_v9 = vld [vmem:[#allocation7 + $0x424] ss:$8 sps:$4 sm:$0xff]   ;;  %v7035_v10 = vld [vmem:[#allocation7 + $0x20] ss:$8 sps:$4 sm:$0xff]  }
  0x5d   :  { %1904 = vmatprep.subr.bf16.mxu0 %v7027_v5  ;;  %v7036_v11 = vld [vmem:[#allocation7 + $0x420] ss:$8 sps:$4 sm:$0xff]   ;;  %v7037_v12 = vld [vmem:[#allocation7 + $0x34] ss:$8 sps:$4 sm:$0xff]   ;;  %v7041_v14 = vld [vmem:[#allocation7 + $0x30] ss:$8 sps:$4 sm:$0xff]  }
  0x5e   :  { %v7039_v13 = vld [vmem:[#allocation7 + $0x434] ss:$8 sps:$4 sm:$0xff]   ;;  %v7042_v15 = vld [vmem:[#allocation7 + $0x430] ss:$8 sps:$4 sm:$0xff]   ;;  %v7043_v16 = vld [vmem:[#allocation7 + $0x44] ss:$8 sps:$4 sm:$0xff]  }
  0x5f   :  { %1741 = vmatpush1.bf16.msra.mxu1 %v7029_v6  ;;  %v7045_v17 = vld [vmem:[#allocation7 + $0x444] ss:$8 sps:$4 sm:$0xff]   ;;  %v7047_v18 = vld [vmem:[#allocation7 + $0x40] ss:$8 sps:$4 sm:$0xff]   ;;  %v7049_v20 = vld [vmem:[#allocation7 + $0x54] ss:$8 sps:$4 sm:$0xff]  }
  0x60   :  { %1905 = vmatpush1.bf16.msra.mxu0 %v7030_v7  ;;  %1742 = vmatprep.subr.bf16.mxu1 %v7031_v8  ;;  %v7048_v19 = vld [vmem:[#allocation7 + $0x440] ss:$8 sps:$4 sm:$0xff]   ;;  %v7051_v21 = vld [vmem:[#allocation7 + $0x454] ss:$8 sps:$4 sm:$0xff]   ;;  %v7053_v22 = vld [vmem:[#allocation7 + $0x50] ss:$8 sps:$4 sm:$0xff]  }
  0x61   :  { %1906 = vmatprep.subr.bf16.mxu0 %v7033_v9  ;;  %v7054_v23 = vld [vmem:[#allocation7 + $0x450] ss:$8 sps:$4 sm:$0xff]   ;;  %v7055_v24 = vld [vmem:[#allocation7 + $0x64] ss:$8 sps:$4 sm:$0xff]   ;;  %v7059_v26 = vld [vmem:[#allocation7 + $0x60] ss:$8 sps:$4 sm:$0xff]  }
  0x62   :  { %v7057_v25 = vld [vmem:[#allocation7 + $0x464] ss:$8 sps:$4 sm:$0xff]   ;;  %v7060_v27 = vld [vmem:[#allocation7 + $0x460] ss:$8 sps:$4 sm:$0xff]   ;;  %v7061_v28 = vld [vmem:[#allocation7 + $0x74] ss:$8 sps:$4 sm:$0xff]  }
  0x63   :  { %1743 = vmatpush1.bf16.msra.mxu1 %v7035_v10  ;;  %v7063_v29 = vld [vmem:[#allocation7 + $0x474] ss:$8 sps:$4 sm:$0xff]   ;;  %v7065_v30 = vld [vmem:[#allocation7 + $0x70] ss:$8 sps:$4 sm:$0xff]   ;;  %v7067_v32 = vld [vmem:[#allocation7 + $0x84] ss:$8 sps:$4 sm:$0xff]  }
  0x64   :  { %1907 = vmatpush1.bf16.msra.mxu0 %v7036_v11  ;;  %1744 = vmatprep.subr.bf16.mxu1 %v7037_v12  ;;  %v7066_v31 = vld [vmem:[#allocation7 + $0x470] ss:$8 sps:$4 sm:$0xff]   ;;  %v7069_v33 = vld [vmem:[#allocation7 + $0x484] ss:$8 sps:$4 sm:$0xff]   ;;  %v7071_v34 = vld [vmem:[#allocation7 + $0x80] ss:$8 sps:$4 sm:$0xff]  }
  0x65   :  { %1908 = vmatprep.subr.bf16.mxu0 %v7039_v13  ;;  %v7072_v35 = vld [vmem:[#allocation7 + $0x480] ss:$8 sps:$4 sm:$0xff]   ;;  %v8306_v36 = vmov 1983009808   ;;  %v7073_v39 = vld [vmem:[#allocation7 + $0x94] ss:$8 sps:$4 sm:$0xff]  }
  0x66   :  { %v92_v37 = vunpack.c.l.s4 %v8306_v36  ;;  %v7075_v40 = vld [vmem:[#allocation7 + $0x494] ss:$8 sps:$4 sm:$0xff]   ;;  %v7077_v41 = vld [vmem:[#allocation7 + $0x90] ss:$8 sps:$4 sm:$0xff]   ;;  %v8406_v43 = vshrl.u32 %v94_v38, 7  ;;  %v82_v52 = vld [vmem:[#allocation2] sm:$0xff] }
  0x67   :  { %1745 = vmatpush1.bf16.msra.mxu1 %v7041_v14  ;;  %v7078_v44 = vld [vmem:[#allocation7 + $0x490] ss:$8 sps:$4 sm:$0xff]   ;;  %v7079_v45 = vld [vmem:[#allocation7 + $0xa4] ss:$8 sps:$4 sm:$0xff]   ;;  %v7083_v47 = vld [vmem:[#allocation7 + $0xa0] ss:$8 sps:$4 sm:$0xff]   ;;  %v90_v8 = vcombine.high %v82_v52, %v82_v52 }
  0x68   :  { %1909 = vmatpush1.bf16.msra.mxu0 %v7042_v15  ;;  %1746 = vmatprep.subr.bf16.mxu1 %v7043_v16  ;;  %v93_v42 = vunpack.c.0.s8 %v92_v37  ;;  %v7081_v46 = vld [vmem:[#allocation7 + $0x4a4] ss:$8 sps:$4 sm:$0xff]   ;;  %v7084_v48 = vld [vmem:[#allocation7 + $0x4a0] ss:$8 sps:$4 sm:$0xff]   ;;  %v7085_v50 = vld [vmem:[#allocation7 + $0xb4] ss:$8 sps:$4 sm:$0xff]  }
  0x69   :  { %1910 = vmatprep.subr.bf16.mxu0 %v7045_v17  ;;  %v7087_v51 = vld [vmem:[#allocation7 + $0x4b4] ss:$8 sps:$4 sm:$0xff]   ;;  %v7089_v53 = vld [vmem:[#allocation7 + $0xb0] ss:$8 sps:$4 sm:$0xff]   ;;  %v7091_v57 = vld [vmem:[#allocation7 + $0xc4] ss:$8 sps:$4 sm:$0xff]  }
  0x6a   :  { %v8409_v49 = vsub.s32 %v93_v42, %v8406_v43  ;;  %v7090_v55 = vld [vmem:[#allocation7 + $0x4b0] ss:$8 sps:$4 sm:$0xff]   ;;  %v7093_v58 = vld [vmem:[#allocation7 + $0x4c4] ss:$8 sps:$4 sm:$0xff]   ;;  %v7095_v63 = vld [vmem:[#allocation7 + $0xc0] ss:$8 sps:$4 sm:$0xff]  }
  0x6b   :  { %1747 = vmatpush1.bf16.msra.mxu1 %v7047_v18  ;;  %v84_v56 = vld [vmem:[#allocation2 + $0x10] sm:$0xff]  ;;  %v7096_v0 = vld [vmem:[#allocation7 + $0x4c0] ss:$8 sps:$4 sm:$0xff]   ;;  %v7103_v6 = vld [vmem:[#allocation7 + $0xe4] ss:$8 sps:$4 sm:$0xff]   ;;  %vm8556_vm0 = vcmp.lt.s32.totalorder %v94_v38, 256 }
  0x6c   :  { %1911 = vmatpush1.bf16.msra.mxu0 %v7048_v19  ;;  %1748 = vmatprep.subr.bf16.mxu1 %v7049_v20  ;;  %v8412_v54 = vrot.slane %v82_v52, %v8409_v49  ;;  %v131_v60 = vrot.slane %v84_v56, %v8409_v49  ;;  %v7097_v1 = vld [vmem:[#allocation7 + $0xd4] ss:$8 sps:$4 sm:$0xff]   ;;  %v7101_v4 = vld [vmem:[#allocation7 + $0xd0] ss:$8 sps:$4 sm:$0xff]   ;;  %v7105_v7 = vld [vmem:[#allocation7 + $0x4e4] ss:$8 sps:$4 sm:$0xff]   ;;  %v124_v9 = vcombine.high %v84_v56, %v84_v56 }
  0x6d   :  { %1912 = vmatprep.subr.bf16.mxu0 %v7051_v21  ;;  %v7099_v2 = vld [vmem:[#allocation7 + $0x4d4] ss:$8 sps:$4 sm:$0xff]   ;;  %v7102_v5 = vld [vmem:[#allocation7 + $0x4d0] ss:$8 sps:$4 sm:$0xff]   ;;  %v7107_v10 = vld [vmem:[#allocation7 + $0xe0] ss:$8 sps:$4 sm:$0xff]   ;;  %v8418_v14 = vrot.slane %v90_v8, %v8409_v49 }
  0x6e   :  { %v105_v59 = vcombine.high %v8412_v54, %v8412_v54  ;;  %v139_v62 = vcombine.high %v131_v60, %v131_v60  ;;  %v7108_v11 = vld [vmem:[#allocation7 + $0x4e0] ss:$8 sps:$4 sm:$0xff]   ;;  %v7109_v12 = vld [vmem:[#allocation7 + $0xf4] ss:$8 sps:$4 sm:$0xff]   ;;  %v8421_v15 = vrot.slane %v124_v9, %v8409_v49  ;;  %v7113_v16 = vld [vmem:[#allocation7 + $0xf0] ss:$8 sps:$4 sm:$0xff]  }
  0x6f   :  { %1749 = vmatpush1.bf16.msra.mxu1 %v7053_v22  ;;  %v7111_v13 = vld [vmem:[#allocation7 + $0x4f4] ss:$8 sps:$4 sm:$0xff]   ;;  %v7114_v17 = vld [vmem:[#allocation7 + $0x4f0] ss:$8 sps:$4 sm:$0xff]   ;;  %v7118_v18 = vld [vmem:[#allocation7 + $0x104] ss:$8 sps:$4 sm:$0xff]   ;;  %v106_v20 = vcombine.high %v8418_v14, %v8418_v14  ;;  %v174_v22 = vpack.c.bf16 %v8412_v54, %v8412_v54 }
  0x70   :  { %1913 = vmatpush1.bf16.msra.mxu0 %v7054_v23  ;;  %1750 = vmatprep.subr.bf16.mxu1 %v7055_v24  ;;  %v175_v61 = vpack.c.bf16 %v105_v59, %v105_v59  ;;  %v183_v3 = vpack.c.bf16 %v139_v62, %v139_v62  ;;  %v7122_v19 = vld [vmem:[#allocation7 + $0x504] ss:$8 sps:$4 sm:$0xff]   ;;  %v140_v21 = vcombine.high %v8421_v15, %v8421_v15  ;;  %v7116_v24 = vld [vmem:[#allocation7 + $0x100] ss:$8 sps:$4 sm:$0xff]   ;;  %v7137_v36 = vld [vmem:[#allocation7 + $0x134] ss:$8 sps:$4 sm:$0xff]  }
  0x71   :  { %1914 = vmatprep.subr.bf16.mxu0 %v7057_v25  ;;  %v182_v23 = vpack.c.bf16 %v131_v60, %v131_v60  ;;  %v7120_v25 = vld [vmem:[#allocation7 + $0x500] ss:$8 sps:$4 sm:$0xff]   ;;  %v7140_v37 = vld [vmem:[#allocation7 + $0x534] ss:$8 sps:$4 sm:$0xff]   ;;  %v7146_v42 = vld [vmem:[#allocation7 + $0x544] ss:$8 sps:$4 sm:$0xff]  }
  0x72   :  { %1770 = vmatprep.mubr.bf16.mxu1 %v175_v61  ;;  %1934 = vmatprep.mubr.bf16.mxu0 %v183_v3  ;;  %v7158_v52 = vld [vmem:[#allocation7 + $0x564] ss:$8 sps:$4 sm:$0xff]   ;;  %v7156_v54 = vld [vmem:[#allocation7 + $0x560] ss:$8 sps:$4 sm:$0xff]   ;;  %v7164_v56 = vld [vmem:[#allocation7 + $0x574] ss:$8 sps:$4 sm:$0xff]  }
  0x73   :  { %1751 = vmatpush1.bf16.msra.mxu1 %v7059_v26  ;;  %v7125_v26 = vld [vmem:[#allocation7 + $0x114] ss:$8 sps:$4 sm:$0xff]   ;;  %v7167_v59 = vld [vmem:[#allocation7 + $0x184] ss:$8 sps:$4 sm:$0xff]   ;;  %v7165_v61 = vld [vmem:[#allocation7 + $0x180] ss:$8 sps:$4 sm:$0xff]  }
  0x74   :  { %1915 = vmatpush1.bf16.msra.mxu0 %v7060_v27  ;;  %1752 = vmatprep.subr.bf16.mxu1 %v7061_v28  ;;  %v7128_v27 = vld [vmem:[#allocation7 + $0x514] ss:$8 sps:$4 sm:$0xff]   ;;  %v177_v28 = vpack.c.bf16 %v106_v20, %v106_v20  ;;  %v7170_v60 = vld [vmem:[#allocation7 + $0x584] ss:$8 sps:$4 sm:$0xff]   ;;  %v7168_v62 = vld [vmem:[#allocation7 + $0x580] ss:$8 sps:$4 sm:$0xff]  }
  0x75   :  { %1916 = vmatprep.subr.bf16.mxu0 %v7063_v29  ;;  %v185_v29 = vpack.c.bf16 %v140_v21, %v140_v21  ;;  %v7179_v3 = vld [vmem:[#allocation7 + $0x1a4] ss:$8 sps:$4 sm:$0xff]   ;;  %v7188_v8 = vld [vmem:[#allocation7 + $0x5b4] ss:$8 sps:$4 sm:$0xff]   ;;  %v7183_v9 = vld [vmem:[#allocation7 + $0x1b0] ss:$8 sps:$4 sm:$0xff]  }
  0x76   :  { %v7198_v20 = vld [vmem:[#allocation7 + $0x5d0] ss:$8 sps:$4 sm:$0xff]   ;;  %v7203_v21 = vld [vmem:[#allocation7 + $0x1e4] ss:$8 sps:$4 sm:$0xff]  }
  0x77   :  { %1753 = vmatpush1.bf16.msra.mxu1 %v7065_v30  ;;  %v7123_v30 = vld [vmem:[#allocation7 + $0x110] ss:$8 sps:$4 sm:$0xff]  }
  0x78   :  { %1917 = vmatpush1.bf16.msra.mxu0 %v7066_v31  ;;  %1754 = vmatprep.subr.bf16.mxu1 %v7067_v32  ;;  %v7126_v31 = vld [vmem:[#allocation7 + $0x510] ss:$8 sps:$4 sm:$0xff]   ;;  %v7131_v32 = vld [vmem:[#allocation7 + $0x124] ss:$8 sps:$4 sm:$0xff]  }
  0x79   :  { %1918 = vmatprep.subr.bf16.mxu0 %v7069_v33  ;;  %v7134_v33 = vld [vmem:[#allocation7 + $0x524] ss:$8 sps:$4 sm:$0xff]   ;;  %v7751_v38 = vld [vmem:[#allocation7 + $0xb90] ss:$8 sps:$4 sm:$0xff]  }
  0x7b   :  { %1755 = vmatpush1.bf16.msra.mxu1 %v7071_v34  ;;  %v7129_v34 = vld [vmem:[#allocation7 + $0x120] ss:$8 sps:$4 sm:$0xff]  }
  0x7c   :  { %1919 = vmatpush1.bf16.msra.mxu0 %v7072_v35  ;;  %1756 = vmatprep.subr.bf16.mxu1 %v7073_v39  ;;  %v7132_v35 = vld [vmem:[#allocation7 + $0x520] ss:$8 sps:$4 sm:$0xff]   ;;  %v7135_v39 = vld [vmem:[#allocation7 + $0x130] ss:$8 sps:$4 sm:$0xff]  }
  0x7d   :  { %1920 = vmatprep.subr.bf16.mxu0 %v7075_v40  ;;  %v7138_v40 = vld [vmem:[#allocation7 + $0x530] ss:$8 sps:$4 sm:$0xff]  }
  0x7f   :  { %1757 = vmatpush1.bf16.msra.mxu1 %v7077_v41  ;;  %v7143_v41 = vld [vmem:[#allocation7 + $0x144] ss:$8 sps:$4 sm:$0xff]  }
  0x80   :  { %1921 = vmatpush1.bf16.msra.mxu0 %v7078_v44  ;;  %1758 = vmatprep.subr.bf16.mxu1 %v7079_v45  ;;  %v7141_v44 = vld [vmem:[#allocation7 + $0x140] ss:$8 sps:$4 sm:$0xff]  }
  0x81   :  { %1922 = vmatprep.subr.bf16.mxu0 %v7081_v46  ;;  %v7144_v45 = vld [vmem:[#allocation7 + $0x540] ss:$8 sps:$4 sm:$0xff]   ;;  %v7149_v46 = vld [vmem:[#allocation7 + $0x154] ss:$8 sps:$4 sm:$0xff]  }
  0x83   :  { %1759 = vmatpush1.bf16.msra.mxu1 %v7083_v47  ;;  %v7152_v47 = vld [vmem:[#allocation7 + $0x554] ss:$8 sps:$4 sm:$0xff]  }
  0x84   :  { %1923 = vmatpush1.bf16.msra.mxu0 %v7084_v48  ;;  %1760 = vmatprep.subr.bf16.mxu1 %v7085_v50  ;;  %v7147_v48 = vld [vmem:[#allocation7 + $0x150] ss:$8 sps:$4 sm:$0xff]  }
  0x85   :  { %1924 = vmatprep.subr.bf16.mxu0 %v7087_v51  ;;  %v7150_v50 = vld [vmem:[#allocation7 + $0x550] ss:$8 sps:$4 sm:$0xff]   ;;  %v7155_v51 = vld [vmem:[#allocation7 + $0x164] ss:$8 sps:$4 sm:$0xff]  }
  0x87   :  { %1761 = vmatpush1.bf16.msra.mxu1 %v7089_v53  ;;  %v7153_v53 = vld [vmem:[#allocation7 + $0x160] ss:$8 sps:$4 sm:$0xff]  }
  0x88   :  { %1925 = vmatpush1.bf16.msra.mxu0 %v7090_v55  ;;  %1762 = vmatprep.subr.bf16.mxu1 %v7091_v57  ;;  %v7161_v55 = vld [vmem:[#allocation7 + $0x174] ss:$8 sps:$4 sm:$0xff]   ;;  %v7159_v57 = vld [vmem:[#allocation7 + $0x170] ss:$8 sps:$4 sm:$0xff]  }
  0x89   :  { %1926 = vmatprep.subr.bf16.mxu0 %v7093_v58  ;;  %v7162_v58 = vld [vmem:[#allocation7 + $0x570] ss:$8 sps:$4 sm:$0xff]  }
  0x8b   :  { %1763 = vmatpush1.bf16.msra.mxu1 %v7095_v63  ;;  %v7173_v63 = vld [vmem:[#allocation7 + $0x194] ss:$8 sps:$4 sm:$0xff]  }
  0x8c   :  { %1927 = vmatpush1.bf16.msra.mxu0 %v7096_v0  ;;  %1764 = vmatprep.subr.bf16.mxu1 %v7097_v1  ;;  %v7176_v0 = vld [vmem:[#allocation7 + $0x594] ss:$8 sps:$4 sm:$0xff]   ;;  %v7171_v1 = vld [vmem:[#allocation7 + $0x190] ss:$8 sps:$4 sm:$0xff]  }
  0x8d   :  { %1928 = vmatprep.subr.bf16.mxu0 %v7099_v2  ;;  %v7174_v2 = vld [vmem:[#allocation7 + $0x590] ss:$8 sps:$4 sm:$0xff]  }
  0x8f   :  { %1765 = vmatpush1.bf16.msra.mxu1 %v7101_v4  ;;  %v7182_v4 = vld [vmem:[#allocation7 + $0x5a4] ss:$8 sps:$4 sm:$0xff]  }
  0x90   :  { %1929 = vmatpush1.bf16.msra.mxu0 %v7102_v5  ;;  %1766 = vmatprep.subr.bf16.mxu1 %v7103_v6  ;;  %v7177_v5 = vld [vmem:[#allocation7 + $0x1a0] ss:$8 sps:$4 sm:$0xff]  }
  0x91   :  { %1930 = vmatprep.subr.bf16.mxu0 %v7105_v7  ;;  %v7180_v6 = vld [vmem:[#allocation7 + $0x5a0] ss:$8 sps:$4 sm:$0xff]   ;;  %v7185_v7 = vld [vmem:[#allocation7 + $0x1b4] ss:$8 sps:$4 sm:$0xff]  }
  0x93   :  { %1767 = vmatpush1.bf16.msra.mxu1 %v7107_v10  ;;  %v7186_v10 = vld [vmem:[#allocation7 + $0x5b0] ss:$8 sps:$4 sm:$0xff]  }
  0x94   :  { %1931 = vmatpush1.bf16.msra.mxu0 %v7108_v11  ;;  %1768 = vmatprep.subr.bf16.mxu1 %v7109_v12  ;;  %v7191_v11 = vld [vmem:[#allocation7 + $0x1c4] ss:$8 sps:$4 sm:$0xff]  }
  0x95   :  { %1932 = vmatprep.subr.bf16.mxu0 %v7111_v13  ;;  %v7194_v12 = vld [vmem:[#allocation7 + $0x5c4] ss:$8 sps:$4 sm:$0xff]   ;;  %v7189_v13 = vld [vmem:[#allocation7 + $0x1c0] ss:$8 sps:$4 sm:$0xff]  }
  0x97   :  { %1769 = vmatpush1.bf16.msra.mxu1 %v7113_v16  ;;  %v7192_v16 = vld [vmem:[#allocation7 + $0x5c0] ss:$8 sps:$4 sm:$0xff]  }
  0x98   :  { %1933 = vmatpush1.bf16.msra.mxu0 %v7114_v17  ;;  %1779 = vmatprep.subr.bf16.mxu1 %v7118_v18  ;;  %v7197_v17 = vld [vmem:[#allocation7 + $0x1d4] ss:$8 sps:$4 sm:$0xff]  }
  0x99   :  { %1943 = vmatprep.subr.bf16.mxu0 %v7122_v19  ;;  %v7200_v18 = vld [vmem:[#allocation7 + $0x5d4] ss:$8 sps:$4 sm:$0xff]   ;;  %v7195_v19 = vld [vmem:[#allocation7 + $0x1d0] ss:$8 sps:$4 sm:$0xff]  }
  0x9a   :  { %1771 = vmatmul.mubr.bf16.vlgmr.msra.gmra.mrb[0].mxu1 %v174_v22  ;;  %v7206_v22 = vld [vmem:[#allocation7 + $0x5e4] ss:$8 sps:$4 sm:$0xff]  }
  0x9b   :  { %1935 = vmatmul.mubr.bf16.vlgmr.msra.gmra.mrb[0].mxu0 %v182_v23  ;;  %1780 = vmatpush1.bf16.msra.mxu1 %v7116_v24  ;;  %v7201_v23 = vld [vmem:[#allocation7 + $0x1e0] ss:$8 sps:$4 sm:$0xff]  }
  0x9c   :  { %1944 = vmatpush1.bf16.msra.mxu0 %v7120_v25  ;;  %1781 = vmatprep.subr.bf16.mxu1 %v7125_v26  ;;  %v7204_v24 = vld [vmem:[#allocation7 + $0x5e0] ss:$8 sps:$4 sm:$0xff]   ;;  %v7209_v25 = vld [vmem:[#allocation7 + $0x1f4] ss:$8 sps:$4 sm:$0xff]  }
  0x9d   :  { %1945 = vmatprep.subr.bf16.mxu0 %v7128_v27  ;;  %1811 = vmatprep.mubr.bf16.mxu1 %v177_v28  ;;  %v7212_v26 = vld [vmem:[#allocation7 + $0x5f4] ss:$8 sps:$4 sm:$0xff]   ;;  %v7207_v27 = vld [vmem:[#allocation7 + $0x1f0] ss:$8 sps:$4 sm:$0xff]  }
  0x9e   :  { %1975 = vmatprep.mubr.bf16.mxu0 %v185_v29  ;;  %v7210_v28 = vld [vmem:[#allocation7 + $0x5f0] ss:$8 sps:$4 sm:$0xff]   ;;  %v7215_v29 = vld [vmem:[#allocation7 + $0x204] ss:$8 sps:$4 sm:$0xff]  }
  0x9f   :  { %1782 = vmatpush1.bf16.msra.mxu1 %v7123_v30  ;;  %v7218_v30 = vld [vmem:[#allocation7 + $0x604] ss:$8 sps:$4 sm:$0xff]  }
  0xa0   :  { %1946 = vmatpush1.bf16.msra.mxu0 %v7126_v31  ;;  %1783 = vmatprep.subr.bf16.mxu1 %v7131_v32  ;;  %v7213_v31 = vld [vmem:[#allocation7 + $0x200] ss:$8 sps:$4 sm:$0xff]   ;;  %v176_v32 = vpack.c.bf16 %v8418_v14, %v8418_v14  ;;  %v7219_v14 = vld [vmem:[#allocation7 + $0x210] ss:$8 sps:$4 sm:$0xff]  }
  0xa1   :  { %1947 = vmatprep.subr.bf16.mxu0 %v7134_v33  ;;  %v184_v33 = vpack.c.bf16 %v8421_v15, %v8421_v15 }
  0xa3   :  { %1784 = vmatpush1.bf16.msra.mxu1 %v7129_v34  ;;  %v7216_v34 = vld [vmem:[#allocation7 + $0x600] ss:$8 sps:$4 sm:$0xff]  }
  0xa4   :  { %1948 = vmatpush1.bf16.msra.mxu0 %v7132_v35  ;;  %1785 = vmatprep.subr.bf16.mxu1 %v7137_v36  ;;  %v7221_v35 = vld [vmem:[#allocation7 + $0x214] ss:$8 sps:$4 sm:$0xff]   ;;  %v8433_v36 = vld [vmem:[#allocation2 + $0x8] sm:$0xff] }
  0xa5   :  { %1949 = vmatprep.subr.bf16.mxu0 %v7140_v37  ;;  %v7224_v37 = vld [vmem:[#allocation7 + $0x614] ss:$8 sps:$4 sm:$0xff]  }
  0xa7   :  { %1786 = vmatpush1.bf16.msra.mxu1 %v7135_v39  ;;  %v8437_v39 = vrot.slane %v8433_v36, %v8409_v49 }
  0xa8   :  { %1950 = vmatpush1.bf16.msra.mxu0 %v7138_v40  ;;  %1787 = vmatprep.subr.bf16.mxu1 %v7143_v41  ;;  %v8439_v40 = vld [vmem:[#allocation2 + $0x18] sm:$0xff] }
  0xa9   :  { %1951 = vmatprep.subr.bf16.mxu0 %v7146_v42  ;;  %v7222_v41 = vld [vmem:[#allocation7 + $0x610] ss:$8 sps:$4 sm:$0xff]   ;;  %v122_v15 = vcombine.high %v8437_v39, %v8437_v39  ;;  %v8445_v42 = vrot.slane %v8439_v40, %v8409_v49 }
  0xab   :  { %1788 = vmatpush1.bf16.msra.mxu1 %v7141_v44  ;;  %v7227_v44 = vld [vmem:[#allocation7 + $0x224] ss:$8 sps:$4 sm:$0xff]  }
  0xac   :  { %1952 = vmatpush1.bf16.msra.mxu0 %v7144_v45  ;;  %1789 = vmatprep.subr.bf16.mxu1 %v7149_v46  ;;  %v7230_v45 = vld [vmem:[#allocation7 + $0x624] ss:$8 sps:$4 sm:$0xff]   ;;  %v179_v46 = vpack.c.bf16 %v122_v15, %v122_v15  ;;  %v7300_v15 = vld [vmem:[#allocation7 + $0x6e0] ss:$8 sps:$4 sm:$0xff]  }
  0xad   :  { %1953 = vmatprep.subr.bf16.mxu0 %v7152_v47  ;;  %v156_v47 = vcombine.high %v8445_v42, %v8445_v42 }
  0xaf   :  { %1790 = vmatpush1.bf16.msra.mxu1 %v7147_v48  ;;  %v7225_v48 = vld [vmem:[#allocation7 + $0x220] ss:$8 sps:$4 sm:$0xff]  }
  0xb0   :  { %1954 = vmatpush1.bf16.msra.mxu0 %v7150_v50  ;;  %1791 = vmatprep.subr.bf16.mxu1 %v7155_v51  ;;  %v7228_v50 = vld [vmem:[#allocation7 + $0x620] ss:$8 sps:$4 sm:$0xff]   ;;  %v187_v51 = vpack.c.bf16 %v156_v47, %v156_v47 }
  0xb1   :  { %1955 = vmatprep.subr.bf16.mxu0 %v7158_v52  ;;  %v7233_v52 = vld [vmem:[#allocation7 + $0x234] ss:$8 sps:$4 sm:$0xff]  }
  0xb3   :  { %1792 = vmatpush1.bf16.msra.mxu1 %v7153_v53  ;;  %v7236_v53 = vld [vmem:[#allocation7 + $0x634] ss:$8 sps:$4 sm:$0xff]  }
  0xb4   :  { %1956 = vmatpush1.bf16.msra.mxu0 %v7156_v54  ;;  %1793 = vmatprep.subr.bf16.mxu1 %v7161_v55  ;;  %v7231_v54 = vld [vmem:[#allocation7 + $0x230] ss:$8 sps:$4 sm:$0xff]  }
  0xb5   :  { %1957 = vmatprep.subr.bf16.mxu0 %v7164_v56  ;;  %v7234_v55 = vld [vmem:[#allocation7 + $0x630] ss:$8 sps:$4 sm:$0xff]   ;;  %v7239_v56 = vld [vmem:[#allocation7 + $0x244] ss:$8 sps:$4 sm:$0xff]  }
  0xb7   :  { %1794 = vmatpush1.bf16.msra.mxu1 %v7159_v57  ;;  %v7242_v57 = vld [vmem:[#allocation7 + $0x644] ss:$8 sps:$4 sm:$0xff]  }
  0xb8   :  { %1958 = vmatpush1.bf16.msra.mxu0 %v7162_v58  ;;  %1795 = vmatprep.subr.bf16.mxu1 %v7167_v59  ;;  %v7237_v58 = vld [vmem:[#allocation7 + $0x240] ss:$8 sps:$4 sm:$0xff]  }
  0xb9   :  { %1959 = vmatprep.subr.bf16.mxu0 %v7170_v60  ;;  %v7240_v59 = vld [vmem:[#allocation7 + $0x640] ss:$8 sps:$4 sm:$0xff]   ;;  %v7245_v60 = vld [vmem:[#allocation7 + $0x254] ss:$8 sps:$4 sm:$0xff]  }
  0xbb   :  { %1796 = vmatpush1.bf16.msra.mxu1 %v7165_v61  ;;  %v7248_v61 = vld [vmem:[#allocation7 + $0x654] ss:$8 sps:$4 sm:$0xff]  }
  0xbc   :  { %1960 = vmatpush1.bf16.msra.mxu0 %v7168_v62  ;;  %1797 = vmatprep.subr.bf16.mxu1 %v7173_v63  ;;  %v7243_v62 = vld [vmem:[#allocation7 + $0x250] ss:$8 sps:$4 sm:$0xff]  }
  0xbd   :  { %1961 = vmatprep.subr.bf16.mxu0 %v7176_v0  ;;  %v7246_v63 = vld [vmem:[#allocation7 + $0x650] ss:$8 sps:$4 sm:$0xff]   ;;  %v7251_v0 = vld [vmem:[#allocation7 + $0x264] ss:$8 sps:$4 sm:$0xff]  }
  0xbf   :  { %1798 = vmatpush1.bf16.msra.mxu1 %v7171_v1  ;;  %v7254_v1 = vld [vmem:[#allocation7 + $0x664] ss:$8 sps:$4 sm:$0xff]  }
  0xc0   :  { %1962 = vmatpush1.bf16.msra.mxu0 %v7174_v2  ;;  %1799 = vmatprep.subr.bf16.mxu1 %v7179_v3  ;;  %v7249_v2 = vld [vmem:[#allocation7 + $0x260] ss:$8 sps:$4 sm:$0xff]  }
  0xc1   :  { %1963 = vmatprep.subr.bf16.mxu0 %v7182_v4  ;;  %v7252_v3 = vld [vmem:[#allocation7 + $0x660] ss:$8 sps:$4 sm:$0xff]   ;;  %v7257_v4 = vld [vmem:[#allocation7 + $0x274] ss:$8 sps:$4 sm:$0xff]  }
  0xc3   :  { %1800 = vmatpush1.bf16.msra.mxu1 %v7177_v5  ;;  %v7260_v5 = vld [vmem:[#allocation7 + $0x674] ss:$8 sps:$4 sm:$0xff]  }
  0xc4   :  { %1964 = vmatpush1.bf16.msra.mxu0 %v7180_v6  ;;  %1801 = vmatprep.subr.bf16.mxu1 %v7185_v7  ;;  %v7255_v6 = vld [vmem:[#allocation7 + $0x270] ss:$8 sps:$4 sm:$0xff]  }
  0xc5   :  { %1965 = vmatprep.subr.bf16.mxu0 %v7188_v8  ;;  %v7258_v7 = vld [vmem:[#allocation7 + $0x670] ss:$8 sps:$4 sm:$0xff]   ;;  %v7263_v8 = vld [vmem:[#allocation7 + $0x284] ss:$8 sps:$4 sm:$0xff]  }
  0xc7   :  { %1802 = vmatpush1.bf16.msra.mxu1 %v7183_v9  ;;  %v7266_v9 = vld [vmem:[#allocation7 + $0x684] ss:$8 sps:$4 sm:$0xff]  }
  0xc8   :  { %1966 = vmatpush1.bf16.msra.mxu0 %v7186_v10  ;;  %1803 = vmatprep.subr.bf16.mxu1 %v7191_v11  ;;  %v7261_v10 = vld [vmem:[#allocation7 + $0x280] ss:$8 sps:$4 sm:$0xff]  }
  0xc9   :  { %1967 = vmatprep.subr.bf16.mxu0 %v7194_v12  ;;  %v7264_v11 = vld [vmem:[#allocation7 + $0x680] ss:$8 sps:$4 sm:$0xff]   ;;  %v7269_v12 = vld [vmem:[#allocation7 + $0x294] ss:$8 sps:$4 sm:$0xff]  }
  0xcb   :  { %1804 = vmatpush1.bf16.msra.mxu1 %v7189_v13  ;;  %v7272_v13 = vld [vmem:[#allocation7 + $0x694] ss:$8 sps:$4 sm:$0xff]  }
  0xcc   :  { %1968 = vmatpush1.bf16.msra.mxu0 %v7192_v16  ;;  %1805 = vmatprep.subr.bf16.mxu1 %v7197_v17  ;;  %v7267_v16 = vld [vmem:[#allocation7 + $0x290] ss:$8 sps:$4 sm:$0xff]  }
  0xcd   :  { %1969 = vmatprep.subr.bf16.mxu0 %v7200_v18  ;;  %v7270_v17 = vld [vmem:[#allocation7 + $0x690] ss:$8 sps:$4 sm:$0xff]   ;;  %v7275_v18 = vld [vmem:[#allocation7 + $0x2a4] ss:$8 sps:$4 sm:$0xff]  }
  0xcf   :  { %1806 = vmatpush1.bf16.msra.mxu1 %v7195_v19  ;;  %v7278_v19 = vld [vmem:[#allocation7 + $0x6a4] ss:$8 sps:$4 sm:$0xff]  }
  0xd0   :  { %1970 = vmatpush1.bf16.msra.mxu0 %v7198_v20  ;;  %1807 = vmatprep.subr.bf16.mxu1 %v7203_v21  ;;  %v7273_v20 = vld [vmem:[#allocation7 + $0x2a0] ss:$8 sps:$4 sm:$0xff]  }
  0xd1   :  { %1971 = vmatprep.subr.bf16.mxu0 %v7206_v22  ;;  %v7276_v21 = vld [vmem:[#allocation7 + $0x6a0] ss:$8 sps:$4 sm:$0xff]   ;;  %v7281_v22 = vld [vmem:[#allocation7 + $0x2b4] ss:$8 sps:$4 sm:$0xff]  }
  0xd3   :  { %1808 = vmatpush1.bf16.msra.mxu1 %v7201_v23  ;;  %v7284_v23 = vld [vmem:[#allocation7 + $0x6b4] ss:$8 sps:$4 sm:$0xff]  }
  0xd4   :  { %1972 = vmatpush1.bf16.msra.mxu0 %v7204_v24  ;;  %1809 = vmatprep.subr.bf16.mxu1 %v7209_v25  ;;  %v7279_v24 = vld [vmem:[#allocation7 + $0x2b0] ss:$8 sps:$4 sm:$0xff]  }
  0xd5   :  { %1973 = vmatprep.subr.bf16.mxu0 %v7212_v26  ;;  %v7282_v25 = vld [vmem:[#allocation7 + $0x6b0] ss:$8 sps:$4 sm:$0xff]   ;;  %v7287_v26 = vld [vmem:[#allocation7 + $0x2c4] ss:$8 sps:$4 sm:$0xff]  }
  0xd7   :  { %1810 = vmatpush1.bf16.msra.mxu1 %v7207_v27  ;;  %v7290_v27 = vld [vmem:[#allocation7 + $0x6c4] ss:$8 sps:$4 sm:$0xff]  }
  0xd8   :  { %1974 = vmatpush1.bf16.msra.mxu0 %v7210_v28  ;;  %1820 = vmatprep.subr.bf16.mxu1 %v7215_v29  ;;  %v7285_v28 = vld [vmem:[#allocation7 + $0x2c0] ss:$8 sps:$4 sm:$0xff]  }
  0xd9   :  { %1984 = vmatprep.subr.bf16.mxu0 %v7218_v30  ;;  %v7288_v29 = vld [vmem:[#allocation7 + $0x6c0] ss:$8 sps:$4 sm:$0xff]   ;;  %v7293_v30 = vld [vmem:[#allocation7 + $0x2d4] ss:$8 sps:$4 sm:$0xff]  }
  0xda   :  { %1812 = vmatmul.mubr.bf16.vlgmr.msra.gmra.mrb[0].mxu1 %v176_v32  ;;  %v7291_v32 = vld [vmem:[#allocation7 + $0x2d0] ss:$8 sps:$4 sm:$0xff]  }
  0xdb   :  { %1976 = vmatmul.mubr.bf16.vlgmr.msra.gmra.mrb[0].mxu0 %v184_v33  ;;  %1821 = vmatpush1.bf16.msra.mxu1 %v7213_v31  ;;  %v7296_v31 = vld [vmem:[#allocation7 + $0x6d4] ss:$8 sps:$4 sm:$0xff]   ;;  %v7294_v33 = vld [vmem:[#allocation7 + $0x6d0] ss:$8 sps:$4 sm:$0xff]  }
  0xdc   :  { %1985 = vmatpush1.bf16.msra.mxu0 %v7216_v34  ;;  %1822 = vmatprep.subr.bf16.mxu1 %v7221_v35  ;;  %v7299_v34 = vld [vmem:[#allocation7 + $0x2e4] ss:$8 sps:$4 sm:$0xff]  }
  0xdd   :  { %1986 = vmatprep.subr.bf16.mxu0 %v7224_v37  ;;  %1852 = vmatprep.mubr.bf16.mxu1 %v179_v46  ;;  %v7302_v35 = vld [vmem:[#allocation7 + $0x6e4] ss:$8 sps:$4 sm:$0xff]   ;;  %v107_v37 = vcombine.high %v8433_v36, %v8433_v36 }
  0xde   :  { %2016 = vmatprep.mubr.bf16.mxu0 %v187_v51  ;;  %v7311_v36 = vld [vmem:[#allocation7 + $0x304] ss:$8 sps:$4 sm:$0xff]  }
  0xdf   :  { %1823 = vmatpush1.bf16.msra.mxu1 %v7219_v14  ;;  %v141_v14 = vcombine.high %v8439_v40, %v8439_v40  ;;  %v8454_v46 = vrot.slane %v107_v37, %v8409_v49  ;;  %v7314_v40 = vld [vmem:[#allocation7 + $0x704] ss:$8 sps:$4 sm:$0xff]   ;;  %v7380_v37 = vld [vmem:[#allocation7 + $0x7b4] ss:$8 sps:$4 sm:$0xff]  }
  0xe0   :  { %1987 = vmatpush1.bf16.msra.mxu0 %v7222_v41  ;;  %1824 = vmatprep.subr.bf16.mxu1 %v7227_v44  ;;  %v7297_v41 = vld [vmem:[#allocation7 + $0x2e0] ss:$8 sps:$4 sm:$0xff]   ;;  %v7305_v44 = vld [vmem:[#allocation7 + $0x2f4] ss:$8 sps:$4 sm:$0xff]  }
  0xe1   :  { %1988 = vmatprep.subr.bf16.mxu0 %v7230_v45  ;;  %v7308_v45 = vld [vmem:[#allocation7 + $0x6f4] ss:$8 sps:$4 sm:$0xff]   ;;  %v8457_v47 = vrot.slane %v141_v14, %v8409_v49  ;;  %v123_v51 = vcombine.high %v8454_v46, %v8454_v46  ;;  %v7375_v14 = vld [vmem:[#allocation7 + $0x3b0] ss:$8 sps:$4 sm:$0xff]  }
  0xe3   :  { %1825 = vmatpush1.bf16.msra.mxu1 %v7225_v48  ;;  %v7303_v48 = vld [vmem:[#allocation7 + $0x2f0] ss:$8 sps:$4 sm:$0xff]  }
  0xe4   :  { %1989 = vmatpush1.bf16.msra.mxu0 %v7228_v50  ;;  %1826 = vmatprep.subr.bf16.mxu1 %v7233_v52  ;;  %v7306_v50 = vld [vmem:[#allocation7 + $0x6f0] ss:$8 sps:$4 sm:$0xff]   ;;  %v157_v52 = vcombine.high %v8457_v47, %v8457_v47 }
  0xe5   :  { %1990 = vmatprep.subr.bf16.mxu0 %v7236_v53  ;;  %v7309_v53 = vld [vmem:[#allocation7 + $0x300] ss:$8 sps:$4 sm:$0xff]  }
  0xe7   :  { %1827 = vmatpush1.bf16.msra.mxu1 %v7231_v54  ;;  %v7312_v54 = vld [vmem:[#allocation7 + $0x700] ss:$8 sps:$4 sm:$0xff]  }
  0xe8   :  { %1991 = vmatpush1.bf16.msra.mxu0 %v7234_v55  ;;  %1828 = vmatprep.subr.bf16.mxu1 %v7239_v56  ;;  %v178_v55 = vpack.c.bf16 %v8437_v39, %v8437_v39  ;;  %v186_v56 = vpack.c.bf16 %v8445_v42, %v8445_v42  ;;  %v7326_v39 = vld [vmem:[#allocation7 + $0x724] ss:$8 sps:$4 sm:$0xff]   ;;  %v7321_v42 = vld [vmem:[#allocation7 + $0x320] ss:$8 sps:$4 sm:$0xff]  }
  0xe9   :  { %1992 = vmatprep.subr.bf16.mxu0 %v7242_v57  ;;  %v7317_v57 = vld [vmem:[#allocation7 + $0x314] ss:$8 sps:$4 sm:$0xff]  }
  0xeb   :  { %1829 = vmatpush1.bf16.msra.mxu1 %v7237_v58  ;;  %v7320_v58 = vld [vmem:[#allocation7 + $0x714] ss:$8 sps:$4 sm:$0xff]  }
  0xec   :  { %1993 = vmatpush1.bf16.msra.mxu0 %v7240_v59  ;;  %1830 = vmatprep.subr.bf16.mxu1 %v7245_v60  ;;  %v181_v59 = vpack.c.bf16 %v123_v51, %v123_v51  ;;  %v189_v60 = vpack.c.bf16 %v157_v52, %v157_v52  ;;  %v7390_v51 = vld [vmem:[#allocation7 + $0x7d0] ss:$8 sps:$4 sm:$0xff]   ;;  %v7395_v52 = vld [vmem:[#allocation7 + $0x3e4] ss:$8 sps:$4 sm:$0xff]  }
  0xed   :  { %1994 = vmatprep.subr.bf16.mxu0 %v7248_v61  ;;  %v7315_v61 = vld [vmem:[#allocation7 + $0x310] ss:$8 sps:$4 sm:$0xff]  }
  0xef   :  { %1831 = vmatpush1.bf16.msra.mxu1 %v7243_v62  ;;  %v7318_v62 = vld [vmem:[#allocation7 + $0x710] ss:$8 sps:$4 sm:$0xff]  }
  0xf0   :  { %1995 = vmatpush1.bf16.msra.mxu0 %v7246_v63  ;;  %1832 = vmatprep.subr.bf16.mxu1 %v7251_v0  ;;  %v7323_v63 = vld [vmem:[#allocation7 + $0x324] ss:$8 sps:$4 sm:$0xff]   ;;  %v7324_v0 = vld [vmem:[#allocation7 + $0x720] ss:$8 sps:$4 sm:$0xff]  }
  0xf1   :  { %1996 = vmatprep.subr.bf16.mxu0 %v7254_v1  ;;  %v7329_v1 = vld [vmem:[#allocation7 + $0x334] ss:$8 sps:$4 sm:$0xff]  }
  0xf3   :  { %1833 = vmatpush1.bf16.msra.mxu1 %v7249_v2  ;;  %v7332_v2 = vld [vmem:[#allocation7 + $0x734] ss:$8 sps:$4 sm:$0xff]  }
  0xf4   :  { %1997 = vmatpush1.bf16.msra.mxu0 %v7252_v3  ;;  %1834 = vmatprep.subr.bf16.mxu1 %v7257_v4  ;;  %v7327_v3 = vld [vmem:[#allocation7 + $0x330] ss:$8 sps:$4 sm:$0xff]  }
  0xf5   :  { %1998 = vmatprep.subr.bf16.mxu0 %v7260_v5  ;;  %v7330_v4 = vld [vmem:[#allocation7 + $0x730] ss:$8 sps:$4 sm:$0xff]   ;;  %v7335_v5 = vld [vmem:[#allocation7 + $0x344] ss:$8 sps:$4 sm:$0xff]  }
  0xf7   :  { %1835 = vmatpush1.bf16.msra.mxu1 %v7255_v6  ;;  %v7338_v6 = vld [vmem:[#allocation7 + $0x744] ss:$8 sps:$4 sm:$0xff]  }
  0xf8   :  { %1999 = vmatpush1.bf16.msra.mxu0 %v7258_v7  ;;  %1836 = vmatprep.subr.bf16.mxu1 %v7263_v8  ;;  %v7333_v7 = vld [vmem:[#allocation7 + $0x340] ss:$8 sps:$4 sm:$0xff]  }
  0xf9   :  { %2000 = vmatprep.subr.bf16.mxu0 %v7266_v9  ;;  %v7336_v8 = vld [vmem:[#allocation7 + $0x740] ss:$8 sps:$4 sm:$0xff]   ;;  %v7341_v9 = vld [vmem:[#allocation7 + $0x354] ss:$8 sps:$4 sm:$0xff]  }
  0xfb   :  { %1837 = vmatpush1.bf16.msra.mxu1 %v7261_v10  ;;  %v7344_v10 = vld [vmem:[#allocation7 + $0x754] ss:$8 sps:$4 sm:$0xff]  }
  0xfc   :  { %2001 = vmatpush1.bf16.msra.mxu0 %v7264_v11  ;;  %1838 = vmatprep.subr.bf16.mxu1 %v7269_v12  ;;  %v7339_v11 = vld [vmem:[#allocation7 + $0x350] ss:$8 sps:$4 sm:$0xff]  }
  0xfd   :  { %2002 = vmatprep.subr.bf16.mxu0 %v7272_v13  ;;  %v7342_v12 = vld [vmem:[#allocation7 + $0x750] ss:$8 sps:$4 sm:$0xff]   ;;  %v7347_v13 = vld [vmem:[#allocation7 + $0x364] ss:$8 sps:$4 sm:$0xff]  }
  0xff   :  { %1839 = vmatpush1.bf16.msra.mxu1 %v7267_v16  ;;  %v7350_v16 = vld [vmem:[#allocation7 + $0x764] ss:$8 sps:$4 sm:$0xff]  }
 0x100   :  { %2003 = vmatpush1.bf16.msra.mxu0 %v7270_v17  ;;  %1840 = vmatprep.subr.bf16.mxu1 %v7275_v18  ;;  %v7345_v17 = vld [vmem:[#allocation7 + $0x360] ss:$8 sps:$4 sm:$0xff]  }
 0x101   :  { %2004 = vmatprep.subr.bf16.mxu0 %v7278_v19  ;;  %v7348_v18 = vld [vmem:[#allocation7 + $0x760] ss:$8 sps:$4 sm:$0xff]   ;;  %v7353_v19 = vld [vmem:[#allocation7 + $0x374] ss:$8 sps:$4 sm:$0xff]  }
 0x103   :  { %1841 = vmatpush1.bf16.msra.mxu1 %v7273_v20  ;;  %v7356_v20 = vld [vmem:[#allocation7 + $0x774] ss:$8 sps:$4 sm:$0xff]  }
 0x104   :  { %2005 = vmatpush1.bf16.msra.mxu0 %v7276_v21  ;;  %1842 = vmatprep.subr.bf16.mxu1 %v7281_v22  ;;  %v7351_v21 = vld [vmem:[#allocation7 + $0x370] ss:$8 sps:$4 sm:$0xff]  }
 0x105   :  { %2006 = vmatprep.subr.bf16.mxu0 %v7284_v23  ;;  %v7354_v22 = vld [vmem:[#allocation7 + $0x770] ss:$8 sps:$4 sm:$0xff]   ;;  %v7359_v23 = vld [vmem:[#allocation7 + $0x384] ss:$8 sps:$4 sm:$0xff]  }
 0x107   :  { %1843 = vmatpush1.bf16.msra.mxu1 %v7279_v24  ;;  %v7362_v24 = vld [vmem:[#allocation7 + $0x784] ss:$8 sps:$4 sm:$0xff]  }
 0x108   :  { %2007 = vmatpush1.bf16.msra.mxu0 %v7282_v25  ;;  %1844 = vmatprep.subr.bf16.mxu1 %v7287_v26  ;;  %v7357_v25 = vld [vmem:[#allocation7 + $0x380] ss:$8 sps:$4 sm:$0xff]  }
 0x109   :  { %2008 = vmatprep.subr.bf16.mxu0 %v7290_v27  ;;  %v7360_v26 = vld [vmem:[#allocation7 + $0x780] ss:$8 sps:$4 sm:$0xff]   ;;  %v7365_v27 = vld [vmem:[#allocation7 + $0x394] ss:$8 sps:$4 sm:$0xff]  }
 0x10b   :  { %1845 = vmatpush1.bf16.msra.mxu1 %v7285_v28  ;;  %v7368_v28 = vld [vmem:[#allocation7 + $0x794] ss:$8 sps:$4 sm:$0xff]  }
 0x10c   :  { %2009 = vmatpush1.bf16.msra.mxu0 %v7288_v29  ;;  %1846 = vmatprep.subr.bf16.mxu1 %v7293_v30  ;;  %v7363_v29 = vld [vmem:[#allocation7 + $0x390] ss:$8 sps:$4 sm:$0xff]  }
 0x10d   :  { %2010 = vmatprep.subr.bf16.mxu0 %v7296_v31  ;;  %v7366_v30 = vld [vmem:[#allocation7 + $0x790] ss:$8 sps:$4 sm:$0xff]   ;;  %v7371_v31 = vld [vmem:[#allocation7 + $0x3a4] ss:$8 sps:$4 sm:$0xff]  }
 0x10f   :  { %1847 = vmatpush1.bf16.msra.mxu1 %v7291_v32  ;;  %v7374_v32 = vld [vmem:[#allocation7 + $0x7a4] ss:$8 sps:$4 sm:$0xff]  }
 0x110   :  { %2011 = vmatpush1.bf16.msra.mxu0 %v7294_v33  ;;  %1848 = vmatprep.subr.bf16.mxu1 %v7299_v34  ;;  %v7369_v33 = vld [vmem:[#allocation7 + $0x3a0] ss:$8 sps:$4 sm:$0xff]  }
 0x111   :  { %2012 = vmatprep.subr.bf16.mxu0 %v7302_v35  ;;  %v7372_v34 = vld [vmem:[#allocation7 + $0x7a0] ss:$8 sps:$4 sm:$0xff]   ;;  %v7377_v35 = vld [vmem:[#allocation7 + $0x3b4] ss:$8 sps:$4 sm:$0xff]  }
 0x113   :  { %1849 = vmatpush1.bf16.msra.mxu1 %v7297_v41  ;;  %v7378_v41 = vld [vmem:[#allocation7 + $0x7b0] ss:$8 sps:$4 sm:$0xff]  }
 0x114   :  { %2013 = vmatpush1.bf16.msra.mxu0 %v7300_v15  ;;  %1850 = vmatprep.subr.bf16.mxu1 %v7305_v44  ;;  %v7383_v15 = vld [vmem:[#allocation7 + $0x3c4] ss:$8 sps:$4 sm:$0xff]  }
 0x115   :  { %2014 = vmatprep.subr.bf16.mxu0 %v7308_v45  ;;  %v7386_v44 = vld [vmem:[#allocation7 + $0x7c4] ss:$8 sps:$4 sm:$0xff]   ;;  %v7381_v45 = vld [vmem:[#allocation7 + $0x3c0] ss:$8 sps:$4 sm:$0xff]  }
 0x117   :  { %1851 = vmatpush1.bf16.msra.mxu1 %v7303_v48  ;;  %v7384_v48 = vld [vmem:[#allocation7 + $0x7c0] ss:$8 sps:$4 sm:$0xff]  }
 0x118   :  { %2015 = vmatpush1.bf16.msra.mxu0 %v7306_v50  ;;  %1861 = vmatprep.subr.bf16.mxu1 %v7311_v36  ;;  %v7389_v50 = vld [vmem:[#allocation7 + $0x3d4] ss:$8 sps:$4 sm:$0xff]  }
 0x119   :  { %2025 = vmatprep.subr.bf16.mxu0 %v7314_v40  ;;  %v7392_v36 = vld [vmem:[#allocation7 + $0x7d4] ss:$8 sps:$4 sm:$0xff]   ;;  %v7387_v40 = vld [vmem:[#allocation7 + $0x3d0] ss:$8 sps:$4 sm:$0xff]  }
 0x11a   :  { %1853 = vmatmul.mubr.bf16.vlgmr.msra.gmra.mrb[0].mxu1 %v178_v55  ;;  %v8469_v55 = vld [vmem:[#allocation6] sm:$0xff] }
 0x11b   :  { %2017 = vmatmul.mubr.bf16.vlgmr.msra.gmra.mrb[0].mxu0 %v186_v56  ;;  %1862 = vmatpush1.bf16.msra.mxu1 %v7309_v53  ;;  %v7398_v53 = vld [vmem:[#allocation7 + $0x7e4] ss:$8 sps:$4 sm:$0xff]   ;;  %v7393_v56 = vld [vmem:[#allocation7 + $0x3e0] ss:$8 sps:$4 sm:$0xff]  }
 0x11c   :  { %2026 = vmatpush1.bf16.msra.mxu0 %v7312_v54  ;;  %1863 = vmatprep.subr.bf16.mxu1 %v7317_v57  ;;  %v8467_v54 = vld [vmem:[#allocation4] sm:$0xff] }
 0x11d   :  { %2027 = vmatprep.subr.bf16.mxu0 %v7320_v58  ;;  %1893 = vmatprep.mubr.bf16.mxu1 %v181_v59  ;;  %v7396_v57 = vld [vmem:[#allocation7 + $0x7e0] ss:$8 sps:$4 sm:$0xff]   ;;  %v7401_v58 = vld [vmem:[#allocation7 + $0x3f4] ss:$8 sps:$4 sm:$0xff]  }
 0x11e   :  { %2057 = vmatprep.mubr.bf16.mxu0 %v189_v60  ;;  %v7404_v59 = vld [vmem:[#allocation7 + $0x7f4] ss:$8 sps:$4 sm:$0xff]   ;;  %v8473_v60 = vrot.slane %v8467_v54, %v8409_v49 }
 0x11f   :  { %1864 = vmatpush1.bf16.msra.mxu1 %v7315_v61  ;;  %v8477_v61 = vrot.slane %v8469_v55, %v8409_v49 }
 0x120   :  { %2028 = vmatpush1.bf16.msra.mxu0 %v7318_v62  ;;  %1865 = vmatprep.subr.bf16.mxu1 %v7323_v63  ;;  %v7399_v62 = vld [vmem:[#allocation7 + $0x3f0] ss:$8 sps:$4 sm:$0xff]  }
 0x121   :  { %2029 = vmatprep.subr.bf16.mxu0 %v7326_v39  ;;  %v7402_v63 = vld [vmem:[#allocation7 + $0x7f0] ss:$8 sps:$4 sm:$0xff]   ;;  %v7409_v39 = vld [vmem:[#allocation7 + $0x804] ss:$8 sps:$4 sm:$0xff]  }
 0x123   :  { %1866 = vmatpush1.bf16.msra.mxu1 %v7321_v42  ;;  %v7412_v42 = vld [vmem:[#allocation7 + $0x1004] ss:$8 sps:$4 sm:$0xff]  }
 0x124   :  { %2030 = vmatpush1.bf16.msra.mxu0 %v7324_v0  ;;  %1867 = vmatprep.subr.bf16.mxu1 %v7329_v1  ;;  %v2125_v0 = vcombine.high %v8473_v60, %v8473_v60  ;;  %v4144_v1 = vcombine.high %v8477_v61, %v8477_v61 }
 0x125   :  { %2031 = vmatprep.subr.bf16.mxu0 %v7332_v2  ;;  %v180_v2 = vpack.c.bf16 %v8454_v46, %v8454_v46  ;;  %v7421_v46 = vld [vmem:[#allocation7 + $0x824] ss:$8 sps:$4 sm:$0xff]  }
 0x127   :  { %1868 = vmatpush1.bf16.msra.mxu1 %v7327_v3  ;;  %v188_v3 = vpack.c.bf16 %v8457_v47, %v8457_v47  ;;  %v7424_v47 = vld [vmem:[#allocation7 + $0x1024] ss:$8 sps:$4 sm:$0xff]  }
 0x128   :  { %2032 = vmatpush1.bf16.msra.mxu0 %v7330_v4  ;;  %1869 = vmatprep.subr.bf16.mxu1 %v7335_v5  ;;  %v7407_v4 = vld [vmem:[#allocation7 + $0x800] ss:$8 sps:$4 sm:$0xff]  }
 0x129   :  { %2033 = vmatprep.subr.bf16.mxu0 %v7338_v6  ;;  %v7410_v5 = vld [vmem:[#allocation7 + $0x1000] ss:$8 sps:$4 sm:$0xff]   ;;  %v7415_v6 = vld [vmem:[#allocation7 + $0x814] ss:$8 sps:$4 sm:$0xff]  }
 0x12b   :  { %1870 = vmatpush1.bf16.msra.mxu1 %v7333_v7  ;;  %v7418_v7 = vld [vmem:[#allocation7 + $0x1014] ss:$8 sps:$4 sm:$0xff]  }
 0x12c   :  { %2034 = vmatpush1.bf16.msra.mxu0 %v7336_v8  ;;  %1871 = vmatprep.subr.bf16.mxu1 %v7341_v9  ;;  %v2195_v8 = vpack.c.bf16 %v2125_v0, %v2125_v0  ;;  %v4214_v9 = vpack.c.bf16 %v4144_v1, %v4144_v1  ;;  %v7490_v0 = vld [vmem:[#allocation7 + $0x10d4] ss:$8 sps:$4 sm:$0xff]   ;;  %v7485_v1 = vld [vmem:[#allocation7 + $0x8d0] ss:$8 sps:$4 sm:$0xff]  }
 0x12d   :  { %2035 = vmatprep.subr.bf16.mxu0 %v7344_v10  ;;  %v7413_v10 = vld [vmem:[#allocation7 + $0x810] ss:$8 sps:$4 sm:$0xff]  }
 0x12f   :  { %1872 = vmatpush1.bf16.msra.mxu1 %v7339_v11  ;;  %v7416_v11 = vld [vmem:[#allocation7 + $0x1010] ss:$8 sps:$4 sm:$0xff]  }
 0x130   :  { %2036 = vmatpush1.bf16.msra.mxu0 %v7342_v12  ;;  %1873 = vmatprep.subr.bf16.mxu1 %v7347_v13  ;;  %v7419_v12 = vld [vmem:[#allocation7 + $0x820] ss:$8 sps:$4 sm:$0xff]  }
 0x131   :  { %2037 = vmatprep.subr.bf16.mxu0 %v7350_v16  ;;  %v7422_v13 = vld [vmem:[#allocation7 + $0x1020] ss:$8 sps:$4 sm:$0xff]   ;;  %v7427_v16 = vld [vmem:[#allocation7 + $0x834] ss:$8 sps:$4 sm:$0xff]  }
 0x133   :  { %1874 = vmatpush1.bf16.msra.mxu1 %v7345_v17  ;;  %v7430_v17 = vld [vmem:[#allocation7 + $0x1034] ss:$8 sps:$4 sm:$0xff]  }
 0x134   :  { %2038 = vmatpush1.bf16.msra.mxu0 %v7348_v18  ;;  %1875 = vmatprep.subr.bf16.mxu1 %v7353_v19  ;;  %v7425_v18 = vld [vmem:[#allocation7 + $0x830] ss:$8 sps:$4 sm:$0xff]  }
 0x135   :  { %2039 = vmatprep.subr.bf16.mxu0 %v7356_v20  ;;  %v7428_v19 = vld [vmem:[#allocation7 + $0x1030] ss:$8 sps:$4 sm:$0xff]   ;;  %v7433_v20 = vld [vmem:[#allocation7 + $0x844] ss:$8 sps:$4 sm:$0xff]  }
 0x137   :  { %1876 = vmatpush1.bf16.msra.mxu1 %v7351_v21  ;;  %v7436_v21 = vld [vmem:[#allocation7 + $0x1044] ss:$8 sps:$4 sm:$0xff]  }
 0x138   :  { %2040 = vmatpush1.bf16.msra.mxu0 %v7354_v22  ;;  %1877 = vmatprep.subr.bf16.mxu1 %v7359_v23  ;;  %v7431_v22 = vld [vmem:[#allocation7 + $0x840] ss:$8 sps:$4 sm:$0xff]  }
 0x139   :  { %2041 = vmatprep.subr.bf16.mxu0 %v7362_v24  ;;  %v7434_v23 = vld [vmem:[#allocation7 + $0x1040] ss:$8 sps:$4 sm:$0xff]   ;;  %v7439_v24 = vld [vmem:[#allocation7 + $0x854] ss:$8 sps:$4 sm:$0xff]  }
 0x13b   :  { %1878 = vmatpush1.bf16.msra.mxu1 %v7357_v25  ;;  %v7442_v25 = vld [vmem:[#allocation7 + $0x1054] ss:$8 sps:$4 sm:$0xff]  }
 0x13c   :  { %2042 = vmatpush1.bf16.msra.mxu0 %v7360_v26  ;;  %1879 = vmatprep.subr.bf16.mxu1 %v7365_v27  ;;  %v7437_v26 = vld [vmem:[#allocation7 + $0x850] ss:$8 sps:$4 sm:$0xff]  }
 0x13d   :  { %2043 = vmatprep.subr.bf16.mxu0 %v7368_v28  ;;  %v7440_v27 = vld [vmem:[#allocation7 + $0x1050] ss:$8 sps:$4 sm:$0xff]   ;;  %v7445_v28 = vld [vmem:[#allocation7 + $0x864] ss:$8 sps:$4 sm:$0xff]  }
 0x13f   :  { %1880 = vmatpush1.bf16.msra.mxu1 %v7363_v29  ;;  %v7448_v29 = vld [vmem:[#allocation7 + $0x1064] ss:$8 sps:$4 sm:$0xff]  }
 0x140   :  { %2044 = vmatpush1.bf16.msra.mxu0 %v7366_v30  ;;  %1881 = vmatprep.subr.bf16.mxu1 %v7371_v31  ;;  %v7443_v30 = vld [vmem:[#allocation7 + $0x860] ss:$8 sps:$4 sm:$0xff]  }
 0x141   :  { %2045 = vmatprep.subr.bf16.mxu0 %v7374_v32  ;;  %v7446_v31 = vld [vmem:[#allocation7 + $0x1060] ss:$8 sps:$4 sm:$0xff]   ;;  %v7451_v32 = vld [vmem:[#allocation7 + $0x874] ss:$8 sps:$4 sm:$0xff]  }
 0x143   :  { %1882 = vmatpush1.bf16.msra.mxu1 %v7369_v33  ;;  %v7454_v33 = vld [vmem:[#allocation7 + $0x1074] ss:$8 sps:$4 sm:$0xff]  }
 0x144   :  { %2046 = vmatpush1.bf16.msra.mxu0 %v7372_v34  ;;  %1883 = vmatprep.subr.bf16.mxu1 %v7377_v35  ;;  %v7449_v34 = vld [vmem:[#allocation7 + $0x870] ss:$8 sps:$4 sm:$0xff]  }
 0x145   :  { %2047 = vmatprep.subr.bf16.mxu0 %v7380_v37  ;;  %v7452_v35 = vld [vmem:[#allocation7 + $0x1070] ss:$8 sps:$4 sm:$0xff]   ;;  %v7457_v37 = vld [vmem:[#allocation7 + $0x884] ss:$8 sps:$4 sm:$0xff]  }
 0x147   :  { %1884 = vmatpush1.bf16.msra.mxu1 %v7375_v14  ;;  %v7460_v14 = vld [vmem:[#allocation7 + $0x1084] ss:$8 sps:$4 sm:$0xff]  }
 0x148   :  { %2048 = vmatpush1.bf16.msra.mxu0 %v7378_v41  ;;  %1885 = vmatprep.subr.bf16.mxu1 %v7383_v15  ;;  %v7455_v41 = vld [vmem:[#allocation7 + $0x880] ss:$8 sps:$4 sm:$0xff]  }
 0x149   :  { %2049 = vmatprep.subr.bf16.mxu0 %v7386_v44  ;;  %v7458_v15 = vld [vmem:[#allocation7 + $0x1080] ss:$8 sps:$4 sm:$0xff]   ;;  %v7463_v44 = vld [vmem:[#allocation7 + $0x894] ss:$8 sps:$4 sm:$0xff]  }
 0x14b   :  { %1886 = vmatpush1.bf16.msra.mxu1 %v7381_v45  ;;  %v7466_v45 = vld [vmem:[#allocation7 + $0x1094] ss:$8 sps:$4 sm:$0xff]  }
 0x14c   :  { %2050 = vmatpush1.bf16.msra.mxu0 %v7384_v48  ;;  %1887 = vmatprep.subr.bf16.mxu1 %v7389_v50  ;;  %v7461_v48 = vld [vmem:[#allocation7 + $0x890] ss:$8 sps:$4 sm:$0xff]  }
 0x14d   :  { %2051 = vmatprep.subr.bf16.mxu0 %v7392_v36  ;;  %v7464_v50 = vld [vmem:[#allocation7 + $0x1090] ss:$8 sps:$4 sm:$0xff]   ;;  %v7469_v36 = vld [vmem:[#allocation7 + $0x8a4] ss:$8 sps:$4 sm:$0xff]  }
 0x14f   :  { %1888 = vmatpush1.bf16.msra.mxu1 %v7387_v40  ;;  %v7472_v40 = vld [vmem:[#allocation7 + $0x10a4] ss:$8 sps:$4 sm:$0xff]  }
 0x150   :  { %2052 = vmatpush1.bf16.msra.mxu0 %v7390_v51  ;;  %1889 = vmatprep.subr.bf16.mxu1 %v7395_v52  ;;  %v7467_v51 = vld [vmem:[#allocation7 + $0x8a0] ss:$8 sps:$4 sm:$0xff]  }
 0x151   :  { %2053 = vmatprep.subr.bf16.mxu0 %v7398_v53  ;;  %v7470_v52 = vld [vmem:[#allocation7 + $0x10a0] ss:$8 sps:$4 sm:$0xff]   ;;  %v7475_v53 = vld [vmem:[#allocation7 + $0x8b4] ss:$8 sps:$4 sm:$0xff]  }
 0x153   :  { %1890 = vmatpush1.bf16.msra.mxu1 %v7393_v56  ;;  %v7478_v56 = vld [vmem:[#allocation7 + $0x10b4] ss:$8 sps:$4 sm:$0xff]  }
 0x154   :  { %2054 = vmatpush1.bf16.msra.mxu0 %v7396_v57  ;;  %1891 = vmatprep.subr.bf16.mxu1 %v7401_v58  ;;  %v7473_v57 = vld [vmem:[#allocation7 + $0x8b0] ss:$8 sps:$4 sm:$0xff]  }
 0x155   :  { %2055 = vmatprep.subr.bf16.mxu0 %v7404_v59  ;;  %v7476_v58 = vld [vmem:[#allocation7 + $0x10b0] ss:$8 sps:$4 sm:$0xff]   ;;  %v7481_v59 = vld [vmem:[#allocation7 + $0x8c4] ss:$8 sps:$4 sm:$0xff]  }
 0x157   :  { %1892 = vmatpush1.bf16.msra.mxu1 %v7399_v62  ;;  %v7484_v62 = vld [vmem:[#allocation7 + $0x10c4] ss:$8 sps:$4 sm:$0xff]  }
 0x158   :  { %2056 = vmatpush1.bf16.msra.mxu0 %v7402_v63  ;;  %3760 = vmatprep.subr.bf16.mxu1 %v7409_v39  ;;  %v7479_v63 = vld [vmem:[#allocation7 + $0x8c0] ss:$8 sps:$4 sm:$0xff]  }
 0x159   :  { %5779 = vmatprep.subr.bf16.mxu0 %v7412_v42  ;;  %v7482_v39 = vld [vmem:[#allocation7 + $0x10c0] ss:$8 sps:$4 sm:$0xff]   ;;  %v7487_v42 = vld [vmem:[#allocation7 + $0x8d4] ss:$8 sps:$4 sm:$0xff]  }
 0x15a   :  { %1894 = vmatmul.mubr.bf16.vlgmr.msra.gmra.mrb[0].mxu1 %v180_v2  ;;  %v7488_v2 = vld [vmem:[#allocation7 + $0x10d0] ss:$8 sps:$4 sm:$0xff]  }
 0x15b   :  { %2058 = vmatmul.mubr.bf16.vlgmr.msra.gmra.mrb[0].mxu0 %v188_v3  ;;  %3761 = vmatpush1.bf16.msra.mxu1 %v7407_v4  ;;  %v7493_v3 = vld [vmem:[#allocation7 + $0x8e4] ss:$8 sps:$4 sm:$0xff]  }
 0x15c   :  { %5780 = vmatpush1.bf16.msra.mxu0 %v7410_v5  ;;  %3762 = vmatprep.subr.bf16.mxu1 %v7415_v6  ;;  %v7496_v4 = vld [vmem:[#allocation7 + $0x10e4] ss:$8 sps:$4 sm:$0xff]   ;;  %v2110_v5 = vcombine.high %v8467_v54, %v8467_v54  ;;  %v4129_v6 = vcombine.high %v8469_v55, %v8469_v55  ;;  %v7497_v54 = vld [vmem:[#allocation7 + $0x8f0] ss:$8 sps:$4 sm:$0xff]  }
 0x15d   :  { %5781 = vmatprep.subr.bf16.mxu0 %v7418_v7  ;;  %3792 = vmatprep.mubr.bf16.mxu1 %v2195_v8  ;;  %v7491_v7 = vld [vmem:[#allocation7 + $0x8e0] ss:$8 sps:$4 sm:$0xff]   ;;  %v7505_v55 = vld [vmem:[#allocation7 + $0x904] ss:$8 sps:$4 sm:$0xff]  }
 0x15e   :  { %5811 = vmatprep.mubr.bf16.mxu0 %v4214_v9  ;;  %v7494_v8 = vld [vmem:[#allocation7 + $0x10e0] ss:$8 sps:$4 sm:$0xff]   ;;  %v7499_v9 = vld [vmem:[#allocation7 + $0x8f4] ss:$8 sps:$4 sm:$0xff]  }
 0x15f   :  { %3763 = vmatpush1.bf16.msra.mxu1 %v7413_v10  ;;  %v7502_v10 = vld [vmem:[#allocation7 + $0x10f4] ss:$8 sps:$4 sm:$0xff]  }
 0x160   :  { %5782 = vmatpush1.bf16.msra.mxu0 %v7416_v11  ;;  %3764 = vmatprep.subr.bf16.mxu1 %v7421_v46  ;;  %v8492_v11 = vrot.slane %v2110_v5, %v8409_v49  ;;  %v8495_v46 = vrot.slane %v4129_v6, %v8409_v49  ;;  %v7574_v5 = vld [vmem:[#allocation7 + $0x11b4] ss:$8 sps:$4 sm:$0xff]   ;;  %v7569_v6 = vld [vmem:[#allocation7 + $0x9b0] ss:$8 sps:$4 sm:$0xff]  }
 0x161   :  { %5783 = vmatprep.subr.bf16.mxu0 %v7424_v47  ;;  %v7500_v47 = vld [vmem:[#allocation7 + $0x10f0] ss:$8 sps:$4 sm:$0xff]  }
 0x163   :  { %3765 = vmatpush1.bf16.msra.mxu1 %v7419_v12  ;;  %v7508_v12 = vld [vmem:[#allocation7 + $0x1104] ss:$8 sps:$4 sm:$0xff]  }
 0x164   :  { %5784 = vmatpush1.bf16.msra.mxu0 %v7422_v13  ;;  %3766 = vmatprep.subr.bf16.mxu1 %v7427_v16  ;;  %v2126_v13 = vcombine.high %v8492_v11, %v8492_v11  ;;  %v4145_v16 = vcombine.high %v8495_v46, %v8495_v46 }
 0x165   :  { %5785 = vmatprep.subr.bf16.mxu0 %v7430_v17  ;;  %v2194_v17 = vpack.c.bf16 %v8473_v60, %v8473_v60  ;;  %v7517_v60 = vld [vmem:[#allocation7 + $0x924] ss:$8 sps:$4 sm:$0xff]  }
 0x167   :  { %3767 = vmatpush1.bf16.msra.mxu1 %v7425_v18  ;;  %v4213_v18 = vpack.c.bf16 %v8477_v61, %v8477_v61  ;;  %v7520_v61 = vld [vmem:[#allocation7 + $0x1124] ss:$8 sps:$4 sm:$0xff]  }
 0x168   :  { %5786 = vmatpush1.bf16.msra.mxu0 %v7428_v19  ;;  %3768 = vmatprep.subr.bf16.mxu1 %v7433_v20  ;;  %v7503_v19 = vld [vmem:[#allocation7 + $0x900] ss:$8 sps:$4 sm:$0xff]  }
 0x169   :  { %5787 = vmatprep.subr.bf16.mxu0 %v7436_v21  ;;  %v7506_v20 = vld [vmem:[#allocation7 + $0x1100] ss:$8 sps:$4 sm:$0xff]   ;;  %v7511_v21 = vld [vmem:[#allocation7 + $0x914] ss:$8 sps:$4 sm:$0xff]  }
 0x16b   :  { %3769 = vmatpush1.bf16.msra.mxu1 %v7431_v22  ;;  %v7514_v22 = vld [vmem:[#allocation7 + $0x1114] ss:$8 sps:$4 sm:$0xff]  }
 0x16c   :  { %5788 = vmatpush1.bf16.msra.mxu0 %v7434_v23  ;;  %3770 = vmatprep.subr.bf16.mxu1 %v7439_v24  ;;  %v2197_v23 = vpack.c.bf16 %v2126_v13, %v2126_v13  ;;  %v4216_v24 = vpack.c.bf16 %v4145_v16, %v4145_v16  ;;  %v7584_v13 = vld [vmem:[#allocation7 + $0x11d0] ss:$8 sps:$4 sm:$0xff]   ;;  %v7589_v16 = vld [vmem:[#allocation7 + $0x9e4] ss:$8 sps:$4 sm:$0xff]  }
 0x16d   :  { %5789 = vmatprep.subr.bf16.mxu0 %v7442_v25  ;;  %v7509_v25 = vld [vmem:[#allocation7 + $0x910] ss:$8 sps:$4 sm:$0xff]  }
 0x16f   :  { %3771 = vmatpush1.bf16.msra.mxu1 %v7437_v26  ;;  %v7512_v26 = vld [vmem:[#allocation7 + $0x1110] ss:$8 sps:$4 sm:$0xff]  }
 0x170   :  { %5790 = vmatpush1.bf16.msra.mxu0 %v7440_v27  ;;  %3772 = vmatprep.subr.bf16.mxu1 %v7445_v28  ;;  %v7515_v27 = vld [vmem:[#allocation7 + $0x920] ss:$8 sps:$4 sm:$0xff]  }
 0x171   :  { %5791 = vmatprep.subr.bf16.mxu0 %v7448_v29  ;;  %v7518_v28 = vld [vmem:[#allocation7 + $0x1120] ss:$8 sps:$4 sm:$0xff]   ;;  %v7523_v29 = vld [vmem:[#allocation7 + $0x934] ss:$8 sps:$4 sm:$0xff]  }
 0x173   :  { %3773 = vmatpush1.bf16.msra.mxu1 %v7443_v30  ;;  %v7526_v30 = vld [vmem:[#allocation7 + $0x1134] ss:$8 sps:$4 sm:$0xff]  }
 0x174   :  { %5792 = vmatpush1.bf16.msra.mxu0 %v7446_v31  ;;  %3774 = vmatprep.subr.bf16.mxu1 %v7451_v32  ;;  %v7521_v31 = vld [vmem:[#allocation7 + $0x930] ss:$8 sps:$4 sm:$0xff]  }
 0x175   :  { %5793 = vmatprep.subr.bf16.mxu0 %v7454_v33  ;;  %v7524_v32 = vld [vmem:[#allocation7 + $0x1130] ss:$8 sps:$4 sm:$0xff]   ;;  %v7529_v33 = vld [vmem:[#allocation7 + $0x944] ss:$8 sps:$4 sm:$0xff]  }
 0x177   :  { %3775 = vmatpush1.bf16.msra.mxu1 %v7449_v34  ;;  %v7532_v34 = vld [vmem:[#allocation7 + $0x1144] ss:$8 sps:$4 sm:$0xff]  }
 0x178   :  { %5794 = vmatpush1.bf16.msra.mxu0 %v7452_v35  ;;  %3776 = vmatprep.subr.bf16.mxu1 %v7457_v37  ;;  %v7527_v35 = vld [vmem:[#allocation7 + $0x940] ss:$8 sps:$4 sm:$0xff]  }
 0x179   :  { %5795 = vmatprep.subr.bf16.mxu0 %v7460_v14  ;;  %v7530_v37 = vld [vmem:[#allocation7 + $0x1140] ss:$8 sps:$4 sm:$0xff]   ;;  %v7535_v14 = vld [vmem:[#allocation7 + $0x954] ss:$8 sps:$4 sm:$0xff]  }
 0x17b   :  { %3777 = vmatpush1.bf16.msra.mxu1 %v7455_v41  ;;  %v7538_v41 = vld [vmem:[#allocation7 + $0x1154] ss:$8 sps:$4 sm:$0xff]  }
 0x17c   :  { %5796 = vmatpush1.bf16.msra.mxu0 %v7458_v15  ;;  %3778 = vmatprep.subr.bf16.mxu1 %v7463_v44  ;;  %v7533_v15 = vld [vmem:[#allocation7 + $0x950] ss:$8 sps:$4 sm:$0xff]  }
 0x17d   :  { %5797 = vmatprep.subr.bf16.mxu0 %v7466_v45  ;;  %v7536_v44 = vld [vmem:[#allocation7 + $0x1150] ss:$8 sps:$4 sm:$0xff]   ;;  %v7541_v45 = vld [vmem:[#allocation7 + $0x964] ss:$8 sps:$4 sm:$0xff]  }
 0x17f   :  { %3779 = vmatpush1.bf16.msra.mxu1 %v7461_v48  ;;  %v7544_v48 = vld [vmem:[#allocation7 + $0x1164] ss:$8 sps:$4 sm:$0xff]  }
 0x180   :  { %5798 = vmatpush1.bf16.msra.mxu0 %v7464_v50  ;;  %3780 = vmatprep.subr.bf16.mxu1 %v7469_v36  ;;  %v7539_v50 = vld [vmem:[#allocation7 + $0x960] ss:$8 sps:$4 sm:$0xff]  }
 0x181   :  { %5799 = vmatprep.subr.bf16.mxu0 %v7472_v40  ;;  %v7542_v36 = vld [vmem:[#allocation7 + $0x1160] ss:$8 sps:$4 sm:$0xff]   ;;  %v7547_v40 = vld [vmem:[#allocation7 + $0x974] ss:$8 sps:$4 sm:$0xff]  }
 0x183   :  { %3781 = vmatpush1.bf16.msra.mxu1 %v7467_v51  ;;  %v7550_v51 = vld [vmem:[#allocation7 + $0x1174] ss:$8 sps:$4 sm:$0xff]  }
 0x184   :  { %5800 = vmatpush1.bf16.msra.mxu0 %v7470_v52  ;;  %3782 = vmatprep.subr.bf16.mxu1 %v7475_v53  ;;  %v7545_v52 = vld [vmem:[#allocation7 + $0x970] ss:$8 sps:$4 sm:$0xff]  }
 0x185   :  { %5801 = vmatprep.subr.bf16.mxu0 %v7478_v56  ;;  %v7548_v53 = vld [vmem:[#allocation7 + $0x1170] ss:$8 sps:$4 sm:$0xff]   ;;  %v7553_v56 = vld [vmem:[#allocation7 + $0x984] ss:$8 sps:$4 sm:$0xff]  }
 0x187   :  { %3783 = vmatpush1.bf16.msra.mxu1 %v7473_v57  ;;  %v7556_v57 = vld [vmem:[#allocation7 + $0x1184] ss:$8 sps:$4 sm:$0xff]  }
 0x188   :  { %5802 = vmatpush1.bf16.msra.mxu0 %v7476_v58  ;;  %3784 = vmatprep.subr.bf16.mxu1 %v7481_v59  ;;  %v7551_v58 = vld [vmem:[#allocation7 + $0x980] ss:$8 sps:$4 sm:$0xff]  }
 0x189   :  { %5803 = vmatprep.subr.bf16.mxu0 %v7484_v62  ;;  %v7554_v59 = vld [vmem:[#allocation7 + $0x1180] ss:$8 sps:$4 sm:$0xff]   ;;  %v7559_v62 = vld [vmem:[#allocation7 + $0x994] ss:$8 sps:$4 sm:$0xff]  }
 0x18b   :  { %3785 = vmatpush1.bf16.msra.mxu1 %v7479_v63  ;;  %v7562_v63 = vld [vmem:[#allocation7 + $0x1194] ss:$8 sps:$4 sm:$0xff]  }
 0x18c   :  { %5804 = vmatpush1.bf16.msra.mxu0 %v7482_v39  ;;  %3786 = vmatprep.subr.bf16.mxu1 %v7487_v42  ;;  %v7557_v39 = vld [vmem:[#allocation7 + $0x990] ss:$8 sps:$4 sm:$0xff]  }
 0x18d   :  { %5805 = vmatprep.subr.bf16.mxu0 %v7490_v0  ;;  %v7560_v42 = vld [vmem:[#allocation7 + $0x1190] ss:$8 sps:$4 sm:$0xff]   ;;  %v7565_v0 = vld [vmem:[#allocation7 + $0x9a4] ss:$8 sps:$4 sm:$0xff]  }
 0x18f   :  { %3787 = vmatpush1.bf16.msra.mxu1 %v7485_v1  ;;  %v7568_v1 = vld [vmem:[#allocation7 + $0x11a4] ss:$8 sps:$4 sm:$0xff]  }
 0x190   :  { %5806 = vmatpush1.bf16.msra.mxu0 %v7488_v2  ;;  %3788 = vmatprep.subr.bf16.mxu1 %v7493_v3  ;;  %v7563_v2 = vld [vmem:[#allocation7 + $0x9a0] ss:$8 sps:$4 sm:$0xff]  }
 0x191   :  { %5807 = vmatprep.subr.bf16.mxu0 %v7496_v4  ;;  %v7566_v3 = vld [vmem:[#allocation7 + $0x11a0] ss:$8 sps:$4 sm:$0xff]   ;;  %v7571_v4 = vld [vmem:[#allocation7 + $0x9b4] ss:$8 sps:$4 sm:$0xff]  }
 0x193   :  { %3789 = vmatpush1.bf16.msra.mxu1 %v7491_v7  ;;  %v7572_v7 = vld [vmem:[#allocation7 + $0x11b0] ss:$8 sps:$4 sm:$0xff]  }
 0x194   :  { %5808 = vmatpush1.bf16.msra.mxu0 %v7494_v8  ;;  %3790 = vmatprep.subr.bf16.mxu1 %v7499_v9  ;;  %v7577_v8 = vld [vmem:[#allocation7 + $0x9c4] ss:$8 sps:$4 sm:$0xff]  }
 0x195   :  { %5809 = vmatprep.subr.bf16.mxu0 %v7502_v10  ;;  %v7580_v9 = vld [vmem:[#allocation7 + $0x11c4] ss:$8 sps:$4 sm:$0xff]   ;;  %v7575_v10 = vld [vmem:[#allocation7 + $0x9c0] ss:$8 sps:$4 sm:$0xff]  }
 0x197   :  { %3791 = vmatpush1.bf16.msra.mxu1 %v7497_v54  ;;  %v7578_v54 = vld [vmem:[#allocation7 + $0x11c0] ss:$8 sps:$4 sm:$0xff]  }
 0x198   :  { %5810 = vmatpush1.bf16.msra.mxu0 %v7500_v47  ;;  %3801 = vmatprep.subr.bf16.mxu1 %v7505_v55  ;;  %v7583_v47 = vld [vmem:[#allocation7 + $0x9d4] ss:$8 sps:$4 sm:$0xff]  }
 0x199   :  { %5820 = vmatprep.subr.bf16.mxu0 %v7508_v12  ;;  %v7586_v55 = vld [vmem:[#allocation7 + $0x11d4] ss:$8 sps:$4 sm:$0xff]   ;;  %v7581_v12 = vld [vmem:[#allocation7 + $0x9d0] ss:$8 sps:$4 sm:$0xff]  }
 0x19a   :  { %3793 = vmatmul.mubr.bf16.vlgmr.msra.gmra.mrb[4].mxu1 %v2194_v17  ;;  %v7592_v17 = vld [vmem:[#allocation7 + $0x11e4] ss:$8 sps:$4 sm:$0xff]  }
 0x19b   :  { %5812 = vmatmul.mubr.bf16.vlgmr.msra.gmra.mrb[4].mxu0 %v4213_v18  ;;  %3802 = vmatpush1.bf16.msra.mxu1 %v7503_v19  ;;  %v8505_v18 = vld [vmem:[#allocation4 + $0x8] sm:$0xff] }
 0x19c   :  { %5821 = vmatpush1.bf16.msra.mxu0 %v7506_v20  ;;  %3803 = vmatprep.subr.bf16.mxu1 %v7511_v21  ;;  %v8507_v19 = vld [vmem:[#allocation6 + $0x8] sm:$0xff] }
 0x19d   :  { %5822 = vmatprep.subr.bf16.mxu0 %v7514_v22  ;;  %3833 = vmatprep.mubr.bf16.mxu1 %v2197_v23  ;;  %v7587_v20 = vld [vmem:[#allocation7 + $0x9e0] ss:$8 sps:$4 sm:$0xff]   ;;  %v7595_v22 = vld [vmem:[#allocation7 + $0x9f4] ss:$8 sps:$4 sm:$0xff]  }
 0x19e   :  { %5852 = vmatprep.mubr.bf16.mxu0 %v4216_v24  ;;  %v7590_v21 = vld [vmem:[#allocation7 + $0x11e0] ss:$8 sps:$4 sm:$0xff]   ;;  %v7598_v23 = vld [vmem:[#allocation7 + $0x11f4] ss:$8 sps:$4 sm:$0xff]   ;;  %v8511_v24 = vrot.slane %v8505_v18, %v8409_v49 }
 0x19f   :  { %3804 = vmatpush1.bf16.msra.mxu1 %v7509_v25  ;;  %v8515_v25 = vrot.slane %v8507_v19, %v8409_v49 }
 0x1a0   :  { %5823 = vmatpush1.bf16.msra.mxu0 %v7512_v26  ;;  %3805 = vmatprep.subr.bf16.mxu1 %v7517_v60  ;;  %v7593_v26 = vld [vmem:[#allocation7 + $0x9f0] ss:$8 sps:$4 sm:$0xff]  }
 0x1a1   :  { %5824 = vmatprep.subr.bf16.mxu0 %v7520_v61  ;;  %v7596_v60 = vld [vmem:[#allocation7 + $0x11f0] ss:$8 sps:$4 sm:$0xff]   ;;  %v7602_v61 = vld [vmem:[#allocation7 + $0xa04] ss:$8 sps:$4 sm:$0xff]  }
 0x1a3   :  { %3806 = vmatpush1.bf16.msra.mxu1 %v7515_v27  ;;  %v7606_v27 = vld [vmem:[#allocation7 + $0x1204] ss:$8 sps:$4 sm:$0xff]  }
 0x1a4   :  { %5825 = vmatpush1.bf16.msra.mxu0 %v7518_v28  ;;  %3807 = vmatprep.subr.bf16.mxu1 %v7523_v29  ;;  %v2142_v28 = vcombine.high %v8511_v24, %v8511_v24  ;;  %v4161_v29 = vcombine.high %v8515_v25, %v8515_v25 }
 0x1a5   :  { %5826 = vmatprep.subr.bf16.mxu0 %v7526_v30  ;;  %v2196_v30 = vpack.c.bf16 %v8492_v11, %v8492_v11  ;;  %v7615_v11 = vld [vmem:[#allocation7 + $0xa24] ss:$8 sps:$4 sm:$0xff]  }
 0x1a7   :  { %3808 = vmatpush1.bf16.msra.mxu1 %v7521_v31  ;;  %v4215_v31 = vpack.c.bf16 %v8495_v46, %v8495_v46  ;;  %v7618_v46 = vld [vmem:[#allocation7 + $0x1224] ss:$8 sps:$4 sm:$0xff]  }
 0x1a8   :  { %5827 = vmatpush1.bf16.msra.mxu0 %v7524_v32  ;;  %3809 = vmatprep.subr.bf16.mxu1 %v7529_v33  ;;  %v7600_v32 = vld [vmem:[#allocation7 + $0xa00] ss:$8 sps:$4 sm:$0xff]  }
 0x1a9   :  { %5828 = vmatprep.subr.bf16.mxu0 %v7532_v34  ;;  %v7604_v33 = vld [vmem:[#allocation7 + $0x1200] ss:$8 sps:$4 sm:$0xff]   ;;  %v7609_v34 = vld [vmem:[#allocation7 + $0xa14] ss:$8 sps:$4 sm:$0xff]  }
 0x1ab   :  { %3810 = vmatpush1.bf16.msra.mxu1 %v7527_v35  ;;  %v7612_v35 = vld [vmem:[#allocation7 + $0x1214] ss:$8 sps:$4 sm:$0xff]  }
 0x1ac   :  { %5829 = vmatpush1.bf16.msra.mxu0 %v7530_v37  ;;  %3811 = vmatprep.subr.bf16.mxu1 %v7535_v14  ;;  %v2199_v37 = vpack.c.bf16 %v2142_v28, %v2142_v28  ;;  %v4218_v14 = vpack.c.bf16 %v4161_v29, %v4161_v29  ;;  %v7684_v28 = vld [vmem:[#allocation7 + $0x12d4] ss:$8 sps:$4 sm:$0xff]   ;;  %v7679_v29 = vld [vmem:[#allocation7 + $0xad0] ss:$8 sps:$4 sm:$0xff]  }
 0x1ad   :  { %5830 = vmatprep.subr.bf16.mxu0 %v7538_v41  ;;  %v7607_v41 = vld [vmem:[#allocation7 + $0xa10] ss:$8 sps:$4 sm:$0xff]  }
 0x1af   :  { %3812 = vmatpush1.bf16.msra.mxu1 %v7533_v15  ;;  %v7610_v15 = vld [vmem:[#allocation7 + $0x1210] ss:$8 sps:$4 sm:$0xff]  }
 0x1b0   :  { %5831 = vmatpush1.bf16.msra.mxu0 %v7536_v44  ;;  %3813 = vmatprep.subr.bf16.mxu1 %v7541_v45  ;;  %v7613_v44 = vld [vmem:[#allocation7 + $0xa20] ss:$8 sps:$4 sm:$0xff]  }
 0x1b1   :  { %5832 = vmatprep.subr.bf16.mxu0 %v7544_v48  ;;  %v7616_v45 = vld [vmem:[#allocation7 + $0x1220] ss:$8 sps:$4 sm:$0xff]   ;;  %v7621_v48 = vld [vmem:[#allocation7 + $0xa34] ss:$8 sps:$4 sm:$0xff]  }
 0x1b3   :  { %3814 = vmatpush1.bf16.msra.mxu1 %v7539_v50  ;;  %v7624_v50 = vld [vmem:[#allocation7 + $0x1234] ss:$8 sps:$4 sm:$0xff]  }
 0x1b4   :  { %5833 = vmatpush1.bf16.msra.mxu0 %v7542_v36  ;;  %3815 = vmatprep.subr.bf16.mxu1 %v7547_v40  ;;  %v7619_v36 = vld [vmem:[#allocation7 + $0xa30] ss:$8 sps:$4 sm:$0xff]  }
 0x1b5   :  { %5834 = vmatprep.subr.bf16.mxu0 %v7550_v51  ;;  %v7622_v40 = vld [vmem:[#allocation7 + $0x1230] ss:$8 sps:$4 sm:$0xff]   ;;  %v7627_v51 = vld [vmem:[#allocation7 + $0xa44] ss:$8 sps:$4 sm:$0xff]  }
 0x1b7   :  { %3816 = vmatpush1.bf16.msra.mxu1 %v7545_v52  ;;  %v7630_v52 = vld [vmem:[#allocation7 + $0x1244] ss:$8 sps:$4 sm:$0xff]  }
 0x1b8   :  { %5835 = vmatpush1.bf16.msra.mxu0 %v7548_v53  ;;  %3817 = vmatprep.subr.bf16.mxu1 %v7553_v56  ;;  %v7625_v53 = vld [vmem:[#allocation7 + $0xa40] ss:$8 sps:$4 sm:$0xff]  }
 0x1b9   :  { %5836 = vmatprep.subr.bf16.mxu0 %v7556_v57  ;;  %v7628_v56 = vld [vmem:[#allocation7 + $0x1240] ss:$8 sps:$4 sm:$0xff]   ;;  %v7633_v57 = vld [vmem:[#allocation7 + $0xa54] ss:$8 sps:$4 sm:$0xff]  }
 0x1bb   :  { %3818 = vmatpush1.bf16.msra.mxu1 %v7551_v58  ;;  %v7636_v58 = vld [vmem:[#allocation7 + $0x1254] ss:$8 sps:$4 sm:$0xff]  }
 0x1bc   :  { %5837 = vmatpush1.bf16.msra.mxu0 %v7554_v59  ;;  %3819 = vmatprep.subr.bf16.mxu1 %v7559_v62  ;;  %v7631_v59 = vld [vmem:[#allocation7 + $0xa50] ss:$8 sps:$4 sm:$0xff]  }
 0x1bd   :  { %5838 = vmatprep.subr.bf16.mxu0 %v7562_v63  ;;  %v7634_v62 = vld [vmem:[#allocation7 + $0x1250] ss:$8 sps:$4 sm:$0xff]   ;;  %v7639_v63 = vld [vmem:[#allocation7 + $0xa64] ss:$8 sps:$4 sm:$0xff]  }
 0x1bf   :  { %3820 = vmatpush1.bf16.msra.mxu1 %v7557_v39  ;;  %v7642_v39 = vld [vmem:[#allocation7 + $0x1264] ss:$8 sps:$4 sm:$0xff]  }
 0x1c0   :  { %5839 = vmatpush1.bf16.msra.mxu0 %v7560_v42  ;;  %3821 = vmatprep.subr.bf16.mxu1 %v7565_v0  ;;  %v7637_v42 = vld [vmem:[#allocation7 + $0xa60] ss:$8 sps:$4 sm:$0xff]  }
 0x1c1   :  { %5840 = vmatprep.subr.bf16.mxu0 %v7568_v1  ;;  %v7640_v0 = vld [vmem:[#allocation7 + $0x1260] ss:$8 sps:$4 sm:$0xff]   ;;  %v7645_v1 = vld [vmem:[#allocation7 + $0xa74] ss:$8 sps:$4 sm:$0xff]  }
 0x1c3   :  { %3822 = vmatpush1.bf16.msra.mxu1 %v7563_v2  ;;  %v7648_v2 = vld [vmem:[#allocation7 + $0x1274] ss:$8 sps:$4 sm:$0xff]  }
 0x1c4   :  { %5841 = vmatpush1.bf16.msra.mxu0 %v7566_v3  ;;  %3823 = vmatprep.subr.bf16.mxu1 %v7571_v4  ;;  %v7643_v3 = vld [vmem:[#allocation7 + $0xa70] ss:$8 sps:$4 sm:$0xff]  }
 0x1c5   :  { %5842 = vmatprep.subr.bf16.mxu0 %v7574_v5  ;;  %v7646_v4 = vld [vmem:[#allocation7 + $0x1270] ss:$8 sps:$4 sm:$0xff]   ;;  %v7651_v5 = vld [vmem:[#allocation7 + $0xa84] ss:$8 sps:$4 sm:$0xff]  }
 0x1c7   :  { %3824 = vmatpush1.bf16.msra.mxu1 %v7569_v6  ;;  %v7654_v6 = vld [vmem:[#allocation7 + $0x1284] ss:$8 sps:$4 sm:$0xff]  }
 0x1c8   :  { %5843 = vmatpush1.bf16.msra.mxu0 %v7572_v7  ;;  %3825 = vmatprep.subr.bf16.mxu1 %v7577_v8  ;;  %v7649_v7 = vld [vmem:[#allocation7 + $0xa80] ss:$8 sps:$4 sm:$0xff]  }
 0x1c9   :  { %5844 = vmatprep.subr.bf16.mxu0 %v7580_v9  ;;  %v7652_v8 = vld [vmem:[#allocation7 + $0x1280] ss:$8 sps:$4 sm:$0xff]   ;;  %v7657_v9 = vld [vmem:[#allocation7 + $0xa94] ss:$8 sps:$4 sm:$0xff]  }
 0x1cb   :  { %3826 = vmatpush1.bf16.msra.mxu1 %v7575_v10  ;;  %v7660_v10 = vld [vmem:[#allocation7 + $0x1294] ss:$8 sps:$4 sm:$0xff]  }
 0x1cc   :  { %5845 = vmatpush1.bf16.msra.mxu0 %v7578_v54  ;;  %3827 = vmatprep.subr.bf16.mxu1 %v7583_v47  ;;  %v7655_v54 = vld [vmem:[#allocation7 + $0xa90] ss:$8 sps:$4 sm:$0xff]  }
 0x1cd   :  { %5846 = vmatprep.subr.bf16.mxu0 %v7586_v55  ;;  %v7658_v47 = vld [vmem:[#allocation7 + $0x1290] ss:$8 sps:$4 sm:$0xff]   ;;  %v7663_v55 = vld [vmem:[#allocation7 + $0xaa4] ss:$8 sps:$4 sm:$0xff]  }
 0x1cf   :  { %3828 = vmatpush1.bf16.msra.mxu1 %v7581_v12  ;;  %v7666_v12 = vld [vmem:[#allocation7 + $0x12a4] ss:$8 sps:$4 sm:$0xff]  }
 0x1d0   :  { %5847 = vmatpush1.bf16.msra.mxu0 %v7584_v13  ;;  %3829 = vmatprep.subr.bf16.mxu1 %v7589_v16  ;;  %v7661_v13 = vld [vmem:[#allocation7 + $0xaa0] ss:$8 sps:$4 sm:$0xff]  }
 0x1d1   :  { %5848 = vmatprep.subr.bf16.mxu0 %v7592_v17  ;;  %v7664_v16 = vld [vmem:[#allocation7 + $0x12a0] ss:$8 sps:$4 sm:$0xff]   ;;  %v7669_v17 = vld [vmem:[#allocation7 + $0xab4] ss:$8 sps:$4 sm:$0xff]  }
 0x1d3   :  { %3830 = vmatpush1.bf16.msra.mxu1 %v7587_v20  ;;  %v7672_v20 = vld [vmem:[#allocation7 + $0x12b4] ss:$8 sps:$4 sm:$0xff]  }
 0x1d4   :  { %5849 = vmatpush1.bf16.msra.mxu0 %v7590_v21  ;;  %3831 = vmatprep.subr.bf16.mxu1 %v7595_v22  ;;  %v7667_v21 = vld [vmem:[#allocation7 + $0xab0] ss:$8 sps:$4 sm:$0xff]  }
 0x1d5   :  { %5850 = vmatprep.subr.bf16.mxu0 %v7598_v23  ;;  %v7670_v22 = vld [vmem:[#allocation7 + $0x12b0] ss:$8 sps:$4 sm:$0xff]   ;;  %v7675_v23 = vld [vmem:[#allocation7 + $0xac4] ss:$8 sps:$4 sm:$0xff]  }
 0x1d7   :  { %3832 = vmatpush1.bf16.msra.mxu1 %v7593_v26  ;;  %v7678_v26 = vld [vmem:[#allocation7 + $0x12c4] ss:$8 sps:$4 sm:$0xff]  }
 0x1d8   :  { %5851 = vmatpush1.bf16.msra.mxu0 %v7596_v60  ;;  %3842 = vmatprep.subr.bf16.mxu1 %v7602_v61  ;;  %v7673_v60 = vld [vmem:[#allocation7 + $0xac0] ss:$8 sps:$4 sm:$0xff]  }
 0x1d9   :  { %5861 = vmatprep.subr.bf16.mxu0 %v7606_v27  ;;  %v7676_v61 = vld [vmem:[#allocation7 + $0x12c0] ss:$8 sps:$4 sm:$0xff]   ;;  %v7681_v27 = vld [vmem:[#allocation7 + $0xad4] ss:$8 sps:$4 sm:$0xff]  }
 0x1da   :  { %3834 = vmatmul.mubr.bf16.vlgmr.msra.gmra.mrb[4].mxu1 %v2196_v30  ;;  %v7682_v30 = vld [vmem:[#allocation7 + $0x12d0] ss:$8 sps:$4 sm:$0xff]  }
 0x1db   :  { %5853 = vmatmul.mubr.bf16.vlgmr.msra.gmra.mrb[4].mxu0 %v4215_v31  ;;  %3843 = vmatpush1.bf16.msra.mxu1 %v7600_v32  ;;  %v7687_v31 = vld [vmem:[#allocation7 + $0xae4] ss:$8 sps:$4 sm:$0xff]  }
 0x1dc   :  { %5862 = vmatpush1.bf16.msra.mxu0 %v7604_v33  ;;  %3844 = vmatprep.subr.bf16.mxu1 %v7609_v34  ;;  %v7690_v32 = vld [vmem:[#allocation7 + $0x12e4] ss:$8 sps:$4 sm:$0xff]   ;;  %v2127_v33 = vcombine.high %v8505_v18, %v8505_v18  ;;  %v4146_v34 = vcombine.high %v8507_v19, %v8507_v19  ;;  %v7691_v18 = vld [vmem:[#allocation7 + $0xaf0] ss:$8 sps:$4 sm:$0xff]  }
 0x1dd   :  { %5863 = vmatprep.subr.bf16.mxu0 %v7612_v35  ;;  %3874 = vmatprep.mubr.bf16.mxu1 %v2199_v37  ;;  %v7685_v35 = vld [vmem:[#allocation7 + $0xae0] ss:$8 sps:$4 sm:$0xff]   ;;  %v7699_v19 = vld [vmem:[#allocation7 + $0xb04] ss:$8 sps:$4 sm:$0xff]  }
 0x1de   :  { %5893 = vmatprep.mubr.bf16.mxu0 %v4218_v14  ;;  %v7688_v37 = vld [vmem:[#allocation7 + $0x12e0] ss:$8 sps:$4 sm:$0xff]   ;;  %v7693_v14 = vld [vmem:[#allocation7 + $0xaf4] ss:$8 sps:$4 sm:$0xff]  }
 0x1df   :  { %3845 = vmatpush1.bf16.msra.mxu1 %v7607_v41  ;;  %v7696_v41 = vld [vmem:[#allocation7 + $0x12f4] ss:$8 sps:$4 sm:$0xff]  }
 0x1e0   :  { %5864 = vmatpush1.bf16.msra.mxu0 %v7610_v15  ;;  %3846 = vmatprep.subr.bf16.mxu1 %v7615_v11  ;;  %v8530_v15 = vrot.slane %v2127_v33, %v8409_v49  ;;  %v8533_v11 = vrot.slane %v4146_v34, %v8409_v49 }
 0x1e1   :  { %5865 = vmatprep.subr.bf16.mxu0 %v7618_v46  ;;  %v7694_v46 = vld [vmem:[#allocation7 + $0x12f0] ss:$8 sps:$4 sm:$0xff]  }
 0x1e3   :  { %3847 = vmatpush1.bf16.msra.mxu1 %v7613_v44  ;;  %v7702_v44 = vld [vmem:[#allocation7 + $0x1304] ss:$8 sps:$4 sm:$0xff]  }
 0x1e4   :  { %5866 = vmatpush1.bf16.msra.mxu0 %v7616_v45  ;;  %3848 = vmatprep.subr.bf16.mxu1 %v7621_v48  ;;  %v2143_v45 = vcombine.high %v8530_v15, %v8530_v15  ;;  %v4162_v48 = vcombine.high %v8533_v11, %v8533_v11 }
 0x1e5   :  { %5867 = vmatprep.subr.bf16.mxu0 %v7624_v50  ;;  %v2198_v50 = vpack.c.bf16 %v8511_v24, %v8511_v24  ;;  %v7711_v24 = vld [vmem:[#allocation7 + $0xb24] ss:$8 sps:$4 sm:$0xff]  }
 0x1e7   :  { %3849 = vmatpush1.bf16.msra.mxu1 %v7619_v36  ;;  %v4217_v36 = vpack.c.bf16 %v8515_v25, %v8515_v25  ;;  %v7714_v25 = vld [vmem:[#allocation7 + $0x1324] ss:$8 sps:$4 sm:$0xff]  }
 0x1e8   :  { %5868 = vmatpush1.bf16.msra.mxu0 %v7622_v40  ;;  %3850 = vmatprep.subr.bf16.mxu1 %v7627_v51  ;;  %v7697_v40 = vld [vmem:[#allocation7 + $0xb00] ss:$8 sps:$4 sm:$0xff]  }
 0x1e9   :  { %5869 = vmatprep.subr.bf16.mxu0 %v7630_v52  ;;  %v7700_v51 = vld [vmem:[#allocation7 + $0x1300] ss:$8 sps:$4 sm:$0xff]   ;;  %v7705_v52 = vld [vmem:[#allocation7 + $0xb14] ss:$8 sps:$4 sm:$0xff]  }
 0x1eb   :  { %3851 = vmatpush1.bf16.msra.mxu1 %v7625_v53  ;;  %v7708_v53 = vld [vmem:[#allocation7 + $0x1314] ss:$8 sps:$4 sm:$0xff]  }
 0x1ec   :  { %5870 = vmatpush1.bf16.msra.mxu0 %v7628_v56  ;;  %3852 = vmatprep.subr.bf16.mxu1 %v7633_v57  ;;  %v2201_v56 = vpack.c.bf16 %v2143_v45, %v2143_v45  ;;  %v4220_v57 = vpack.c.bf16 %v4162_v48, %v4162_v48  ;;  %v7747_v45 = vld [vmem:[#allocation7 + $0xb84] ss:$8 sps:$4 sm:$0xff]  }
 0x1ed   :  { %5871 = vmatprep.subr.bf16.mxu0 %v7636_v58  ;;  %v7703_v58 = vld [vmem:[#allocation7 + $0xb10] ss:$8 sps:$4 sm:$0xff]   ;;  %v7750_v48 = vld [vmem:[#allocation7 + $0x1384] ss:$8 sps:$4 sm:$0xff]  }
 0x1ef   :  { %3853 = vmatpush1.bf16.msra.mxu1 %v7631_v59  ;;  %v7706_v59 = vld [vmem:[#allocation7 + $0x1310] ss:$8 sps:$4 sm:$0xff]  }
 0x1f0   :  { %5872 = vmatpush1.bf16.msra.mxu0 %v7634_v62  ;;  %3854 = vmatprep.subr.bf16.mxu1 %v7639_v63  ;;  %v7709_v62 = vld [vmem:[#allocation7 + $0xb20] ss:$8 sps:$4 sm:$0xff]  }
 0x1f1   :  { %5873 = vmatprep.subr.bf16.mxu0 %v7642_v39  ;;  %v7712_v63 = vld [vmem:[#allocation7 + $0x1320] ss:$8 sps:$4 sm:$0xff]   ;;  %v7717_v39 = vld [vmem:[#allocation7 + $0xb34] ss:$8 sps:$4 sm:$0xff]  }
 0x1f3   :  { %3855 = vmatpush1.bf16.msra.mxu1 %v7637_v42  ;;  %v7720_v42 = vld [vmem:[#allocation7 + $0x1334] ss:$8 sps:$4 sm:$0xff]  }
 0x1f4   :  { %5874 = vmatpush1.bf16.msra.mxu0 %v7640_v0  ;;  %3856 = vmatprep.subr.bf16.mxu1 %v7645_v1  ;;  %v7715_v0 = vld [vmem:[#allocation7 + $0xb30] ss:$8 sps:$4 sm:$0xff]  }
 0x1f5   :  { %5875 = vmatprep.subr.bf16.mxu0 %v7648_v2  ;;  %v7718_v1 = vld [vmem:[#allocation7 + $0x1330] ss:$8 sps:$4 sm:$0xff]   ;;  %v7723_v2 = vld [vmem:[#allocation7 + $0xb44] ss:$8 sps:$4 sm:$0xff]  }
 0x1f7   :  { %3857 = vmatpush1.bf16.msra.mxu1 %v7643_v3  ;;  %v7726_v3 = vld [vmem:[#allocation7 + $0x1344] ss:$8 sps:$4 sm:$0xff]  }
 0x1f8   :  { %5876 = vmatpush1.bf16.msra.mxu0 %v7646_v4  ;;  %3858 = vmatprep.subr.bf16.mxu1 %v7651_v5  ;;  %v7721_v4 = vld [vmem:[#allocation7 + $0xb40] ss:$8 sps:$4 sm:$0xff]   ;;  %v8544_v5 = vsub.s32 0, %v8406_v43 }
 0x1f9   :  { %5877 = vmatprep.subr.bf16.mxu0 %v7654_v6  ;;  %v7724_v6 = vld [vmem:[#allocation7 + $0x1340] ss:$8 sps:$4 sm:$0xff]  }
 0x1fb   :  { %3859 = vmatpush1.bf16.msra.mxu1 %v7649_v7  ;;  %v446_v7 = vld [vmem:[#allocation9] sm:$0x3] }
 0x1fc   :  { %5878 = vmatpush1.bf16.msra.mxu0 %v7652_v8  ;;  %3860 = vmatprep.subr.bf16.mxu1 %v7657_v9  ;;  %v8547_v8 = vsub.s32 1, %v8406_v43  ;;  %v7729_v9 = vld [vmem:[#allocation7 + $0xb54] ss:$8 sps:$4 sm:$0xff]  }
 0x1fd   :  { %5879 = vmatprep.subr.bf16.mxu0 %v7660_v10  ;;  %v7732_v10 = vld [vmem:[#allocation7 + $0x1354] ss:$8 sps:$4 sm:$0xff]  }
 0x1ff   :  { %3861 = vmatpush1.bf16.msra.mxu1 %v7655_v54  ;;  %v451_v54 = vrot.slane %v446_v7, %v8544_v5 }
 0x200   :  { %5880 = vmatpush1.bf16.msra.mxu0 %v7658_v47  ;;  %3862 = vmatprep.subr.bf16.mxu1 %v7663_v55  ;;  %v455_v47 = vrot.slane %v446_v7, %v8547_v8  ;;  %v8307_v55 = vmov 1966171168   ;;  %v7777_v7 = vld [vmem:[#allocation7 + $0xbd4] ss:$8 sps:$4 sm:$0xff]  }
 0x201   :  { %5881 = vmatprep.subr.bf16.mxu0 %v7666_v12  ;;  %v2072_v12 = vunpack.c.l.s4 %v8307_v55  ;;  %v7786_v55 = vld [vmem:[#allocation7 + $0x13e4] ss:$8 sps:$4 sm:$0xff]  }
 0x203   :  { %3863 = vmatpush1.bf16.msra.mxu1 %v7661_v13  ;;  %v7727_v13 = vld [vmem:[#allocation7 + $0xb50] ss:$8 sps:$4 sm:$0xff]  }
 0x204   :  { %5882 = vmatpush1.bf16.msra.mxu0 %v7664_v16  ;;  %3864 = vmatprep.subr.bf16.mxu1 %v7669_v17  ;;  %v7730_v16 = vld [vmem:[#allocation7 + $0x1350] ss:$8 sps:$4 sm:$0xff]   ;;  %v7735_v17 = vld [vmem:[#allocation7 + $0xb64] ss:$8 sps:$4 sm:$0xff]  }
 0x205   :  { %5883 = vmatprep.subr.bf16.mxu0 %v7672_v20  ;;  %v7738_v20 = vld [vmem:[#allocation7 + $0x1364] ss:$8 sps:$4 sm:$0xff]  }
 0x207   :  { %3865 = vmatpush1.bf16.msra.mxu1 %v7667_v21 }
 0x208   :  { %5884 = vmatpush1.bf16.msra.mxu0 %v7670_v22  ;;  %3866 = vmatprep.subr.bf16.mxu1 %v7675_v23 }
 0x209   :  { %5885 = vmatprep.subr.bf16.mxu0 %v7678_v26 }
 0x20b   :  { %3867 = vmatpush1.bf16.msra.mxu1 %v7673_v60 }
 0x20c   :  { %5886 = vmatpush1.bf16.msra.mxu0 %v7676_v61  ;;  %3868 = vmatprep.subr.bf16.mxu1 %v7681_v27  ;;  %v2073_v27 = vunpack.c.0.s8 %v2072_v12  ;;  %v8572_v12 = vld [vmem:[#allocation4 + $0x10] sm:$0xff] }
 0x20d   :  { %5887 = vmatprep.subr.bf16.mxu0 %v7684_v28 }
 0x20f   :  { %3869 = vmatpush1.bf16.msra.mxu1 %v7679_v29 }
 0x210   :  { %5888 = vmatpush1.bf16.msra.mxu0 %v7682_v30  ;;  %3870 = vmatprep.subr.bf16.mxu1 %v7687_v31  ;;  %v7733_v30 = vld [vmem:[#allocation7 + $0xb60] ss:$8 sps:$4 sm:$0xff]  }
 0x211   :  { %5889 = vmatprep.subr.bf16.mxu0 %v7690_v32  ;;  %v7736_v31 = vld [vmem:[#allocation7 + $0x1360] ss:$8 sps:$4 sm:$0xff]  }
 0x213   :  { %3871 = vmatpush1.bf16.msra.mxu1 %v7685_v35  ;;  %v7741_v35 = vld [vmem:[#allocation7 + $0xb74] ss:$8 sps:$4 sm:$0xff]  }
 0x214   :  { %5890 = vmatpush1.bf16.msra.mxu0 %v7688_v37  ;;  %3872 = vmatprep.subr.bf16.mxu1 %v7693_v14  ;;  %v7744_v37 = vld [vmem:[#allocation7 + $0x1374] ss:$8 sps:$4 sm:$0xff]  }
 0x215   :  { %5891 = vmatprep.subr.bf16.mxu0 %v7696_v41 }
 0x217   :  { %3873 = vmatpush1.bf16.msra.mxu1 %v7691_v18 }
 0x218   :  { %5892 = vmatpush1.bf16.msra.mxu0 %v7694_v46  ;;  %3883 = vmatprep.subr.bf16.mxu1 %v7699_v19  ;;  %v8552_v46 = vsub.s32 %v2073_v27, %v8406_v43  ;;  %v7739_v19 = vld [vmem:[#allocation7 + $0xb70] ss:$8 sps:$4 sm:$0xff]   ;;  %v7753_v43 = vld [vmem:[#allocation7 + $0xb94] ss:$8 sps:$4 sm:$0xff]   ;;  %v7798_v27 = vld [vmem:[#allocation7 + $0x1404] ss:$8 sps:$4 sm:$0xff]  }
 0x219   :  { %5902 = vmatprep.subr.bf16.mxu0 %v7702_v44  ;;  %v7742_v44 = vld [vmem:[#allocation7 + $0x1370] ss:$8 sps:$4 sm:$0xff]  }
 0x21a   :  { %3875 = vmatmul.mubr.bf16.vlgmr.msra.gmra.mrb[4].mxu1 %v2198_v50 }
 0x21b   :  { %5894 = vmatmul.mubr.bf16.vlgmr.msra.gmra.mrb[4].mxu0 %v4217_v36  ;;  %3884 = vmatpush1.bf16.msra.mxu1 %v7697_v40  ;;  %v7745_v40 = vld [vmem:[#allocation7 + $0xb80] ss:$8 sps:$4 sm:$0xff]  }
 0x21c   :  { %5903 = vmatpush1.bf16.msra.mxu0 %v7700_v51  ;;  %3885 = vmatprep.subr.bf16.mxu1 %v7705_v52  ;;  %v7748_v51 = vld [vmem:[#allocation7 + $0x1380] ss:$8 sps:$4 sm:$0xff]  }
 0x21d   :  { %5904 = vmatprep.subr.bf16.mxu0 %v7708_v53  ;;  %3915 = vmatprep.mubr.bf16.mxu1 %v2201_v56  ;;  %v7756_v53 = vld [vmem:[#allocation7 + $0x1394] ss:$8 sps:$4 sm:$0xff]  }
 0x21e   :  { %5934 = vmatprep.mubr.bf16.mxu0 %v4220_v57 }
 0x21f   :  { %3886 = vmatpush1.bf16.msra.mxu1 %v7703_v58 }
 0x220   :  { %5905 = vmatpush1.bf16.msra.mxu0 %v7706_v59  ;;  %3887 = vmatprep.subr.bf16.mxu1 %v7711_v24  ;;  %v7754_v59 = vld [vmem:[#allocation7 + $0x1390] ss:$8 sps:$4 sm:$0xff]   ;;  %v7759_v24 = vld [vmem:[#allocation7 + $0xba4] ss:$8 sps:$4 sm:$0xff]  }
 0x221   :  { %5906 = vmatprep.subr.bf16.mxu0 %v7714_v25  ;;  %v7762_v25 = vld [vmem:[#allocation7 + $0x13a4] ss:$8 sps:$4 sm:$0xff]  }
 0x223   :  { %3888 = vmatpush1.bf16.msra.mxu1 %v7709_v62  ;;  %v7757_v62 = vld [vmem:[#allocation7 + $0xba0] ss:$8 sps:$4 sm:$0xff]  }
 0x224   :  { %5907 = vmatpush1.bf16.msra.mxu0 %v7712_v63  ;;  %3889 = vmatprep.subr.bf16.mxu1 %v7717_v39  ;;  %v7760_v63 = vld [vmem:[#allocation7 + $0x13a0] ss:$8 sps:$4 sm:$0xff]   ;;  %v7765_v39 = vld [vmem:[#allocation7 + $0xbb4] ss:$8 sps:$4 sm:$0xff]  }
 0x225   :  { %5908 = vmatprep.subr.bf16.mxu0 %v7720_v42  ;;  %v7768_v42 = vld [vmem:[#allocation7 + $0x13b4] ss:$8 sps:$4 sm:$0xff]  }
 0x227   :  { %3890 = vmatpush1.bf16.msra.mxu1 %v7715_v0  ;;  %v7763_v0 = vld [vmem:[#allocation7 + $0xbb0] ss:$8 sps:$4 sm:$0xff]  }
 0x228   :  { %5909 = vmatpush1.bf16.msra.mxu0 %v7718_v1  ;;  %3891 = vmatprep.subr.bf16.mxu1 %v7723_v2  ;;  %v7766_v1 = vld [vmem:[#allocation7 + $0x13b0] ss:$8 sps:$4 sm:$0xff]   ;;  %v7771_v2 = vld [vmem:[#allocation7 + $0xbc4] ss:$8 sps:$4 sm:$0xff]  }
 0x229   :  { %5910 = vmatprep.subr.bf16.mxu0 %v7726_v3  ;;  %v7774_v3 = vld [vmem:[#allocation7 + $0x13c4] ss:$8 sps:$4 sm:$0xff]  }
 0x22b   :  { %3892 = vmatpush1.bf16.msra.mxu1 %v7721_v4  ;;  %v7769_v4 = vld [vmem:[#allocation7 + $0xbc0] ss:$8 sps:$4 sm:$0xff]  }
 0x22c   :  { %5911 = vmatpush1.bf16.msra.mxu0 %v7724_v6  ;;  %3893 = vmatprep.subr.bf16.mxu1 %v7729_v9  ;;  %v7772_v6 = vld [vmem:[#allocation7 + $0x13c0] ss:$8 sps:$4 sm:$0xff]   ;;  %v7780_v9 = vld [vmem:[#allocation7 + $0x13d4] ss:$8 sps:$4 sm:$0xff]  }
 0x22d   :  { %5912 = vmatprep.subr.bf16.mxu0 %v7732_v10  ;;  %v1895_v21 = vpop.f32.mrb[0].mxu1  ;;  %v7775_v10 = vld [vmem:[#allocation7 + $0xbd0] ss:$8 sps:$4 sm:$0xff]  }
 0x22e   :  { %v2059_v22 = vpop.f32.mrb[0].mxu0  ;;  %v6920_v23 = vadd.f32 %v1895_v21, %v451_v54  ;;  %v1897_v26 = vpop.f32.mrb[1].mxu1  ;;  %v7778_v54 = vld [vmem:[#allocation7 + $0x13d0] ss:$8 sps:$4 sm:$0xff]   ;;  %v7792_v21 = vld [vmem:[#allocation7 + $0x13f4] ss:$8 sps:$4 sm:$0xff]  }
 0x22f   :  { %v2061_v60 = vpop.f32.mrb[1].mxu0  ;;  %v6922_v61 = vadd.f32 %v1897_v26, %v455_v47  ;;  %v1899_v28 = vpop.f32.mrb[2].mxu1  ;;  %3894 = vmatpush1.bf16.msra.mxu1 %v7727_v13  ;;  %v7783_v47 = vld [vmem:[#allocation7 + $0xbe4] ss:$8 sps:$4 sm:$0xff]   ;;  %v8574_v13 = vld [vmem:[#allocation6 + $0x10] sm:$0xff] }
 0x230   :  { %v2063_v29 = vpop.f32.mrb[2].mxu0  ;;  %5913 = vmatpush1.bf16.msra.mxu0 %v7730_v16  ;;  %v6921_v32 = vadd.f32 %v6920_v23, %v2059_v22  ;;  %v1900_v33 = vpop.f32.mrb[3].mxu1  ;;  %3895 = vmatprep.subr.bf16.mxu1 %v7735_v17  ;;  %v7781_v16 = vld [vmem:[#allocation7 + $0xbe0] ss:$8 sps:$4 sm:$0xff]   ;;  %v8578_v22 = vrot.slane %v8572_v12, %v8409_v49  ;;  %v8582_v23 = vrot.slane %v8574_v13, %v8409_v49  ;;  %v7787_v26 = vld [vmem:[#allocation7 + $0xbf0] ss:$8 sps:$4 sm:$0xff]  }
 0x231   :  { %v2064_v34 = vpop.f32.mrb[3].mxu0  ;;  %5914 = vmatprep.subr.bf16.mxu0 %v7738_v20  ;;  %v6923_v14 = vadd.f32 %v6922_v61, %v2061_v60  ;;  %v7784_v17 = vld [vmem:[#allocation7 + $0x13e0] ss:$8 sps:$4 sm:$0xff]   ;;  %v7789_v20 = vld [vmem:[#allocation7 + $0xbf4] ss:$8 sps:$4 sm:$0xff]  }
 0x232   :  { %v2066_v41 = vmax.f32 %v6921_v32, 0.0  ;;  %v7790_v60 = vld [vmem:[#allocation7 + $0x13f0] ss:$8 sps:$4 sm:$0xff]   ;;  %v7795_v61 = vld [vmem:[#allocation7 + $0xc04] ss:$8 sps:$4 sm:$0xff]   ;;  %v2159_v28 = vcombine.high %v8578_v22, %v8578_v22  ;;  %v4178_v29 = vcombine.high %v8582_v23, %v8582_v23 }
 0x233   :  { %v2067_v18 = vmax.f32 %v6923_v14, 0.0  ;;  %3896 = vmatpush1.bf16.msra.mxu1 %v7733_v30  ;;  %v2200_v30 = vpack.c.bf16 %v8530_v15, %v8530_v15  ;;  %v7793_v32 = vld [vmem:[#allocation7 + $0xc00] ss:$8 sps:$4 sm:$0xff]   ;;  %v7801_v34 = vld [vmem:[#allocation7 + $0xc14] ss:$8 sps:$4 sm:$0xff]  }
 0x234   :  { %5915 = vmatpush1.bf16.msra.mxu0 %v7736_v31  ;;  %3897 = vmatprep.subr.bf16.mxu1 %v7741_v35  ;;  %v4219_v31 = vpack.c.bf16 %v8533_v11, %v8533_v11  ;;  %v7796_v33 = vld [vmem:[#allocation7 + $0x1400] ss:$8 sps:$4 sm:$0xff]   ;;  %v7804_v35 = vld [vmem:[#allocation7 + $0x1414] ss:$8 sps:$4 sm:$0xff]   ;;  %v4222_v14 = vpack.c.bf16 %v4178_v29, %v4178_v29  ;;  %v7807_v15 = vld [vmem:[#allocation7 + $0xc24] ss:$8 sps:$4 sm:$0xff]  }
 0x235   :  { %5916 = vmatprep.subr.bf16.mxu0 %v7744_v37  ;;  %v2070_v50 = vcombine.low %v2066_v41, %v2067_v18  ;;  %v2203_v37 = vpack.c.bf16 %v2159_v28, %v2159_v28  ;;  %v7799_v41 = vld [vmem:[#allocation7 + $0xc10] ss:$8 sps:$4 sm:$0xff]   ;;  %v7810_v11 = vld [vmem:[#allocation7 + $0x1424] ss:$8 sps:$4 sm:$0xff]   ;;  %v7868_v28 = vld [vmem:[#allocation7 + $0x14c0] ss:$8 sps:$4 sm:$0xff]  }
 0x236   :  { %v7802_v18 = vld [vmem:[#allocation7 + $0x1410] ss:$8 sps:$4 sm:$0xff]   ;;  %v7873_v29 = vld [vmem:[#allocation7 + $0xcd4] ss:$8 sps:$4 sm:$0xff]  }
 0x237   :  { %v2077_v36 = vrot.slane %v2070_v50, %v8552_v46  ;;  %3898 = vmatpush1.bf16.msra.mxu1 %v7739_v19  ;;  %v7805_v19 = vld [vmem:[#allocation7 + $0xc20] ss:$8 sps:$4 sm:$0xff]   ;;  %v7811_v50 = vld [vmem:[#allocation7 + $0xc30] ss:$8 sps:$4 sm:$0xff]  }
 0x238   :  { %5917 = vmatpush1.bf16.msra.mxu0 %v7742_v44  ;;  %3899 = vmatprep.subr.bf16.mxu1 %v7747_v45  ;;  %v7808_v44 = vld [vmem:[#allocation7 + $0x1420] ss:$8 sps:$4 sm:$0xff]   ;;  %v7813_v45 = vld [vmem:[#allocation7 + $0xc34] ss:$8 sps:$4 sm:$0xff]  }
 0x239   :  { %5918 = vmatprep.subr.bf16.mxu0 %v7750_v48  ;;  %v2078_v56 = vcombine.high %v2077_v36, %v2077_v36  ;;  %v2085_v57 = vrot.slane %v2077_v36, %v8552_v46  ;;  %v7816_v48 = vld [vmem:[#allocation7 + $0x1434] ss:$8 sps:$4 sm:$0xff]   ;;  %v7814_v36 = vld [vmem:[#allocation7 + $0x1430] ss:$8 sps:$4 sm:$0xff]  }
 0x23b   :  { %v2092_v58 = vrot.slane %v2078_v56, %v8552_v46  ;;  %2099 = vst.msk [vmem:[%s8687_s5] ss:$4 sm:$0x3] %vm8556_vm0, %v2085_v57  ;;  %3900 = vmatpush1.bf16.msra.mxu1 %v7745_v40  ;;  %v7819_v40 = vld [vmem:[#allocation7 + $0xc44] ss:$8 sps:$4 sm:$0xff]  }
 0x23c   :  { %5919 = vmatpush1.bf16.msra.mxu0 %v7748_v51  ;;  %3901 = vmatprep.subr.bf16.mxu1 %v7753_v43  ;;  %v7822_v51 = vld [vmem:[#allocation7 + $0x1444] ss:$8 sps:$4 sm:$0xff]   ;;  %v7817_v43 = vld [vmem:[#allocation7 + $0xc40] ss:$8 sps:$4 sm:$0xff]   ;;  %v7825_v56 = vld [vmem:[#allocation7 + $0xc54] ss:$8 sps:$4 sm:$0xff]  }
 0x23d   :  { %5920 = vmatprep.subr.bf16.mxu0 %v7756_v53  ;;  %6403 = vst.msk [vmem:[%s8687_s5 + $0x8] ss:$4 sm:$0x3] %vm8556_vm0, %v2092_v58  ;;  %v7820_v53 = vld [vmem:[#allocation7 + $0x1440] ss:$8 sps:$4 sm:$0xff]  }
 0x23e   :  { %v7828_v57 = vld [vmem:[#allocation7 + $0x1454] ss:$8 sps:$4 sm:$0xff]   ;;  %v7823_v58 = vld [vmem:[#allocation7 + $0xc50] ss:$8 sps:$4 sm:$0xff]  }
 0x23f   :  { %3902 = vmatpush1.bf16.msra.mxu1 %v7751_v38  ;;  %v7826_v38 = vld [vmem:[#allocation7 + $0x1450] ss:$8 sps:$4 sm:$0xff]  }
 0x240   :  { %5921 = vmatpush1.bf16.msra.mxu0 %v7754_v59  ;;  %3903 = vmatprep.subr.bf16.mxu1 %v7759_v24  ;;  %v7831_v59 = vld [vmem:[#allocation7 + $0xc64] ss:$8 sps:$4 sm:$0xff]  }
 0x241   :  { %5922 = vmatprep.subr.bf16.mxu0 %v7762_v25  ;;  %v7834_v24 = vld [vmem:[#allocation7 + $0x1464] ss:$8 sps:$4 sm:$0xff]   ;;  %v7829_v25 = vld [vmem:[#allocation7 + $0xc60] ss:$8 sps:$4 sm:$0xff]  }
 0x243   :  { %3904 = vmatpush1.bf16.msra.mxu1 %v7757_v62  ;;  %v7832_v62 = vld [vmem:[#allocation7 + $0x1460] ss:$8 sps:$4 sm:$0xff]  }
 0x244   :  { %5923 = vmatpush1.bf16.msra.mxu0 %v7760_v63  ;;  %3905 = vmatprep.subr.bf16.mxu1 %v7765_v39  ;;  %v7837_v63 = vld [vmem:[#allocation7 + $0xc74] ss:$8 sps:$4 sm:$0xff]  }
 0x245   :  { %5924 = vmatprep.subr.bf16.mxu0 %v7768_v42  ;;  %v7840_v39 = vld [vmem:[#allocation7 + $0x1474] ss:$8 sps:$4 sm:$0xff]   ;;  %v7835_v42 = vld [vmem:[#allocation7 + $0xc70] ss:$8 sps:$4 sm:$0xff]  }
 0x247   :  { %3906 = vmatpush1.bf16.msra.mxu1 %v7763_v0  ;;  %v7838_v0 = vld [vmem:[#allocation7 + $0x1470] ss:$8 sps:$4 sm:$0xff]  }
 0x248   :  { %5925 = vmatpush1.bf16.msra.mxu0 %v7766_v1  ;;  %3907 = vmatprep.subr.bf16.mxu1 %v7771_v2  ;;  %v7843_v1 = vld [vmem:[#allocation7 + $0xc84] ss:$8 sps:$4 sm:$0xff]  }
 0x249   :  { %5926 = vmatprep.subr.bf16.mxu0 %v7774_v3  ;;  %v7846_v2 = vld [vmem:[#allocation7 + $0x1484] ss:$8 sps:$4 sm:$0xff]   ;;  %v7841_v3 = vld [vmem:[#allocation7 + $0xc80] ss:$8 sps:$4 sm:$0xff]  }
 0x24b   :  { %3908 = vmatpush1.bf16.msra.mxu1 %v7769_v4  ;;  %v7844_v4 = vld [vmem:[#allocation7 + $0x1480] ss:$8 sps:$4 sm:$0xff]  }
 0x24c   :  { %5927 = vmatpush1.bf16.msra.mxu0 %v7772_v6  ;;  %3909 = vmatprep.subr.bf16.mxu1 %v7777_v7  ;;  %v7849_v6 = vld [vmem:[#allocation7 + $0xc94] ss:$8 sps:$4 sm:$0xff]  }
 0x24d   :  { %5928 = vmatprep.subr.bf16.mxu0 %v7780_v9  ;;  %v7852_v7 = vld [vmem:[#allocation7 + $0x1494] ss:$8 sps:$4 sm:$0xff]   ;;  %v7847_v9 = vld [vmem:[#allocation7 + $0xc90] ss:$8 sps:$4 sm:$0xff]  }
 0x24f   :  { %3910 = vmatpush1.bf16.msra.mxu1 %v7775_v10  ;;  %v7850_v10 = vld [vmem:[#allocation7 + $0x1490] ss:$8 sps:$4 sm:$0xff]  }
 0x250   :  { %5929 = vmatpush1.bf16.msra.mxu0 %v7778_v54  ;;  %3911 = vmatprep.subr.bf16.mxu1 %v7783_v47  ;;  %v7855_v54 = vld [vmem:[#allocation7 + $0xca4] ss:$8 sps:$4 sm:$0xff]  }
 0x251   :  { %5930 = vmatprep.subr.bf16.mxu0 %v7786_v55  ;;  %v7858_v47 = vld [vmem:[#allocation7 + $0x14a4] ss:$8 sps:$4 sm:$0xff]   ;;  %v7853_v55 = vld [vmem:[#allocation7 + $0xca0] ss:$8 sps:$4 sm:$0xff]  }
 0x253   :  { %3912 = vmatpush1.bf16.msra.mxu1 %v7781_v16  ;;  %v7856_v16 = vld [vmem:[#allocation7 + $0x14a0] ss:$8 sps:$4 sm:$0xff]  }
 0x254   :  { %5931 = vmatpush1.bf16.msra.mxu0 %v7784_v17  ;;  %3913 = vmatprep.subr.bf16.mxu1 %v7789_v20  ;;  %v7861_v17 = vld [vmem:[#allocation7 + $0xcb4] ss:$8 sps:$4 sm:$0xff]  }
 0x255   :  { %5932 = vmatprep.subr.bf16.mxu0 %v7792_v21  ;;  %v7864_v20 = vld [vmem:[#allocation7 + $0x14b4] ss:$8 sps:$4 sm:$0xff]   ;;  %v7859_v21 = vld [vmem:[#allocation7 + $0xcb0] ss:$8 sps:$4 sm:$0xff]  }
 0x257   :  { %3914 = vmatpush1.bf16.msra.mxu1 %v7787_v26  ;;  %v7862_v26 = vld [vmem:[#allocation7 + $0x14b0] ss:$8 sps:$4 sm:$0xff]  }
 0x258   :  { %5933 = vmatpush1.bf16.msra.mxu0 %v7790_v60  ;;  %3924 = vmatprep.subr.bf16.mxu1 %v7795_v61  ;;  %v7867_v60 = vld [vmem:[#allocation7 + $0xcc4] ss:$8 sps:$4 sm:$0xff]  }
 0x259   :  { %5943 = vmatprep.subr.bf16.mxu0 %v7798_v27  ;;  %v7870_v61 = vld [vmem:[#allocation7 + $0x14c4] ss:$8 sps:$4 sm:$0xff]   ;;  %v7865_v27 = vld [vmem:[#allocation7 + $0xcc0] ss:$8 sps:$4 sm:$0xff]  }
 0x25a   :  { %3916 = vmatmul.mubr.bf16.vlgmr.msra.gmra.mrb[4].mxu1 %v2200_v30  ;;  %v7876_v30 = vld [vmem:[#allocation7 + $0x14d4] ss:$8 sps:$4 sm:$0xff]  }
 0x25b   :  { %5935 = vmatmul.mubr.bf16.vlgmr.msra.gmra.mrb[4].mxu0 %v4219_v31  ;;  %3925 = vmatpush1.bf16.msra.mxu1 %v7793_v32  ;;  %v7871_v31 = vld [vmem:[#allocation7 + $0xcd0] ss:$8 sps:$4 sm:$0xff]  }
 0x25c   :  { %5944 = vmatpush1.bf16.msra.mxu0 %v7796_v33  ;;  %3926 = vmatprep.subr.bf16.mxu1 %v7801_v34  ;;  %v7874_v32 = vld [vmem:[#allocation7 + $0x14d0] ss:$8 sps:$4 sm:$0xff]   ;;  %v7879_v33 = vld [vmem:[#allocation7 + $0xce4] ss:$8 sps:$4 sm:$0xff]  }
 0x25d   :  { %5945 = vmatprep.subr.bf16.mxu0 %v7804_v35  ;;  %3956 = vmatprep.mubr.bf16.mxu1 %v2203_v37  ;;  %v7882_v34 = vld [vmem:[#allocation7 + $0x14e4] ss:$8 sps:$4 sm:$0xff]   ;;  %v2144_v35 = vcombine.high %v8572_v12, %v8572_v12  ;;  %v4163_v37 = vcombine.high %v8574_v13, %v8574_v13  ;;  %v7883_v12 = vld [vmem:[#allocation7 + $0xcf0] ss:$8 sps:$4 sm:$0xff]  }
 0x25e   :  { %5975 = vmatprep.mubr.bf16.mxu0 %v4222_v14  ;;  %v7877_v14 = vld [vmem:[#allocation7 + $0xce0] ss:$8 sps:$4 sm:$0xff]   ;;  %v7891_v13 = vld [vmem:[#allocation7 + $0xd04] ss:$8 sps:$4 sm:$0xff]  }
 0x25f   :  { %3927 = vmatpush1.bf16.msra.mxu1 %v7799_v41  ;;  %v7880_v41 = vld [vmem:[#allocation7 + $0x14e0] ss:$8 sps:$4 sm:$0xff]  }
 0x260   :  { %5946 = vmatpush1.bf16.msra.mxu0 %v7802_v18  ;;  %3928 = vmatprep.subr.bf16.mxu1 %v7807_v15  ;;  %v7885_v18 = vld [vmem:[#allocation7 + $0xcf4] ss:$8 sps:$4 sm:$0xff]  }
 0x261   :  { %5947 = vmatprep.subr.bf16.mxu0 %v7810_v11  ;;  %v7888_v15 = vld [vmem:[#allocation7 + $0x14f4] ss:$8 sps:$4 sm:$0xff]   ;;  %v8597_v11 = vrot.slane %v2144_v35, %v8409_v49  ;;  %v7952_v35 = vld [vmem:[#allocation7 + $0x15a0] ss:$8 sps:$4 sm:$0xff]  }
 0x263   :  { %3929 = vmatpush1.bf16.msra.mxu1 %v7805_v19  ;;  %v8600_v19 = vrot.slane %v4163_v37, %v8409_v49  ;;  %v7957_v37 = vld [vmem:[#allocation7 + $0xdb4] ss:$8 sps:$4 sm:$0xff]  }
 0x264   :  { %5948 = vmatpush1.bf16.msra.mxu0 %v7808_v44  ;;  %3930 = vmatprep.subr.bf16.mxu1 %v7813_v45  ;;  %v7886_v44 = vld [vmem:[#allocation7 + $0x14f0] ss:$8 sps:$4 sm:$0xff]   ;;  %v7894_v45 = vld [vmem:[#allocation7 + $0x1504] ss:$8 sps:$4 sm:$0xff]  }
 0x265   :  { %5949 = vmatprep.subr.bf16.mxu0 %v7816_v48  ;;  %v2160_v48 = vcombine.high %v8597_v11, %v8597_v11 }
 0x267   :  { %3931 = vmatpush1.bf16.msra.mxu1 %v7811_v50  ;;  %v4179_v50 = vcombine.high %v8600_v19, %v8600_v19 }
 0x268   :  { %5950 = vmatpush1.bf16.msra.mxu0 %v7814_v36  ;;  %3932 = vmatprep.subr.bf16.mxu1 %v7819_v40  ;;  %v2202_v36 = vpack.c.bf16 %v8578_v22, %v8578_v22  ;;  %v4221_v40 = vpack.c.bf16 %v8582_v23, %v8582_v23  ;;  %v7903_v22 = vld [vmem:[#allocation7 + $0xd24] ss:$8 sps:$4 sm:$0xff]  }
 0x269   :  { %5951 = vmatprep.subr.bf16.mxu0 %v7822_v51  ;;  %v7889_v51 = vld [vmem:[#allocation7 + $0xd00] ss:$8 sps:$4 sm:$0xff]   ;;  %v7906_v23 = vld [vmem:[#allocation7 + $0x1524] ss:$8 sps:$4 sm:$0xff]  }
 0x26b   :  { %3933 = vmatpush1.bf16.msra.mxu1 %v7817_v43  ;;  %v7892_v43 = vld [vmem:[#allocation7 + $0x1500] ss:$8 sps:$4 sm:$0xff]  }
 0x26c   :  { %5952 = vmatpush1.bf16.msra.mxu0 %v7820_v53  ;;  %3934 = vmatprep.subr.bf16.mxu1 %v7825_v56  ;;  %v7897_v53 = vld [vmem:[#allocation7 + $0xd14] ss:$8 sps:$4 sm:$0xff]  }
 0x26d   :  { %5953 = vmatprep.subr.bf16.mxu0 %v7828_v57  ;;  %v7900_v56 = vld [vmem:[#allocation7 + $0x1514] ss:$8 sps:$4 sm:$0xff]   ;;  %v2205_v57 = vpack.c.bf16 %v2160_v48, %v2160_v48 }
 0x26e   :  { %v7972_v48 = vld [vmem:[#allocation7 + $0x15d4] ss:$8 sps:$4 sm:$0xff]  }
 0x26f   :  { %3935 = vmatpush1.bf16.msra.mxu1 %v7823_v58  ;;  %v4224_v58 = vpack.c.bf16 %v4179_v50, %v4179_v50  ;;  %v7967_v50 = vld [vmem:[#allocation7 + $0xdd0] ss:$8 sps:$4 sm:$0xff]  }
 0x270   :  { %5954 = vmatpush1.bf16.msra.mxu0 %v7826_v38  ;;  %3936 = vmatprep.subr.bf16.mxu1 %v7831_v59  ;;  %v7895_v38 = vld [vmem:[#allocation7 + $0xd10] ss:$8 sps:$4 sm:$0xff]  }
 0x271   :  { %5955 = vmatprep.subr.bf16.mxu0 %v7834_v24  ;;  %v7898_v59 = vld [vmem:[#allocation7 + $0x1510] ss:$8 sps:$4 sm:$0xff]   ;;  %v7901_v24 = vld [vmem:[#allocation7 + $0xd20] ss:$8 sps:$4 sm:$0xff]  }
 0x273   :  { %3937 = vmatpush1.bf16.msra.mxu1 %v7829_v25  ;;  %v7904_v25 = vld [vmem:[#allocation7 + $0x1520] ss:$8 sps:$4 sm:$0xff]  }
 0x274   :  { %5956 = vmatpush1.bf16.msra.mxu0 %v7832_v62  ;;  %3938 = vmatprep.subr.bf16.mxu1 %v7837_v63  ;;  %v7909_v62 = vld [vmem:[#allocation7 + $0xd34] ss:$8 sps:$4 sm:$0xff]  }
 0x275   :  { %5957 = vmatprep.subr.bf16.mxu0 %v7840_v39  ;;  %v7912_v63 = vld [vmem:[#allocation7 + $0x1534] ss:$8 sps:$4 sm:$0xff]   ;;  %v7907_v39 = vld [vmem:[#allocation7 + $0xd30] ss:$8 sps:$4 sm:$0xff]  }
 0x277   :  { %3939 = vmatpush1.bf16.msra.mxu1 %v7835_v42  ;;  %v7910_v42 = vld [vmem:[#allocation7 + $0x1530] ss:$8 sps:$4 sm:$0xff]  }
 0x278   :  { %5958 = vmatpush1.bf16.msra.mxu0 %v7838_v0  ;;  %3940 = vmatprep.subr.bf16.mxu1 %v7843_v1  ;;  %v7915_v0 = vld [vmem:[#allocation7 + $0xd44] ss:$8 sps:$4 sm:$0xff]  }
 0x279   :  { %5959 = vmatprep.subr.bf16.mxu0 %v7846_v2  ;;  %v7918_v1 = vld [vmem:[#allocation7 + $0x1544] ss:$8 sps:$4 sm:$0xff]   ;;  %v7913_v2 = vld [vmem:[#allocation7 + $0xd40] ss:$8 sps:$4 sm:$0xff]  }
 0x27b   :  { %3941 = vmatpush1.bf16.msra.mxu1 %v7841_v3  ;;  %v7916_v3 = vld [vmem:[#allocation7 + $0x1540] ss:$8 sps:$4 sm:$0xff]  }
 0x27c   :  { %5960 = vmatpush1.bf16.msra.mxu0 %v7844_v4  ;;  %3942 = vmatprep.subr.bf16.mxu1 %v7849_v6  ;;  %v7921_v4 = vld [vmem:[#allocation7 + $0xd54] ss:$8 sps:$4 sm:$0xff]  }
 0x27d   :  { %5961 = vmatprep.subr.bf16.mxu0 %v7852_v7  ;;  %v7924_v6 = vld [vmem:[#allocation7 + $0x1554] ss:$8 sps:$4 sm:$0xff]   ;;  %v7919_v7 = vld [vmem:[#allocation7 + $0xd50] ss:$8 sps:$4 sm:$0xff]  }
 0x27f   :  { %3943 = vmatpush1.bf16.msra.mxu1 %v7847_v9  ;;  %v7922_v9 = vld [vmem:[#allocation7 + $0x1550] ss:$8 sps:$4 sm:$0xff]  }
 0x280   :  { %5962 = vmatpush1.bf16.msra.mxu0 %v7850_v10  ;;  %3944 = vmatprep.subr.bf16.mxu1 %v7855_v54  ;;  %v7927_v10 = vld [vmem:[#allocation7 + $0xd64] ss:$8 sps:$4 sm:$0xff]  }
 0x281   :  { %5963 = vmatprep.subr.bf16.mxu0 %v7858_v47  ;;  %v7930_v54 = vld [vmem:[#allocation7 + $0x1564] ss:$8 sps:$4 sm:$0xff]   ;;  %v7925_v47 = vld [vmem:[#allocation7 + $0xd60] ss:$8 sps:$4 sm:$0xff]  }
 0x283   :  { %3945 = vmatpush1.bf16.msra.mxu1 %v7853_v55  ;;  %v7928_v55 = vld [vmem:[#allocation7 + $0x1560] ss:$8 sps:$4 sm:$0xff]  }
 0x284   :  { %5964 = vmatpush1.bf16.msra.mxu0 %v7856_v16  ;;  %3946 = vmatprep.subr.bf16.mxu1 %v7861_v17  ;;  %v7933_v16 = vld [vmem:[#allocation7 + $0xd74] ss:$8 sps:$4 sm:$0xff]  }
 0x285   :  { %5965 = vmatprep.subr.bf16.mxu0 %v7864_v20  ;;  %v7936_v17 = vld [vmem:[#allocation7 + $0x1574] ss:$8 sps:$4 sm:$0xff]   ;;  %v7931_v20 = vld [vmem:[#allocation7 + $0xd70] ss:$8 sps:$4 sm:$0xff]  }
 0x287   :  { %3947 = vmatpush1.bf16.msra.mxu1 %v7859_v21  ;;  %v7934_v21 = vld [vmem:[#allocation7 + $0x1570] ss:$8 sps:$4 sm:$0xff]  }
 0x288   :  { %5966 = vmatpush1.bf16.msra.mxu0 %v7862_v26  ;;  %3948 = vmatprep.subr.bf16.mxu1 %v7867_v60  ;;  %v7939_v26 = vld [vmem:[#allocation7 + $0xd84] ss:$8 sps:$4 sm:$0xff]  }
 0x289   :  { %5967 = vmatprep.subr.bf16.mxu0 %v7870_v61  ;;  %v7942_v60 = vld [vmem:[#allocation7 + $0x1584] ss:$8 sps:$4 sm:$0xff]   ;;  %v7937_v61 = vld [vmem:[#allocation7 + $0xd80] ss:$8 sps:$4 sm:$0xff]  }
 0x28b   :  { %3949 = vmatpush1.bf16.msra.mxu1 %v7865_v27  ;;  %v7940_v27 = vld [vmem:[#allocation7 + $0x1580] ss:$8 sps:$4 sm:$0xff]  }
 0x28c   :  { %5968 = vmatpush1.bf16.msra.mxu0 %v7868_v28  ;;  %3950 = vmatprep.subr.bf16.mxu1 %v7873_v29  ;;  %v7945_v28 = vld [vmem:[#allocation7 + $0xd94] ss:$8 sps:$4 sm:$0xff]  }
 0x28d   :  { %5969 = vmatprep.subr.bf16.mxu0 %v7876_v30  ;;  %v7948_v29 = vld [vmem:[#allocation7 + $0x1594] ss:$8 sps:$4 sm:$0xff]   ;;  %v7943_v30 = vld [vmem:[#allocation7 + $0xd90] ss:$8 sps:$4 sm:$0xff]  }
 0x28f   :  { %3951 = vmatpush1.bf16.msra.mxu1 %v7871_v31  ;;  %v7946_v31 = vld [vmem:[#allocation7 + $0x1590] ss:$8 sps:$4 sm:$0xff]  }
 0x290   :  { %5970 = vmatpush1.bf16.msra.mxu0 %v7874_v32  ;;  %3952 = vmatprep.subr.bf16.mxu1 %v7879_v33  ;;  %v7951_v32 = vld [vmem:[#allocation7 + $0xda4] ss:$8 sps:$4 sm:$0xff]  }
 0x291   :  { %5971 = vmatprep.subr.bf16.mxu0 %v7882_v34  ;;  %v7954_v33 = vld [vmem:[#allocation7 + $0x15a4] ss:$8 sps:$4 sm:$0xff]   ;;  %v7949_v34 = vld [vmem:[#allocation7 + $0xda0] ss:$8 sps:$4 sm:$0xff]  }
 0x293   :  { %3953 = vmatpush1.bf16.msra.mxu1 %v7877_v14  ;;  %v7960_v14 = vld [vmem:[#allocation7 + $0x15b4] ss:$8 sps:$4 sm:$0xff]  }
 0x294   :  { %5972 = vmatpush1.bf16.msra.mxu0 %v7880_v41  ;;  %3954 = vmatprep.subr.bf16.mxu1 %v7885_v18  ;;  %v7955_v41 = vld [vmem:[#allocation7 + $0xdb0] ss:$8 sps:$4 sm:$0xff]  }
 0x295   :  { %5973 = vmatprep.subr.bf16.mxu0 %v7888_v15  ;;  %v7958_v18 = vld [vmem:[#allocation7 + $0x15b0] ss:$8 sps:$4 sm:$0xff]   ;;  %v7963_v15 = vld [vmem:[#allocation7 + $0xdc4] ss:$8 sps:$4 sm:$0xff]  }
 0x297   :  { %3955 = vmatpush1.bf16.msra.mxu1 %v7883_v12  ;;  %v7966_v12 = vld [vmem:[#allocation7 + $0x15c4] ss:$8 sps:$4 sm:$0xff]  }
 0x298   :  { %5974 = vmatpush1.bf16.msra.mxu0 %v7886_v44  ;;  %3965 = vmatprep.subr.bf16.mxu1 %v7891_v13  ;;  %v7961_v44 = vld [vmem:[#allocation7 + $0xdc0] ss:$8 sps:$4 sm:$0xff]  }
 0x299   :  { %5984 = vmatprep.subr.bf16.mxu0 %v7894_v45  ;;  %v7964_v13 = vld [vmem:[#allocation7 + $0x15c0] ss:$8 sps:$4 sm:$0xff]   ;;  %v7969_v45 = vld [vmem:[#allocation7 + $0xdd4] ss:$8 sps:$4 sm:$0xff]  }
 0x29a   :  { %3957 = vmatmul.mubr.bf16.vlgmr.msra.gmra.mrb[4].mxu1 %v2202_v36  ;;  %v7970_v36 = vld [vmem:[#allocation7 + $0x15d0] ss:$8 sps:$4 sm:$0xff]  }
 0x29b   :  { %5976 = vmatmul.mubr.bf16.vlgmr.msra.gmra.mrb[4].mxu0 %v4221_v40  ;;  %3966 = vmatpush1.bf16.msra.mxu1 %v7889_v51  ;;  %v7975_v40 = vld [vmem:[#allocation7 + $0xde4] ss:$8 sps:$4 sm:$0xff]  }
 0x29c   :  { %5985 = vmatpush1.bf16.msra.mxu0 %v7892_v43  ;;  %3967 = vmatprep.subr.bf16.mxu1 %v7897_v53  ;;  %v7978_v51 = vld [vmem:[#allocation7 + $0x15e4] ss:$8 sps:$4 sm:$0xff]   ;;  %v8610_v43 = vld [vmem:[#allocation4 + $0x18] sm:$0xff] }
 0x29d   :  { %5986 = vmatprep.subr.bf16.mxu0 %v7900_v56  ;;  %3997 = vmatprep.mubr.bf16.mxu1 %v2205_v57  ;;  %v8612_v53 = vld [vmem:[#allocation6 + $0x18] sm:$0xff]  ;;  %v7973_v56 = vld [vmem:[#allocation7 + $0xde0] ss:$8 sps:$4 sm:$0xff]  }
 0x29e   :  { %6016 = vmatprep.mubr.bf16.mxu0 %v4224_v58  ;;  %v7976_v57 = vld [vmem:[#allocation7 + $0x15e0] ss:$8 sps:$4 sm:$0xff]   ;;  %v7981_v58 = vld [vmem:[#allocation7 + $0xdf4] ss:$8 sps:$4 sm:$0xff]  }
 0x29f   :  { %3968 = vmatpush1.bf16.msra.mxu1 %v7895_v38  ;;  %v7984_v38 = vld [vmem:[#allocation7 + $0x15f4] ss:$8 sps:$4 sm:$0xff]  }
 0x2a0   :  { %5987 = vmatpush1.bf16.msra.mxu0 %v7898_v59  ;;  %3969 = vmatprep.subr.bf16.mxu1 %v7903_v22  ;;  %v8616_v59 = vrot.slane %v8610_v43, %v8409_v49  ;;  %v8620_v22 = vrot.slane %v8612_v53, %v8409_v49 }
 0x2a1   :  { %5988 = vmatprep.subr.bf16.mxu0 %v7906_v23  ;;  %v7979_v23 = vld [vmem:[#allocation7 + $0xdf0] ss:$8 sps:$4 sm:$0xff]  }
 0x2a3   :  { %3970 = vmatpush1.bf16.msra.mxu1 %v7901_v24  ;;  %v7982_v24 = vld [vmem:[#allocation7 + $0x15f0] ss:$8 sps:$4 sm:$0xff]  }
 0x2a4   :  { %5989 = vmatpush1.bf16.msra.mxu0 %v7904_v25  ;;  %3971 = vmatprep.subr.bf16.mxu1 %v7909_v62  ;;  %v7988_v25 = vld [vmem:[#allocation7 + $0xe04] ss:$8 sps:$4 sm:$0xff]  }
 0x2a5   :  { %5990 = vmatprep.subr.bf16.mxu0 %v7912_v63  ;;  %v7992_v62 = vld [vmem:[#allocation7 + $0x1604] ss:$8 sps:$4 sm:$0xff]   ;;  %v2176_v63 = vcombine.high %v8616_v59, %v8616_v59 }
 0x2a7   :  { %3972 = vmatpush1.bf16.msra.mxu1 %v7907_v39  ;;  %v4195_v39 = vcombine.high %v8620_v22, %v8620_v22 }
 0x2a8   :  { %5991 = vmatpush1.bf16.msra.mxu0 %v7910_v42  ;;  %3973 = vmatprep.subr.bf16.mxu1 %v7915_v0  ;;  %v2204_v42 = vpack.c.bf16 %v8597_v11, %v8597_v11  ;;  %v4223_v0 = vpack.c.bf16 %v8600_v19, %v8600_v19  ;;  %v8001_v11 = vld [vmem:[#allocation7 + $0xe24] ss:$8 sps:$4 sm:$0xff]  }
 0x2a9   :  { %5992 = vmatprep.subr.bf16.mxu0 %v7918_v1  ;;  %v7986_v1 = vld [vmem:[#allocation7 + $0xe00] ss:$8 sps:$4 sm:$0xff]   ;;  %v8004_v19 = vld [vmem:[#allocation7 + $0x1624] ss:$8 sps:$4 sm:$0xff]  }
 0x2ab   :  { %3974 = vmatpush1.bf16.msra.mxu1 %v7913_v2  ;;  %v7990_v2 = vld [vmem:[#allocation7 + $0x1600] ss:$8 sps:$4 sm:$0xff]  }
 0x2ac   :  { %5993 = vmatpush1.bf16.msra.mxu0 %v7916_v3  ;;  %3975 = vmatprep.subr.bf16.mxu1 %v7921_v4  ;;  %v7995_v3 = vld [vmem:[#allocation7 + $0xe14] ss:$8 sps:$4 sm:$0xff]  }
 0x2ad   :  { %5994 = vmatprep.subr.bf16.mxu0 %v7924_v6  ;;  %v7998_v4 = vld [vmem:[#allocation7 + $0x1614] ss:$8 sps:$4 sm:$0xff]   ;;  %v2207_v6 = vpack.c.bf16 %v2176_v63, %v2176_v63  ;;  %v8062_v63 = vld [vmem:[#allocation7 + $0x16c0] ss:$8 sps:$4 sm:$0xff]  }
 0x2af   :  { %3976 = vmatpush1.bf16.msra.mxu1 %v7919_v7  ;;  %v4226_v7 = vpack.c.bf16 %v4195_v39, %v4195_v39  ;;  %v8067_v39 = vld [vmem:[#allocation7 + $0xed4] ss:$8 sps:$4 sm:$0xff]  }
 0x2b0   :  { %5995 = vmatpush1.bf16.msra.mxu0 %v7922_v9  ;;  %3977 = vmatprep.subr.bf16.mxu1 %v7927_v10  ;;  %v7993_v9 = vld [vmem:[#allocation7 + $0xe10] ss:$8 sps:$4 sm:$0xff]  }
 0x2b1   :  { %5996 = vmatprep.subr.bf16.mxu0 %v7930_v54  ;;  %v7996_v10 = vld [vmem:[#allocation7 + $0x1610] ss:$8 sps:$4 sm:$0xff]   ;;  %v7999_v54 = vld [vmem:[#allocation7 + $0xe20] ss:$8 sps:$4 sm:$0xff]  }
 0x2b3   :  { %3978 = vmatpush1.bf16.msra.mxu1 %v7925_v47  ;;  %v8002_v47 = vld [vmem:[#allocation7 + $0x1620] ss:$8 sps:$4 sm:$0xff]  }
 0x2b4   :  { %5997 = vmatpush1.bf16.msra.mxu0 %v7928_v55  ;;  %3979 = vmatprep.subr.bf16.mxu1 %v7933_v16  ;;  %v8007_v55 = vld [vmem:[#allocation7 + $0xe34] ss:$8 sps:$4 sm:$0xff]  }
 0x2b5   :  { %5998 = vmatprep.subr.bf16.mxu0 %v7936_v17  ;;  %v8010_v16 = vld [vmem:[#allocation7 + $0x1634] ss:$8 sps:$4 sm:$0xff]   ;;  %v8005_v17 = vld [vmem:[#allocation7 + $0xe30] ss:$8 sps:$4 sm:$0xff]  }
 0x2b7   :  { %3980 = vmatpush1.bf16.msra.mxu1 %v7931_v20  ;;  %v8008_v20 = vld [vmem:[#allocation7 + $0x1630] ss:$8 sps:$4 sm:$0xff]  }
 0x2b8   :  { %5999 = vmatpush1.bf16.msra.mxu0 %v7934_v21  ;;  %3981 = vmatprep.subr.bf16.mxu1 %v7939_v26  ;;  %v8013_v21 = vld [vmem:[#allocation7 + $0xe44] ss:$8 sps:$4 sm:$0xff]  }
 0x2b9   :  { %6000 = vmatprep.subr.bf16.mxu0 %v7942_v60  ;;  %v8016_v26 = vld [vmem:[#allocation7 + $0x1644] ss:$8 sps:$4 sm:$0xff]   ;;  %v8011_v60 = vld [vmem:[#allocation7 + $0xe40] ss:$8 sps:$4 sm:$0xff]  }
 0x2bb   :  { %3982 = vmatpush1.bf16.msra.mxu1 %v7937_v61  ;;  %v8014_v61 = vld [vmem:[#allocation7 + $0x1640] ss:$8 sps:$4 sm:$0xff]  }
 0x2bc   :  { %6001 = vmatpush1.bf16.msra.mxu0 %v7940_v27  ;;  %3983 = vmatprep.subr.bf16.mxu1 %v7945_v28  ;;  %v8019_v27 = vld [vmem:[#allocation7 + $0xe54] ss:$8 sps:$4 sm:$0xff]  }
 0x2bd   :  { %6002 = vmatprep.subr.bf16.mxu0 %v7948_v29  ;;  %v8022_v28 = vld [vmem:[#allocation7 + $0x1654] ss:$8 sps:$4 sm:$0xff]   ;;  %v8017_v29 = vld [vmem:[#allocation7 + $0xe50] ss:$8 sps:$4 sm:$0xff]  }
 0x2bf   :  { %3984 = vmatpush1.bf16.msra.mxu1 %v7943_v30  ;;  %v8020_v30 = vld [vmem:[#allocation7 + $0x1650] ss:$8 sps:$4 sm:$0xff]  }
 0x2c0   :  { %6003 = vmatpush1.bf16.msra.mxu0 %v7946_v31  ;;  %3985 = vmatprep.subr.bf16.mxu1 %v7951_v32  ;;  %v8025_v31 = vld [vmem:[#allocation7 + $0xe64] ss:$8 sps:$4 sm:$0xff]  }
 0x2c1   :  { %6004 = vmatprep.subr.bf16.mxu0 %v7954_v33  ;;  %v8028_v32 = vld [vmem:[#allocation7 + $0x1664] ss:$8 sps:$4 sm:$0xff]   ;;  %v8023_v33 = vld [vmem:[#allocation7 + $0xe60] ss:$8 sps:$4 sm:$0xff]  }
 0x2c3   :  { %3986 = vmatpush1.bf16.msra.mxu1 %v7949_v34  ;;  %v8026_v34 = vld [vmem:[#allocation7 + $0x1660] ss:$8 sps:$4 sm:$0xff]  }
 0x2c4   :  { %6005 = vmatpush1.bf16.msra.mxu0 %v7952_v35  ;;  %3987 = vmatprep.subr.bf16.mxu1 %v7957_v37  ;;  %v8031_v35 = vld [vmem:[#allocation7 + $0xe74] ss:$8 sps:$4 sm:$0xff]  }
 0x2c5   :  { %6006 = vmatprep.subr.bf16.mxu0 %v7960_v14  ;;  %v8034_v37 = vld [vmem:[#allocation7 + $0x1674] ss:$8 sps:$4 sm:$0xff]   ;;  %v8029_v14 = vld [vmem:[#allocation7 + $0xe70] ss:$8 sps:$4 sm:$0xff]  }
 0x2c7   :  { %3988 = vmatpush1.bf16.msra.mxu1 %v7955_v41  ;;  %v8032_v41 = vld [vmem:[#allocation7 + $0x1670] ss:$8 sps:$4 sm:$0xff]  }
 0x2c8   :  { %6007 = vmatpush1.bf16.msra.mxu0 %v7958_v18  ;;  %3989 = vmatprep.subr.bf16.mxu1 %v7963_v15  ;;  %v8037_v18 = vld [vmem:[#allocation7 + $0xe84] ss:$8 sps:$4 sm:$0xff]  }
 0x2c9   :  { %6008 = vmatprep.subr.bf16.mxu0 %v7966_v12  ;;  %v8040_v15 = vld [vmem:[#allocation7 + $0x1684] ss:$8 sps:$4 sm:$0xff]   ;;  %v8035_v12 = vld [vmem:[#allocation7 + $0xe80] ss:$8 sps:$4 sm:$0xff]  }
 0x2cb   :  { %3990 = vmatpush1.bf16.msra.mxu1 %v7961_v44  ;;  %v8038_v44 = vld [vmem:[#allocation7 + $0x1680] ss:$8 sps:$4 sm:$0xff]  }
 0x2cc   :  { %6009 = vmatpush1.bf16.msra.mxu0 %v7964_v13  ;;  %3991 = vmatprep.subr.bf16.mxu1 %v7969_v45  ;;  %v8043_v13 = vld [vmem:[#allocation7 + $0xe94] ss:$8 sps:$4 sm:$0xff]  }
 0x2cd   :  { %6010 = vmatprep.subr.bf16.mxu0 %v7972_v48  ;;  %v8046_v45 = vld [vmem:[#allocation7 + $0x1694] ss:$8 sps:$4 sm:$0xff]   ;;  %v8041_v48 = vld [vmem:[#allocation7 + $0xe90] ss:$8 sps:$4 sm:$0xff]  }
 0x2cf   :  { %3992 = vmatpush1.bf16.msra.mxu1 %v7967_v50  ;;  %v8044_v50 = vld [vmem:[#allocation7 + $0x1690] ss:$8 sps:$4 sm:$0xff]  }
 0x2d0   :  { %6011 = vmatpush1.bf16.msra.mxu0 %v7970_v36  ;;  %3993 = vmatprep.subr.bf16.mxu1 %v7975_v40  ;;  %v8049_v36 = vld [vmem:[#allocation7 + $0xea4] ss:$8 sps:$4 sm:$0xff]  }
 0x2d1   :  { %6012 = vmatprep.subr.bf16.mxu0 %v7978_v51  ;;  %v8052_v40 = vld [vmem:[#allocation7 + $0x16a4] ss:$8 sps:$4 sm:$0xff]   ;;  %v8047_v51 = vld [vmem:[#allocation7 + $0xea0] ss:$8 sps:$4 sm:$0xff]  }
 0x2d3   :  { %3994 = vmatpush1.bf16.msra.mxu1 %v7973_v56  ;;  %v8050_v56 = vld [vmem:[#allocation7 + $0x16a0] ss:$8 sps:$4 sm:$0xff]  }
 0x2d4   :  { %6013 = vmatpush1.bf16.msra.mxu0 %v7976_v57  ;;  %3995 = vmatprep.subr.bf16.mxu1 %v7981_v58  ;;  %v8055_v57 = vld [vmem:[#allocation7 + $0xeb4] ss:$8 sps:$4 sm:$0xff]  }
 0x2d5   :  { %6014 = vmatprep.subr.bf16.mxu0 %v7984_v38  ;;  %v8058_v58 = vld [vmem:[#allocation7 + $0x16b4] ss:$8 sps:$4 sm:$0xff]   ;;  %v8053_v38 = vld [vmem:[#allocation7 + $0xeb0] ss:$8 sps:$4 sm:$0xff]  }
 0x2d7   :  { %3996 = vmatpush1.bf16.msra.mxu1 %v7979_v23  ;;  %v8056_v23 = vld [vmem:[#allocation7 + $0x16b0] ss:$8 sps:$4 sm:$0xff]  }
 0x2d8   :  { %6015 = vmatpush1.bf16.msra.mxu0 %v7982_v24  ;;  %4006 = vmatprep.subr.bf16.mxu1 %v7988_v25  ;;  %v8061_v24 = vld [vmem:[#allocation7 + $0xec4] ss:$8 sps:$4 sm:$0xff]  }
 0x2d9   :  { %6025 = vmatprep.subr.bf16.mxu0 %v7992_v62  ;;  %v8064_v25 = vld [vmem:[#allocation7 + $0x16c4] ss:$8 sps:$4 sm:$0xff]   ;;  %v8059_v62 = vld [vmem:[#allocation7 + $0xec0] ss:$8 sps:$4 sm:$0xff]  }
 0x2da   :  { %3998 = vmatmul.mubr.bf16.vlgmr.msra.gmra.mrb[4].mxu1 %v2204_v42  ;;  %v8070_v42 = vld [vmem:[#allocation7 + $0x16d4] ss:$8 sps:$4 sm:$0xff]  }
 0x2db   :  { %6017 = vmatmul.mubr.bf16.vlgmr.msra.gmra.mrb[4].mxu0 %v4223_v0  ;;  %4007 = vmatpush1.bf16.msra.mxu1 %v7986_v1  ;;  %v8065_v0 = vld [vmem:[#allocation7 + $0xed0] ss:$8 sps:$4 sm:$0xff]  }
 0x2dc   :  { %6026 = vmatpush1.bf16.msra.mxu0 %v7990_v2  ;;  %4008 = vmatprep.subr.bf16.mxu1 %v7995_v3  ;;  %v8068_v1 = vld [vmem:[#allocation7 + $0x16d0] ss:$8 sps:$4 sm:$0xff]   ;;  %v8073_v2 = vld [vmem:[#allocation7 + $0xee4] ss:$8 sps:$4 sm:$0xff]  }
 0x2dd   :  { %6027 = vmatprep.subr.bf16.mxu0 %v7998_v4  ;;  %4038 = vmatprep.mubr.bf16.mxu1 %v2207_v6  ;;  %v8076_v3 = vld [vmem:[#allocation7 + $0x16e4] ss:$8 sps:$4 sm:$0xff]   ;;  %v2161_v4 = vcombine.high %v8610_v43, %v8610_v43  ;;  %v4180_v6 = vcombine.high %v8612_v53, %v8612_v53  ;;  %v8077_v43 = vld [vmem:[#allocation7 + $0xef0] ss:$8 sps:$4 sm:$0xff]  }
 0x2de   :  { %6057 = vmatprep.mubr.bf16.mxu0 %v4226_v7  ;;  %v8071_v7 = vld [vmem:[#allocation7 + $0xee0] ss:$8 sps:$4 sm:$0xff]   ;;  %v8085_v53 = vld [vmem:[#allocation7 + $0xf04] ss:$8 sps:$4 sm:$0xff]  }
 0x2df   :  { %4009 = vmatpush1.bf16.msra.mxu1 %v7993_v9  ;;  %v8074_v9 = vld [vmem:[#allocation7 + $0x16e0] ss:$8 sps:$4 sm:$0xff]  }
 0x2e0   :  { %6028 = vmatpush1.bf16.msra.mxu0 %v7996_v10  ;;  %4010 = vmatprep.subr.bf16.mxu1 %v8001_v11  ;;  %v8079_v10 = vld [vmem:[#allocation7 + $0xef4] ss:$8 sps:$4 sm:$0xff]  }
 0x2e1   :  { %6029 = vmatprep.subr.bf16.mxu0 %v8004_v19  ;;  %v8082_v11 = vld [vmem:[#allocation7 + $0x16f4] ss:$8 sps:$4 sm:$0xff]   ;;  %v8635_v19 = vrot.slane %v2161_v4, %v8409_v49 }
 0x2e2   :  { %v8151_v4 = vld [vmem:[#allocation7 + $0xfb4] ss:$8 sps:$4 sm:$0xff]  }
 0x2e3   :  { %4011 = vmatpush1.bf16.msra.mxu1 %v7999_v54  ;;  %v8638_v54 = vrot.slane %v4180_v6, %v8409_v49  ;;  %v4225_v49 = vpack.c.bf16 %v8620_v22, %v8620_v22  ;;  %v8100_v22 = vld [vmem:[#allocation7 + $0x1724] ss:$8 sps:$4 sm:$0xff]   ;;  %v8154_v6 = vld [vmem:[#allocation7 + $0x17b4] ss:$8 sps:$4 sm:$0xff]  }
 0x2e4   :  { %6030 = vmatpush1.bf16.msra.mxu0 %v8002_v47  ;;  %4012 = vmatprep.subr.bf16.mxu1 %v8007_v55  ;;  %v8080_v47 = vld [vmem:[#allocation7 + $0x16f0] ss:$8 sps:$4 sm:$0xff]   ;;  %v8088_v55 = vld [vmem:[#allocation7 + $0x1704] ss:$8 sps:$4 sm:$0xff]  }
 0x2e5   :  { %6031 = vmatprep.subr.bf16.mxu0 %v8010_v16  ;;  %v2177_v16 = vcombine.high %v8635_v19, %v8635_v19 }
 0x2e7   :  { %4013 = vmatpush1.bf16.msra.mxu1 %v8005_v17  ;;  %v4196_v17 = vcombine.high %v8638_v54, %v8638_v54 }
 0x2e8   :  { %6032 = vmatpush1.bf16.msra.mxu0 %v8008_v20  ;;  %4014 = vmatprep.subr.bf16.mxu1 %v8013_v21  ;;  %v2206_v20 = vpack.c.bf16 %v8616_v59, %v8616_v59  ;;  %v8083_v21 = vld [vmem:[#allocation7 + $0xf00] ss:$8 sps:$4 sm:$0xff]   ;;  %v8097_v59 = vld [vmem:[#allocation7 + $0xf24] ss:$8 sps:$4 sm:$0xff]  }
 0x2e9   :  { %6033 = vmatprep.subr.bf16.mxu0 %v8016_v26  ;;  %v8086_v26 = vld [vmem:[#allocation7 + $0x1700] ss:$8 sps:$4 sm:$0xff]  }
 0x2eb   :  { %4015 = vmatpush1.bf16.msra.mxu1 %v8011_v60  ;;  %v8091_v60 = vld [vmem:[#allocation7 + $0xf14] ss:$8 sps:$4 sm:$0xff]  }
 0x2ec   :  { %6034 = vmatpush1.bf16.msra.mxu0 %v8014_v61  ;;  %4016 = vmatprep.subr.bf16.mxu1 %v8019_v27  ;;  %v8094_v61 = vld [vmem:[#allocation7 + $0x1714] ss:$8 sps:$4 sm:$0xff]   ;;  %v2209_v27 = vpack.c.bf16 %v2177_v16, %v2177_v16  ;;  %v8161_v16 = vld [vmem:[#allocation7 + $0xfd0] ss:$8 sps:$4 sm:$0xff]  }
 0x2ed   :  { %6035 = vmatprep.subr.bf16.mxu0 %v8022_v28  ;;  %v4228_v28 = vpack.c.bf16 %v4196_v17, %v4196_v17  ;;  %v8164_v17 = vld [vmem:[#allocation7 + $0x17d0] ss:$8 sps:$4 sm:$0xff]  }
 0x2ef   :  { %4017 = vmatpush1.bf16.msra.mxu1 %v8017_v29  ;;  %v8089_v29 = vld [vmem:[#allocation7 + $0xf10] ss:$8 sps:$4 sm:$0xff]  }
 0x2f0   :  { %6036 = vmatpush1.bf16.msra.mxu0 %v8020_v30  ;;  %4018 = vmatprep.subr.bf16.mxu1 %v8025_v31  ;;  %v8092_v30 = vld [vmem:[#allocation7 + $0x1710] ss:$8 sps:$4 sm:$0xff]   ;;  %v8095_v31 = vld [vmem:[#allocation7 + $0xf20] ss:$8 sps:$4 sm:$0xff]  }
 0x2f1   :  { %6037 = vmatprep.subr.bf16.mxu0 %v8028_v32  ;;  %v8098_v32 = vld [vmem:[#allocation7 + $0x1720] ss:$8 sps:$4 sm:$0xff]  }
 0x2f3   :  { %4019 = vmatpush1.bf16.msra.mxu1 %v8023_v33  ;;  %v8103_v33 = vld [vmem:[#allocation7 + $0xf34] ss:$8 sps:$4 sm:$0xff]  }
 0x2f4   :  { %6038 = vmatpush1.bf16.msra.mxu0 %v8026_v34  ;;  %4020 = vmatprep.subr.bf16.mxu1 %v8031_v35  ;;  %v8106_v34 = vld [vmem:[#allocation7 + $0x1734] ss:$8 sps:$4 sm:$0xff]   ;;  %v8101_v35 = vld [vmem:[#allocation7 + $0xf30] ss:$8 sps:$4 sm:$0xff]  }
 0x2f5   :  { %6039 = vmatprep.subr.bf16.mxu0 %v8034_v37  ;;  %v8104_v37 = vld [vmem:[#allocation7 + $0x1730] ss:$8 sps:$4 sm:$0xff]  }
 0x2f7   :  { %4021 = vmatpush1.bf16.msra.mxu1 %v8029_v14  ;;  %v8109_v14 = vld [vmem:[#allocation7 + $0xf44] ss:$8 sps:$4 sm:$0xff]  }
 0x2f8   :  { %6040 = vmatpush1.bf16.msra.mxu0 %v8032_v41  ;;  %4022 = vmatprep.subr.bf16.mxu1 %v8037_v18  ;;  %v8112_v41 = vld [vmem:[#allocation7 + $0x1744] ss:$8 sps:$4 sm:$0xff]   ;;  %v8107_v18 = vld [vmem:[#allocation7 + $0xf40] ss:$8 sps:$4 sm:$0xff]  }
 0x2f9   :  { %6041 = vmatprep.subr.bf16.mxu0 %v8040_v15  ;;  %v8110_v15 = vld [vmem:[#allocation7 + $0x1740] ss:$8 sps:$4 sm:$0xff]  }
 0x2fb   :  { %4023 = vmatpush1.bf16.msra.mxu1 %v8035_v12  ;;  %v8115_v12 = vld [vmem:[#allocation7 + $0xf54] ss:$8 sps:$4 sm:$0xff]  }
 0x2fc   :  { %6042 = vmatpush1.bf16.msra.mxu0 %v8038_v44  ;;  %4024 = vmatprep.subr.bf16.mxu1 %v8043_v13  ;;  %v8118_v44 = vld [vmem:[#allocation7 + $0x1754] ss:$8 sps:$4 sm:$0xff]   ;;  %v8113_v13 = vld [vmem:[#allocation7 + $0xf50] ss:$8 sps:$4 sm:$0xff]  }
 0x2fd   :  { %6043 = vmatprep.subr.bf16.mxu0 %v8046_v45  ;;  %v8116_v45 = vld [vmem:[#allocation7 + $0x1750] ss:$8 sps:$4 sm:$0xff]  }
 0x2ff   :  { %4025 = vmatpush1.bf16.msra.mxu1 %v8041_v48  ;;  %v8121_v48 = vld [vmem:[#allocation7 + $0xf64] ss:$8 sps:$4 sm:$0xff]  }
 0x300   :  { %6044 = vmatpush1.bf16.msra.mxu0 %v8044_v50  ;;  %4026 = vmatprep.subr.bf16.mxu1 %v8049_v36  ;;  %v8124_v50 = vld [vmem:[#allocation7 + $0x1764] ss:$8 sps:$4 sm:$0xff]   ;;  %v8119_v36 = vld [vmem:[#allocation7 + $0xf60] ss:$8 sps:$4 sm:$0xff]  }
 0x301   :  { %6045 = vmatprep.subr.bf16.mxu0 %v8052_v40  ;;  %v8122_v40 = vld [vmem:[#allocation7 + $0x1760] ss:$8 sps:$4 sm:$0xff]  }
 0x303   :  { %4027 = vmatpush1.bf16.msra.mxu1 %v8047_v51  ;;  %v8127_v51 = vld [vmem:[#allocation7 + $0xf74] ss:$8 sps:$4 sm:$0xff]  }
 0x304   :  { %6046 = vmatpush1.bf16.msra.mxu0 %v8050_v56  ;;  %4028 = vmatprep.subr.bf16.mxu1 %v8055_v57  ;;  %v8130_v56 = vld [vmem:[#allocation7 + $0x1774] ss:$8 sps:$4 sm:$0xff]   ;;  %v8125_v57 = vld [vmem:[#allocation7 + $0xf70] ss:$8 sps:$4 sm:$0xff]  }
 0x305   :  { %6047 = vmatprep.subr.bf16.mxu0 %v8058_v58  ;;  %v8128_v58 = vld [vmem:[#allocation7 + $0x1770] ss:$8 sps:$4 sm:$0xff]  }
 0x307   :  { %4029 = vmatpush1.bf16.msra.mxu1 %v8053_v38  ;;  %v8133_v38 = vld [vmem:[#allocation7 + $0xf84] ss:$8 sps:$4 sm:$0xff]  }
 0x308   :  { %6048 = vmatpush1.bf16.msra.mxu0 %v8056_v23  ;;  %4030 = vmatprep.subr.bf16.mxu1 %v8061_v24  ;;  %v8136_v23 = vld [vmem:[#allocation7 + $0x1784] ss:$8 sps:$4 sm:$0xff]   ;;  %v8131_v24 = vld [vmem:[#allocation7 + $0xf80] ss:$8 sps:$4 sm:$0xff]  }
 0x309   :  { %6049 = vmatprep.subr.bf16.mxu0 %v8064_v25  ;;  %v8134_v25 = vld [vmem:[#allocation7 + $0x1780] ss:$8 sps:$4 sm:$0xff]  }
 0x30b   :  { %4031 = vmatpush1.bf16.msra.mxu1 %v8059_v62  ;;  %v8139_v62 = vld [vmem:[#allocation7 + $0xf94] ss:$8 sps:$4 sm:$0xff]  }
 0x30c   :  { %6050 = vmatpush1.bf16.msra.mxu0 %v8062_v63  ;;  %4032 = vmatprep.subr.bf16.mxu1 %v8067_v39  ;;  %v8142_v63 = vld [vmem:[#allocation7 + $0x1794] ss:$8 sps:$4 sm:$0xff]   ;;  %v8137_v39 = vld [vmem:[#allocation7 + $0xf90] ss:$8 sps:$4 sm:$0xff]  }
 0x30d   :  { %6051 = vmatprep.subr.bf16.mxu0 %v8070_v42  ;;  %v8140_v42 = vld [vmem:[#allocation7 + $0x1790] ss:$8 sps:$4 sm:$0xff]  }
 0x30f   :  { %4033 = vmatpush1.bf16.msra.mxu1 %v8065_v0  ;;  %v8145_v0 = vld [vmem:[#allocation7 + $0xfa4] ss:$8 sps:$4 sm:$0xff]  }
 0x310   :  { %6052 = vmatpush1.bf16.msra.mxu0 %v8068_v1  ;;  %4034 = vmatprep.subr.bf16.mxu1 %v8073_v2  ;;  %v8148_v1 = vld [vmem:[#allocation7 + $0x17a4] ss:$8 sps:$4 sm:$0xff]   ;;  %v8143_v2 = vld [vmem:[#allocation7 + $0xfa0] ss:$8 sps:$4 sm:$0xff]  }
 0x311   :  { %6053 = vmatprep.subr.bf16.mxu0 %v8076_v3  ;;  %v8146_v3 = vld [vmem:[#allocation7 + $0x17a0] ss:$8 sps:$4 sm:$0xff]  }
 0x313   :  { %4035 = vmatpush1.bf16.msra.mxu1 %v8071_v7  ;;  %v8149_v7 = vld [vmem:[#allocation7 + $0xfb0] ss:$8 sps:$4 sm:$0xff]  }
 0x314   :  { %6054 = vmatpush1.bf16.msra.mxu0 %v8074_v9  ;;  %4036 = vmatprep.subr.bf16.mxu1 %v8079_v10  ;;  %v8152_v9 = vld [vmem:[#allocation7 + $0x17b0] ss:$8 sps:$4 sm:$0xff]   ;;  %v8157_v10 = vld [vmem:[#allocation7 + $0xfc4] ss:$8 sps:$4 sm:$0xff]  }
 0x315   :  { %6055 = vmatprep.subr.bf16.mxu0 %v8082_v11  ;;  %v8160_v11 = vld [vmem:[#allocation7 + $0x17c4] ss:$8 sps:$4 sm:$0xff]  }
 0x317   :  { %4037 = vmatpush1.bf16.msra.mxu1 %v8077_v43  ;;  %v8155_v43 = vld [vmem:[#allocation7 + $0xfc0] ss:$8 sps:$4 sm:$0xff]  }
 0x318   :  { %6056 = vmatpush1.bf16.msra.mxu0 %v8080_v47  ;;  %4047 = vmatprep.subr.bf16.mxu1 %v8085_v53  ;;  %v8158_v47 = vld [vmem:[#allocation7 + $0x17c0] ss:$8 sps:$4 sm:$0xff]   ;;  %v8163_v53 = vld [vmem:[#allocation7 + $0xfd4] ss:$8 sps:$4 sm:$0xff]  }
 0x319   :  { %6066 = vmatprep.subr.bf16.mxu0 %v8088_v55  ;;  %v8166_v55 = vld [vmem:[#allocation7 + $0x17d4] ss:$8 sps:$4 sm:$0xff]  }
 0x31a   :  { %4039 = vmatmul.mubr.bf16.vlgmr.msra.gmra.mrb[4].mxu1 %v2206_v20  ;;  %v8169_v20 = vld [vmem:[#allocation7 + $0xfe4] ss:$8 sps:$4 sm:$0xff]  }
 0x31b   :  { %6058 = vmatmul.mubr.bf16.vlgmr.msra.gmra.mrb[4].mxu0 %v4225_v49  ;;  %4048 = vmatpush1.bf16.msra.mxu1 %v8083_v21  ;;  %v8172_v49 = vld [vmem:[#allocation7 + $0x17e4] ss:$8 sps:$4 sm:$0xff]   ;;  %v8167_v21 = vld [vmem:[#allocation7 + $0xfe0] ss:$8 sps:$4 sm:$0xff]  }
 0x31c   :  { %6067 = vmatpush1.bf16.msra.mxu0 %v8086_v26  ;;  %4049 = vmatprep.subr.bf16.mxu1 %v8091_v60  ;;  %v8170_v26 = vld [vmem:[#allocation7 + $0x17e0] ss:$8 sps:$4 sm:$0xff]   ;;  %v8175_v60 = vld [vmem:[#allocation7 + $0xff4] ss:$8 sps:$4 sm:$0xff]  }
 0x31d   :  { %6068 = vmatprep.subr.bf16.mxu0 %v8094_v61  ;;  %4079 = vmatprep.mubr.bf16.mxu1 %v2209_v27  ;;  %v8178_v61 = vld [vmem:[#allocation7 + $0x17f4] ss:$8 sps:$4 sm:$0xff]   ;;  %v8173_v27 = vld [vmem:[#allocation7 + $0xff0] ss:$8 sps:$4 sm:$0xff]  }
 0x31e   :  { %6098 = vmatprep.mubr.bf16.mxu0 %v4228_v28  ;;  %v8176_v28 = vld [vmem:[#allocation7 + $0x17f0] ss:$8 sps:$4 sm:$0xff]  }
 0x31f   :  { %4050 = vmatpush1.bf16.msra.mxu1 %v8089_v29  ;;  %v2208_v29 = vpack.c.bf16 %v8635_v19, %v8635_v19 }
 0x320   :  { %6069 = vmatpush1.bf16.msra.mxu0 %v8092_v30  ;;  %4051 = vmatprep.subr.bf16.mxu1 %v8097_v59  ;;  %v4227_v30 = vpack.c.bf16 %v8638_v54, %v8638_v54  ;;  %v2468_v59 = vld [vmem:[#allocation9 + $0x2] sm:$0x3] }
 0x321   :  { %6070 = vmatprep.subr.bf16.mxu0 %v8100_v22  ;;  %v4487_v22 = vld [vmem:[#allocation9 + $0x4] sm:$0x3] }
 0x323   :  { %4052 = vmatpush1.bf16.msra.mxu1 %v8095_v31  ;;  %v2473_v31 = vrot.slane %v2468_v59, %v8544_v5 }
 0x324   :  { %6071 = vmatpush1.bf16.msra.mxu0 %v8098_v32  ;;  %4053 = vmatprep.subr.bf16.mxu1 %v8103_v33  ;;  %v4492_v32 = vrot.slane %v4487_v22, %v8544_v5  ;;  %v2477_v33 = vrot.slane %v2468_v59, %v8547_v8 }
 0x325   :  { %6072 = vmatprep.subr.bf16.mxu0 %v8106_v34  ;;  %v4496_v34 = vrot.slane %v4487_v22, %v8547_v8 }
 0x327   :  { %4054 = vmatpush1.bf16.msra.mxu1 %v8101_v35 }
 0x328   :  { %6073 = vmatpush1.bf16.msra.mxu0 %v8104_v37  ;;  %4055 = vmatprep.subr.bf16.mxu1 %v8109_v14 }
 0x329   :  { %6074 = vmatprep.subr.bf16.mxu0 %v8112_v41 }
 0x32b   :  { %4056 = vmatpush1.bf16.msra.mxu1 %v8107_v18 }
 0x32c   :  { %6075 = vmatpush1.bf16.msra.mxu0 %v8110_v15  ;;  %4057 = vmatprep.subr.bf16.mxu1 %v8115_v12 }
 0x32d   :  { %6076 = vmatprep.subr.bf16.mxu0 %v8118_v44 }
 0x32f   :  { %4058 = vmatpush1.bf16.msra.mxu1 %v8113_v13 }
 0x330   :  { %6077 = vmatpush1.bf16.msra.mxu0 %v8116_v45  ;;  %4059 = vmatprep.subr.bf16.mxu1 %v8121_v48 }
 0x331   :  { %6078 = vmatprep.subr.bf16.mxu0 %v8124_v50 }
 0x333   :  { %4060 = vmatpush1.bf16.msra.mxu1 %v8119_v36 }
 0x334   :  { %6079 = vmatpush1.bf16.msra.mxu0 %v8122_v40  ;;  %4061 = vmatprep.subr.bf16.mxu1 %v8127_v51 }
 0x335   :  { %6080 = vmatprep.subr.bf16.mxu0 %v8130_v56 }
 0x337   :  { %4062 = vmatpush1.bf16.msra.mxu1 %v8125_v57 }
 0x338   :  { %6081 = vmatpush1.bf16.msra.mxu0 %v8128_v58  ;;  %4063 = vmatprep.subr.bf16.mxu1 %v8133_v38 }
 0x339   :  { %6082 = vmatprep.subr.bf16.mxu0 %v8136_v23 }
 0x33b   :  { %4064 = vmatpush1.bf16.msra.mxu1 %v8131_v24 }
 0x33c   :  { %6083 = vmatpush1.bf16.msra.mxu0 %v8134_v25  ;;  %4065 = vmatprep.subr.bf16.mxu1 %v8139_v62 }
 0x33d   :  { %6084 = vmatprep.subr.bf16.mxu0 %v8142_v63 }
 0x33f   :  { %4066 = vmatpush1.bf16.msra.mxu1 %v8137_v39 }
 0x340   :  { %6085 = vmatpush1.bf16.msra.mxu0 %v8140_v42  ;;  %4067 = vmatprep.subr.bf16.mxu1 %v8145_v0 }
 0x341   :  { %6086 = vmatprep.subr.bf16.mxu0 %v8148_v1 }
 0x343   :  { %4068 = vmatpush1.bf16.msra.mxu1 %v8143_v2 }
 0x344   :  { %6087 = vmatpush1.bf16.msra.mxu0 %v8146_v3  ;;  %4069 = vmatprep.subr.bf16.mxu1 %v8151_v4 }
 0x345   :  { %6088 = vmatprep.subr.bf16.mxu0 %v8154_v6 }
 0x347   :  { %4070 = vmatpush1.bf16.msra.mxu1 %v8149_v7 }
 0x348   :  { %6089 = vmatpush1.bf16.msra.mxu0 %v8152_v9  ;;  %4071 = vmatprep.subr.bf16.mxu1 %v8157_v10 }
 0x349   :  { %6090 = vmatprep.subr.bf16.mxu0 %v8160_v11 }
 0x34b   :  { %4072 = vmatpush1.bf16.msra.mxu1 %v8155_v43 }
 0x34c   :  { %6091 = vmatpush1.bf16.msra.mxu0 %v8158_v47  ;;  %4073 = vmatprep.subr.bf16.mxu1 %v8163_v53 }
 0x34d   :  { %6092 = vmatprep.subr.bf16.mxu0 %v8166_v55 }
 0x34f   :  { %4074 = vmatpush1.bf16.msra.mxu1 %v8161_v16 }
 0x350   :  { %6093 = vmatpush1.bf16.msra.mxu0 %v8164_v17  ;;  %4075 = vmatprep.subr.bf16.mxu1 %v8169_v20 }
 0x351   :  { %6094 = vmatprep.subr.bf16.mxu0 %v8172_v49 }
 0x353   :  { %4076 = vmatpush1.bf16.msra.mxu1 %v8167_v21 }
 0x354   :  { %6095 = vmatpush1.bf16.msra.mxu0 %v8170_v26  ;;  %4077 = vmatprep.subr.bf16.mxu1 %v8175_v60 }
 0x355   :  { %6096 = vmatprep.subr.bf16.mxu0 %v8178_v61 }
 0x357   :  { %4078 = vmatpush1.bf16.msra.mxu1 %v8173_v27 }
 0x358   :  { %6097 = vmatpush1.bf16.msra.mxu0 %v8176_v28 }
 0x35a   :  { %4080 = vmatmul.mubr.bf16.vlgmr.msra.gmra.mrb[4].mxu1 %v2208_v29 }
 0x35b   :  { %6099 = vmatmul.mubr.bf16.vlgmr.msra.gmra.mrb[4].mxu0 %v4227_v30 }
 0x42d   :  { %v4081_v35 = vpop.f32.mrb[4].mxu1 }
 0x42e   :  { %v6100_v37 = vpop.f32.mrb[4].mxu0  ;;  %v6924_v19 = vadd.f32 %v4081_v35, %v2473_v31  ;;  %v4083_v41 = vpop.f32.mrb[5].mxu1 }
 0x42f   :  { %v6926_v14 = vadd.f32 %v6100_v37, %v4492_v32  ;;  %v6102_v54 = vpop.f32.mrb[5].mxu0  ;;  %v6925_v18 = vadd.f32 %v4083_v41, %v2477_v33  ;;  %v4085_v12 = vpop.f32.mrb[6].mxu1 }
 0x430   :  { %v6927_v15 = vadd.f32 %v6102_v54, %v4496_v34  ;;  %v6104_v44 = vpop.f32.mrb[6].mxu0  ;;  %v4088_v13 = vmax.f32 %v6924_v19, 0.0  ;;  %v4086_v48 = vpop.f32.mrb[7].mxu1 }
 0x431   :  { %v6107_v45 = vmax.f32 %v6926_v14, 0.0  ;;  %v6105_v50 = vpop.f32.mrb[7].mxu0  ;;  %v4089_v36 = vmax.f32 %v6925_v18, 0.0 }
 0x432   :  { %v6108_v5 = vmax.f32 %v6927_v15, 0.0 }
 0x433   :  { %v4092_v40 = vcombine.low %v4088_v13, %v4089_v36 }
 0x434   :  { %v6111_v51 = vcombine.low %v6107_v45, %v6108_v5 }
 0x435   :  { %v4099_v8 = vrot.slane %v4092_v40, %v8552_v46 }
 0x436   :  { %v6118_v56 = vrot.slane %v6111_v51, %v8552_v46 }
 0x437   :  { %v4100_v57 = vcombine.high %v4099_v8, %v4099_v8  ;;  %v4107_v58 = vrot.slane %v4099_v8, %v8552_v46 }
 0x438   :  { %v6119_v38 = vcombine.high %v6118_v56, %v6118_v56  ;;  %v6126_v23 = vrot.slane %v6118_v56, %v8552_v46 }
 0x439   :  { %v4114_v24 = vrot.slane %v4100_v57, %v8552_v46  ;;  %6660 = vst.msk [vmem:[%s8687_s5 + $0x1] ss:$4 sm:$0x3] %vm8556_vm0, %v4107_v58 }
 0x43a   :  { %v6133_v25 = vrot.slane %v6119_v38, %v8552_v46  ;;  %6918 = vst.msk [vmem:[%s8687_s5 + $0x2] ss:$4 sm:$0x3] %vm8556_vm0, %v6126_v23 }
 0x43b   :  { %6661 = vst.msk [vmem:[%s8687_s5 + $0x9] ss:$4 sm:$0x3] %vm8556_vm0, %v4114_v24 }
 0x43c   :  { %6919 = vst.msk [vmem:[%s8687_s5 + $0xa] ss:$4 sm:$0x3] %vm8556_vm0, %v6133_v25 }
 0x43d   :  { %6144 = vsyncpa [#allocation3], 1 }
 0x43e   :  { %6145 = vsyncpa [#allocation5], 1 }
 0x43f   :  { %6146 = vsyncpa [#allocation8], 1 }

</bundles_post_ra>
